<compile_context>
chip_gen: v7x
topology: tpu7x:2x2x1
jax: 0.10.0
libtpu: 0.0.40
codegen_flags: <defaults>
</compile_context>

<pallas_src>
import jax
import jax.numpy as jnp
from jax.experimental import pallas as pl
from jax.experimental.pallas import tpu as pltpu

IN_FEATURES = 1536
OUT_FEATURES = 384
TK = 512                      # K chunk: 1536 = 3 * 512, streamed over grid axis 1


def _gelu_exact(x):
    # PyTorch GELU(approximate='none') == 0.5 * x * (1 + erf(x / sqrt(2)))
    inv_sqrt2 = jnp.float32(0.7071067811865476)
    return 0.5 * x * (1.0 + jax.lax.erf(x * inv_sqrt2))


def gelu_linear_kernel(x_ref, w_ref, b_ref, o_ref):
    # x_ref: (tm, TK)        input rows, K chunk `k`
    # w_ref: (TK, N_out)     pre-transposed weight chunk `k`
    # b_ref: (1, N_out)
    # o_ref: (tm, N_out)     resident f32 accumulator (same block across k)
    k = pl.program_id(1)
    g = _gelu_exact(x_ref[...])
    part = jnp.dot(g, w_ref[...], preferred_element_type=jnp.float32)

    @pl.when(k == 0)
    def _():
        # Fold bias into the accumulator init -> no separate epilogue add.
        o_ref[...] = part + b_ref[...]

    @pl.when(k > 0)
    def _():
        o_ref[...] = o_ref[...] + part


def prepare_params(weight, bias):
    """One-time parameter setup (outside the per-call path).

    weight: (OUT_FEATURES, IN_FEATURES) PyTorch layout -> (IN, OUT)
    bias:   (OUT_FEATURES,)             -> (1, OUT)
    """
    w_kn = jnp.asarray(weight).T.copy()          # (1536, 384)
    b2d = jnp.asarray(bias).reshape(1, OUT_FEATURES)
    return w_kn, b2d


def _multi_tensorcore_chip():
    # v7x (and v4 / v5p megacore) have 2 TensorCores per chip; v5e/v6e have 1.
    try:
        kind = jax.devices()[0].device_kind.lower()
    except Exception:
        return False
    return ("v7" in kind) or ("v4" in kind) or ("v5p" in kind)


def gelu_linear(x_nhwc, weight_kn, bias_2d):
    """Fused exact-GELU + Linear.

    x_nhwc:    (N, H, W, IN_FEATURES) float32
    weight_kn: (IN_FEATURES, OUT_FEATURES)  -- pre-transposed via prepare_params
    bias_2d:   (1, OUT_FEATURES)
    """
    n, h, w, kdim = x_nhwc.shape
    assert kdim == IN_FEATURES
    assert weight_kn.shape == (IN_FEATURES, OUT_FEATURES)
    m = n * h * w
    x2d = x_nhwc.reshape(m, kdim)

    # Generation-aware M tiling.
    if _multi_tensorcore_chip() and m > 8:
        half = pl.cdiv(m, 2)
        tm = ((half + 7) // 8) * 8               # balanced, 8-aligned split
        if tm >= m:
            tm, grid_m = m, 1
        else:
            grid_m = pl.cdiv(m, tm)              # e.g. 196 -> 104 / 92
    else:
        tm, grid_m = m, 1                        # single full-extent block

    grid_k = IN_FEATURES // TK                   # 3

    cost = pl.CostEstimate(
        flops=2 * m * IN_FEATURES * OUT_FEATURES,
        transcendentals=m * IN_FEATURES,
        bytes_accessed=4 * (m * IN_FEATURES
                            + OUT_FEATURES * IN_FEATURES
                            + OUT_FEATURES
                            + m * OUT_FEATURES),
    )

    out2d = pl.pallas_call(
        gelu_linear_kernel,
        out_shape=jax.ShapeDtypeStruct((m, OUT_FEATURES), jnp.float32),
        grid=(grid_m, grid_k),
        in_specs=[
            pl.BlockSpec((tm, TK), lambda i, k: (i, k)),
            pl.BlockSpec((TK, OUT_FEATURES), lambda i, k: (k, 0)),
            pl.BlockSpec((1, OUT_FEATURES), lambda i, k: (0, 0)),
        ],
        out_specs=pl.BlockSpec((tm, OUT_FEATURES), lambda i, k: (i, 0)),
        compiler_params=pltpu.CompilerParams(
            dimension_semantics=("parallel", "arbitrary")),
        cost_estimate=cost,
    )(x2d, weight_kn, bias_2d)

    return out2d.reshape(n, h, w, OUT_FEATURES)


if __name__ == "__main__":
    key = jax.random.PRNGKey(0)
    kx, kw, kb = jax.random.split(key, 3)

    # Input matching the module: [1, 14, 14, 1536]
    x = jax.random.normal(kx, (1, 14, 14, IN_FEATURES), dtype=jnp.float32)

    # Deterministic parameter init (PyTorch Linear default-ish uniform),
    # in the native PyTorch (OUT, IN) layout.
    bound = 1.0 / jnp.sqrt(jnp.float32(IN_FEATURES))
    weight = jax.random.uniform(
        kw, (OUT_FEATURES, IN_FEATURES), dtype=jnp.float32,
        minval=-bound, maxval=bound)
    bias = jax.random.uniform(
        kb, (OUT_FEATURES,), dtype=jnp.float32, minval=-bound, maxval=bound)

    # One-time parameter setup (transpose amortized outside the call path).
    weight_kn, bias_2d = prepare_params(weight, bias)

    out = gelu_linear(x, weight_kn, bias_2d)
    out = jax.block_until_ready(out)

    # Reference check in plain JAX (exact GELU + linear)
    ref = (jax.nn.gelu(x, approximate=False).reshape(-1, IN_FEATURES)
           @ weight.T + bias)
    ref = ref.reshape(1, 14, 14, OUT_FEATURES)
    assert out.shape == (1, 14, 14, OUT_FEATURES)
    assert jnp.allclose(out, ref, atol=1e-4, rtol=1e-4)

    print("KERNEL_OK")
</pallas_src>

<mosaic_0001>
module attributes {stable_mosaic.version = 11 : i64} {
  func.func @gelu_linear_kernel(%arg0: i32, %arg1: i32, %arg2: memref<196x512xf32, #tpu.memory_space<vmem>>, %arg3: memref<512x384xf32, #tpu.memory_space<vmem>>, %arg4: memref<1x384xf32, #tpu.memory_space<vmem>>, %arg5: memref<196x384xf32, #tpu.memory_space<vmem>>) attributes {dimension_semantics = [#tpu.dimension_semantics<parallel>, #tpu.dimension_semantics<arbitrary>], iteration_bounds = array<i64: 1, 3>, scalar_prefetch = 0 : i64, scratch_operands = 0 : i64, tpu.core_type = #tpu.core_type<tc>, window_params = [{transform_indices = @transform_0, window_bounds = array<i64: 196, 512>}, {transform_indices = @transform_1, window_bounds = array<i64: 512, 384>}, {pipeline_mode = #tpu.pipeline_mode<synchronous>, transform_indices = @transform_2, window_bounds = array<i64: 1, 384>}, {transform_indices = @transform_3, window_bounds = array<i64: 196, 384>}]} {
    %c0 = arith.constant 0 : index
    %c0_0 = arith.constant 0 : index
    %0 = vector.load %arg2[%c0, %c0_0] : memref<196x512xf32, #tpu.memory_space<vmem>>, vector<196x512xf32>
    %cst = arith.constant 5.000000e-01 : f32
    %1 = vector.broadcast %cst : f32 to vector<196x512xf32>
    %2 = arith.mulf %1, %0 : vector<196x512xf32>
    %cst_1 = arith.constant 0.707106769 : f32
    %3 = vector.broadcast %cst_1 : f32 to vector<196x512xf32>
    %4 = arith.mulf %0, %3 : vector<196x512xf32>
    %5 = math.erf %4 : vector<196x512xf32>
    %cst_2 = arith.constant 1.000000e+00 : f32
    %6 = vector.broadcast %cst_2 : f32 to vector<196x512xf32>
    %7 = arith.addf %6, %5 : vector<196x512xf32>
    %8 = arith.mulf %2, %7 : vector<196x512xf32>
    %c0_3 = arith.constant 0 : index
    %c0_4 = arith.constant 0 : index
    %9 = vector.load %arg3[%c0_3, %c0_4] : memref<512x384xf32, #tpu.memory_space<vmem>>, vector<512x384xf32>
    %cst_5 = arith.constant dense<0.000000e+00> : vector<196x384xf32>
    %10 = tpu.matmul %8, %9, %cst_5 {dimension_numbers = #tpu.dot_dimension_numbers<[1], [0], [0], [1], [0, 0, 1, 1], [], []>} : vector<196x512xf32>, vector<512x384xf32>, vector<196x384xf32> -> vector<196x384xf32>
    %c0_i32 = arith.constant 0 : i32
    %11 = arith.cmpi eq, %arg1, %c0_i32 : i32
    %12 = arith.extui %11 : i1 to i32
    %c0_i32_6 = arith.constant 0 : i32
    %13 = arith.cmpi ne, %12, %c0_i32_6 : i32
    scf.if %13 {
      %c0_9 = arith.constant 0 : index
      %c0_10 = arith.constant 0 : index
      %17 = vector.load %arg4[%c0_9, %c0_10] : memref<1x384xf32, #tpu.memory_space<vmem>>, vector<1x384xf32>
      %18 = vector.broadcast %17 : vector<1x384xf32> to vector<196x384xf32>
      %19 = arith.addf %10, %18 : vector<196x384xf32>
      %c0_11 = arith.constant 0 : index
      %c0_12 = arith.constant 0 : index
      %20 = vector.load %arg5[%c0_11, %c0_12] : memref<196x384xf32, #tpu.memory_space<vmem>>, vector<196x384xf32>
      tpu.vector_store %arg5[%c0_11, %c0_12], %19 {strides = array<i32>} : memref<196x384xf32, #tpu.memory_space<vmem>>, vector<196x384xf32>,
    } else {
    }
    %c0_i32_7 = arith.constant 0 : i32
    %14 = arith.cmpi sgt, %arg1, %c0_i32_7 : i32
    %15 = arith.extui %14 : i1 to i32
    %c0_i32_8 = arith.constant 0 : i32
    %16 = arith.cmpi ne, %15, %c0_i32_8 : i32
    scf.if %16 {
      %c0_9 = arith.constant 0 : index
      %c0_10 = arith.constant 0 : index
      %17 = vector.load %arg5[%c0_9, %c0_10] : memref<196x384xf32, #tpu.memory_space<vmem>>, vector<196x384xf32>
      %18 = arith.addf %17, %10 : vector<196x384xf32>
      %c0_11 = arith.constant 0 : index
      %c0_12 = arith.constant 0 : index
      %19 = vector.load %arg5[%c0_11, %c0_12] : memref<196x384xf32, #tpu.memory_space<vmem>>, vector<196x384xf32>
      tpu.vector_store %arg5[%c0_11, %c0_12], %18 {strides = array<i32>} : memref<196x384xf32, #tpu.memory_space<vmem>>, vector<196x384xf32>,
    } else {
    }
    return
  }
  func.func @transform_0(%arg0: i32, %arg1: i32) -> (i32, i32) {
    %c0_i32 = arith.constant 0 : i32
    return %arg0, %arg1 : i32, i32
  }
  func.func @transform_1(%arg0: i32, %arg1: i32) -> (i32, i32) {
    %c0_i32 = arith.constant 0 : i32
    %c0_i32_0 = arith.constant 0 : i32
    return %arg1, %c0_i32 : i32, i32
  }
  func.func @transform_2(%arg0: i32, %arg1: i32) -> (i32, i32) {
    %c0_i32 = arith.constant 0 : i32
    %c0_i32_0 = arith.constant 0 : i32
    %c0_i32_1 = arith.constant 0 : i32
    return %c0_i32, %c0_i32_0 : i32, i32
  }
  func.func @transform_3(%arg0: i32, %arg1: i32) -> (i32, i32) {
    %c0_i32 = arith.constant 0 : i32
    %c0_i32_0 = arith.constant 0 : i32
    return %arg0, %c0_i32 : i32, i32
  }
}

</mosaic_0001>

<bundles_post_ra>
// kernel: tpu_custom_call.1
= control target key start
LH: loop header
LB: loop body
LE: loop exit
PB: predicated region body
PF: predicated region fallthrough
CT: control target
= control target key end

     0   :  { %s4536_s0 = inlined_call_operand.hbm [shape: f32[196,1536], index: 0, kind: input, shape index: {}]   ;;  %s4537_s1 = inlined_call_operand.hbm [shape: f32[1536,384], index: 1, kind: input, shape index: {}]   ;;  %s4538_s2 = inlined_call_operand.hbm [shape: f32[1,384], index: 2, kind: input, shape index: {}]   ;;  %s4539_s3 = inlined_call_operand.hbm [shape: f32[196,384], index: 3, kind: output, shape index: {}]  }
   0x1   :  { %4553 = sst [smem:[#allocation45_spill]] %s4536_s0 }
   0x2   :  { %8 = vsyncpa [#allocation3], 0 }
   0x3   :  { %10 = vsyncpa [#allocation3 + $0x1], 0 }
   0x4   :  { %11 = vsyncpa [#allocation6], 0 }
   0x5   :  { %13 = vsyncpa [#allocation6 + $0x1], 0 }
   0x6   :  { %14 = vsyncpa [#allocation4], 0  ;;  %s3210_s12 = smov 0   ;;  %s3212_s13 = smov 0  }
   0x7   :  { %s3214_s14 = smov 0   ;;  %s3216_s15 = smov 0  }
   0x8   :  { %s3218_s16 = smov 0   ;;  %s3220_s17 = smov 0  }
   0x9 LB: > { %s3239_s18 = sadd.s32 4294967295, %s3176_s17   ;;  %s41_s19 = sadd.s32 1, %s3164_s14  ;;  %s3176_s17 = sphi %s3220_s17, %s20_s17   ;;  %s3172_s16 = sphi %s3218_s16, %s4655_s16   ;;  %s3168_s15 = sphi %s3216_s15, %s4654_s15   ;;  %s3164_s14 = sphi %s3214_s14, %s4653_s14   ;;  %s3160_s13 = sphi %s3212_s13, %s4652_s13   ;;  %s3156_s12 = sphi %s3210_s12, %s4651_s12  }
   0xa   : > { %p48_p0 = scmp.ne.s32.totalorder %s3164_s14, %s3160_s13  ;;  %p49_p1 = scmp.eq.s32.totalorder %s3176_s17, 0 }
   0xb   : > { %p54_p2 = scmp.ne.s32.totalorder %s3160_s13, %s3156_s12  ;;  %p4540_p3 = scmp.eq.s32.totalorder %s3239_s18, 0 }
   0xc   : > { %p50_p4 = por %p49_p1, %p48_p0  ;;  %p2368_p5 = scmp.ge.s32.totalorder %s3176_s17, 1 }
   0xd   : > { %p3250_p6 = por %p4540_p3, %p54_p2  ;;  %p138_p7 = scmp.lt.s32.totalorder %s3176_s17, 4 }
   0xe   : > { %s3178_s22 = smov [#allocation7]   ;;  %p2738_p10 = scmp.lt.s32.totalorder %s3176_s17, 3 }
   0xf   : > { %s4554_s20 = scalar_select %p3250_p6, 1, 0 }
  0x10   : > { %p3255_p8 = pnand %p2368_p5, %p138_p7  ;;  %s151_s23 = sshll.u32 %s3178_s22, 4  ;;  %s152_s23 = int_to_ptr.vmem [resolvable:$true] %s151_s23 }
  0x11   : > { %s3263_s24 = sand.u32 1, %s3164_s14   ;;  %p3271_p12 = pnand %p2738_p10, %p50_p4 }
  0x12   : > { %s4555_s21 = scalar_select %p3255_p8, 1, 0 }
  0x13   : > { %p2726_p9 = pneg %p3255_p8  ;;  %s3000_s29 = scalar_lea.hbm %s4538_s2, 48 }
  0x14   : > { %s4557_s26 = scalar_select %p3271_p12, 1, 0 }
  0x15   : > { %p3267_p11 = pnand %p2726_p9, %p4540_p3  ;;  %p3001_p13 = scmp.ne.s32.totalorder %s4538_s2, %s3000_s29 }
  0x16   : > { %p3007_p5 = scmp.lt.u32.totalorder %s3000_s29, %s4538_s2 }
  0x17   : > { %p3002_p0 = pneg %p3267_p11 }
  0x19   : > { %p3003_p1 = pnand %p3002_p0, %p3001_p13 }
  0x1b   : > { %p3004_p2 = pneg %p3003_p1 }
  0x1d   : > { %p3009_p4 = pnand %p3007_p5, %p3004_p2 }
  0x1f   : > { %3012 = shalt.err (!%p3009_p4)
}
  0x20   : > { %s3013_s7 = scalar_lea.vmem %s152_s23, 48  ;;  %s3020_s8 = scalar_lea.vmem %s152_s23, 64 }
  0x21   : > { %p3014_p7 = scmp.ne.s32.totalorder %s152_s23, %s3013_s7  ;;  %p3021_p3 = scmp.lt.s32.totalorder %s152_s23, %s152_s23 }
  0x22   : > { %p3022_p6 = scmp.lt.s32.totalorder %s3020_s8, %s3013_s7 }
  0x23   : > { %p3016_p9 = pnand %p3014_p7, %p3002_p0 }
  0x24   : > { %p3023_p8 = por %p3022_p6, %p3021_p3 }
  0x25   : > { %p3017_p10 = pneg %p3016_p9 }
  0x27   : > { %p3024_p12 = pnand %p3023_p8, %p3017_p10 }
  0x29   : > { %3027 = shalt.err (!%p3024_p12)
}
  0x2a   : > { %2729 = dma.hbm_to_vmem [thread:$0]  (!%p3267_p11), %s4538_s2, 48, %s152_s23, [#allocation6]  }
  0x2b   : > { %s29_s11 = sadd.s32 1, %s3172_s16  ;;  %s2709_s12 = smul.u32 800, %s3263_s24 }
  0x2c   : > { %p30_p3 = scmp.ge.s32.totalorder %s29_s11, 3  ;;  %s2384_s22 = sshll.u32 %s3172_s16, 9 }
  0x2d   : > { %s4558_s0 = sld [smem:[#allocation45_spill]]  ;;  %s166_s29 = scalar_lea.vmem [#allocation2], %s2709_s12 }
  0x2e   : > { %s4657_s11 = smov (%p30_p3, %s29_s11), 0  ;;  %s176_s30 = sshll.u32 %s166_s29, 4  ;;  %s3303_s30 = int_to_ptr.vmem [resolvable:$true] %s176_s30 }
  0x2f   : > { %s37_s23 = ssub.s32 %s3172_s16, %s4657_s11  ;;  %s186_s4 = sand.u32 1, %s3176_s17  }
  0x30   : > { %p39_p6 = scmp.eq.s32.totalorder %s37_s23, 0  ;;  %s163_s6 = scalar_lea.sflag [#allocation3], %s3263_s24 }
  0x31   : > { %p4559_p11 = scmp.ne.s32.totalorder %s4557_s26, 0 }
  0x32   : > { %s3309_s5 = scalar_select %p39_p6, %s3164_s14, %s41_s19  }
  0x33   : > { %s3297_s28 = scalar_lea.hbm %s4558_s0, %s2384_s22  ;;  %p3030_p12 = pneg %p4559_p11 }
  0x34   : > { %s3028_s7 = scalar_lea.hbm %s3297_s28, 12800  ;;  %s3033_s10 = scalar_lea.hbm %s4558_s0, 38400 }
  0x35   : > { %p3029_p8 = scmp.ne.s32.totalorder %s3297_s28, %s3028_s7  ;;  %p3034_p1 = scmp.lt.u32.totalorder %s3297_s28, %s4558_s0 }
  0x36   : > { %p3035_p2 = scmp.lt.u32.totalorder %s3033_s10, %s3028_s7  ;;  %p3037_p4 = scmp.lt.u32.totalorder %s3028_s7, %s3297_s28 }
  0x37   : > { %p3031_p13 = pnand %p3030_p12, %p3029_p8 }
  0x38   : > { %p3036_p5 = por %p3035_p2, %p3034_p1 }
  0x39   : > { %p3032_p0 = pneg %p3031_p13 }
  0x3a   : > { %p3038_p7 = por %p3037_p4, %p3036_p5 }
  0x3c   : > { %p3039_p9 = pnand %p3038_p7, %p3032_p0 }
  0x3e   : > { %3042 = shalt.err (!%p3039_p9)
}
  0x3f   : > { %s3043_s19 = scalar_lea.vmem %s3303_s30, 12800  ;;  %s3179_s27 = smov [#allocation2]  }
  0x40   : > { %p3044_p10 = scmp.ne.s32.totalorder %s3303_s30, %s3043_s19  ;;  %s3048_s25 = sshll.u32 %s3179_s27, 4  ;;  %s3049_s25 = int_to_ptr.vmem [resolvable:$false] %s3048_s25 }
  0x41   : > { %s3050_s29 = scalar_lea.vmem %s3049_s25, 25600  ;;  %p3051_p8 = scmp.lt.s32.totalorder %s3303_s30, %s3049_s25 }
  0x42   : > { %p3046_p3 = pnand %p3044_p10, %p3030_p12  ;;  %p3052_p13 = scmp.lt.s32.totalorder %s3050_s29, %s3043_s19 }
  0x44   : > { %p3047_p6 = pneg %p3046_p3  ;;  %p3053_p1 = por %p3052_p13, %p3051_p8 }
  0x46   : > { %p3054_p2 = pnand %p3053_p1, %p3047_p6 }
  0x48   : > { %3057 = shalt.err (!%p3054_p2)
}
  0x49   : > { %s3180_s23 = smov 1536   ;;  %s3181_s7 = smov 512  }
  0x4a   : > { %s3182_s8 = smov 32   ;;  %s2710_s9 = smul.u32 1536, %s3263_s24 }
  0x4b   : > { %2733 = dma.hbm_to_vmem [thread:$0]  (!%p4559_p11), %s3297_s28, 12800, %s3303_s30, %s163_s6, %s3180_s23, %s3181_s7, %s3182_s8  }
  0x4c   : > { %s2711_s10 = smul.u32 24576, %s3172_s16  ;;  %s190_s27 = scalar_lea.vmem [#allocation5], %s2710_s9 }
  0x4d   : > { %s198_s25 = sshll.u32 %s190_s27, 4  ;;  %s3350_s29 = scalar_lea.sflag [#allocation6], %s186_s4  ;;  %s3346_s25 = int_to_ptr.vmem [resolvable:$true] %s198_s25 }
  0x4e   : > { %s3344_s19 = scalar_lea.hbm %s4537_s1, %s2711_s10  ;;  %s3063_s30 = scalar_lea.hbm %s4537_s1, 73728 }
  0x4f   : > { %s3058_s0 = scalar_lea.hbm %s3344_s19, 24576  ;;  %p3064_p7 = scmp.lt.u32.totalorder %s3344_s19, %s4537_s1 }
  0x50   : > { %p3059_p0 = scmp.ne.s32.totalorder %s3344_s19, %s3058_s0  ;;  %p3065_p9 = scmp.lt.u32.totalorder %s3063_s30, %s3058_s0 }
  0x51   : > { %p3067_p3 = scmp.lt.u32.totalorder %s3058_s0, %s3344_s19 }
  0x52   : > { %p3061_p5 = pnand %p3059_p0, %p3030_p12  ;;  %p3066_p10 = por %p3065_p9, %p3064_p7 }
  0x54   : > { %p3062_p4 = pneg %p3061_p5  ;;  %p3068_p6 = por %p3067_p3, %p3066_p10 }
  0x56   : > { %p3069_p8 = pnand %p3068_p6, %p3062_p4 }
  0x58   : > { %3072 = shalt.err (!%p3069_p8)
}
  0x59   : > { %s3073_s4 = scalar_lea.vmem %s3346_s25, 24576  ;;  %s3183_s7 = smov [#allocation5]  }
  0x5a   : > { %p3074_p13 = scmp.ne.s32.totalorder %s3346_s25, %s3073_s4  ;;  %s3078_s8 = sshll.u32 %s3183_s7, 4  ;;  %s3079_s8 = int_to_ptr.vmem [resolvable:$false] %s3078_s8 }
  0x5b   : > { %s3080_s9 = scalar_lea.vmem %s3079_s8, 49152  ;;  %p3081_p0 = scmp.lt.s32.totalorder %s3346_s25, %s3079_s8 }
  0x5c   : > { %p3076_p1 = pnand %p3074_p13, %p3030_p12  ;;  %p3082_p5 = scmp.lt.s32.totalorder %s3080_s9, %s3073_s4 }
  0x5e   : > { %p3077_p2 = pneg %p3076_p1  ;;  %p3083_p7 = por %p3082_p5, %p3081_p0 }
  0x60   : > { %p3084_p9 = pnand %p3083_p7, %p3077_p2 }
  0x62   : > { %3087 = shalt.err (!%p3084_p9)
}
  0x63   : > { %s3184_s0 = smov 384   ;;  %s3185_s10 = smov 24  }
  0x64   : > { %2736 = dma.hbm_to_vmem [thread:$0]  (!%p4559_p11), %s3344_s19, 24576, %s3346_s25, %s3350_s29, %s3184_s0, %s3184_s0, %s3185_s10  }
  0x65   : > { %p4560_p12 = scmp.ne.s32.totalorder %s4555_s21, 0 }
  0x67   : > { %210 = sbr.rel (%p4560_p12) target bundleno = 713 (0x2c9), region = 32 }
  0x6e   : > { %s212_s12 = sand.u32 1, %s3160_s13   ;;  %p4561_p4 = scmp.ne.s32.totalorder %s4554_s20, 0 }
  0x6f   : > { %s2712_s22 = smul.u32 800, %s212_s12  ;;  %s213_s27 = scalar_lea.sflag [#allocation3], %s212_s12 }
  0x71   : > { %s3379_s24 = scalar_lea.vmem [#allocation2], %s2712_s22 }
  0x72   : > { %3139 = dma.done.wait (%p4561_p4), %s213_s27, 12800  }
  0x73   : > { %3141 = vsyncadd (%p4561_p4), %s213_s27, 4294954496  ;;  %s221_s28 = sand.u32 1, %s3239_s18   ;;  %s2713_s26 = smul.u32 1536, %s212_s12 }
  0x74   : > { %s222_s19 = scalar_lea.sflag [#allocation6], %s221_s28 }
  0x75   : > { %s3386_s25 = scalar_lea.vmem [#allocation5], %s2713_s26 }
  0x76   : > { %3143 = dma.done.wait (%p4561_p4), %s222_s19, 24576  }
  0x77   : > { %3145 = vsyncadd (%p4561_p4), %s222_s19, 4294942720  ;;  %p4562_p11 = scmp.eq.s32.totalorder %s3239_s18, 0 }
  0x79   : > { %3147 = dma.done.wait (%p4562_p11), [#allocation6], 48   ;;  %p4563_p10 = pmov %p4562_p11 }
  0x7a   : > { %v3186_v0 = vmov 0.0|0.0   ;;  %v857_v1 = vld [vmem:[%s3386_s25 + $0x8] sm:$0xff]  ;;  %v860_v2 = vld [vmem:[%s3386_s25 + $0x20] sm:$0xff]  ;;  %v858_v3 = vld [vmem:[%s3386_s25 + $0x10] sm:$0xff]  ;;  %p2378_p3 = scmp.ne.s32.totalorder %s3168_s15, 0 }
  0x7b   : > { %3149 = vsyncadd (%p4563_p10), [#allocation6], 4294967248  ;;  %2513 = vmatprep.subr.bf16.mxu1 %v3186_v0  ;;  %v2385_v4 = vpack.c.bf16 %v860_v2, %v857_v1  ;;  %v861_v5 = vld [vmem:[%s3386_s25 + $0x28] sm:$0xff]  ;;  %v856_v6 = vld [vmem:[%s3386_s25] sm:$0xff] }
  0x7c   : > { %v859_v7 = vld [vmem:[%s3386_s25 + $0x18] sm:$0xff]  ;;  %v2514_v8 = vpack.c.bf16 %v861_v5, %v858_v3  ;;  %v866_v11 = vld [vmem:[%s3386_s25 + $0x50] sm:$0xff]  ;;  %v864_v12 = vld [vmem:[%s3386_s25 + $0x40] sm:$0xff] }
  0x7d   : > { %v2387_v9 = vpack.c.bf16 %v859_v7, %v856_v6  ;;  %v863_v10 = vld [vmem:[%s3386_s25 + $0x38] sm:$0xff]  ;;  %2386 = vmatprep.subr.bf16.mxu0 %v2385_v4  ;;  %v862_v15 = vld [vmem:[%s3386_s25 + $0x30] sm:$0xff]  ;;  %v865_v16 = vld [vmem:[%s3386_s25 + $0x48] sm:$0xff] }
  0x7e   : > { %v2389_v13 = vpack.c.bf16 %v866_v11, %v863_v10  ;;  %v867_v14 = vld [vmem:[%s3386_s25 + $0x58] sm:$0xff]  ;;  %2515 = vmatpush1.bf16.msra.mxu1 %v2514_v8  ;;  %v2391_v18 = vpack.c.bf16 %v865_v16, %v862_v15  ;;  %v869_v19 = vld [vmem:[%s3386_s25 + $0x68] sm:$0xff]  ;;  %v872_v20 = vld [vmem:[%s3386_s25 + $0x80] sm:$0xff] }
  0x7f   : > { %2388 = vmatpush1.bf16.msra.mxu0 %v2387_v9  ;;  %v2517_v17 = vpack.c.bf16 %v867_v14, %v864_v12  ;;  %v870_v21 = vld [vmem:[%s3386_s25 + $0x70] sm:$0xff]  ;;  %2516 = vmatprep.subr.bf16.mxu1 %v3186_v0  ;;  %v2393_v22 = vpack.c.bf16 %v872_v20, %v869_v19  ;;  %v873_v23 = vld [vmem:[%s3386_s25 + $0x88] sm:$0xff]  ;;  %v868_v24 = vld [vmem:[%s3386_s25 + $0x60] sm:$0xff] }
  0x80   : > { %2390 = vmatprep.subr.bf16.mxu0 %v2389_v13  ;;  %v871_v25 = vld [vmem:[%s3386_s25 + $0x78] sm:$0xff]  ;;  %v878_v27 = vld [vmem:[%s3386_s25 + $0xb0] sm:$0xff]  ;;  %v2520_v28 = vpack.c.bf16 %v873_v23, %v870_v21  ;;  %v876_v30 = vld [vmem:[%s3386_s25 + $0xa0] sm:$0xff] }
  0x81   : > { %v875_v26 = vld [vmem:[%s3386_s25 + $0x98] sm:$0xff]  ;;  %v2395_v29 = vpack.c.bf16 %v871_v25, %v868_v24  ;;  %v874_v33 = vld [vmem:[%s3386_s25 + $0x90] sm:$0xff]  ;;  %v877_v34 = vld [vmem:[%s3386_s25 + $0xa8] sm:$0xff] }
  0x82   : > { %2518 = vmatpush1.bf16.msra.mxu1 %v2517_v17  ;;  %v2397_v31 = vpack.c.bf16 %v878_v27, %v875_v26  ;;  %v879_v32 = vld [vmem:[%s3386_s25 + $0xb8] sm:$0xff]  ;;  %v881_v35 = vld [vmem:[%s3386_s25 + $0xc8] sm:$0xff]  ;;  %v884_v36 = vld [vmem:[%s3386_s25 + $0xe0] sm:$0xff]  ;;  %v2399_v38 = vpack.c.bf16 %v877_v34, %v874_v33 }
  0x83   : > { %2392 = vmatpush1.bf16.msra.mxu0 %v2391_v18  ;;  %2519 = vmatprep.subr.bf16.mxu1 %v3186_v0  ;;  %v2523_v37 = vpack.c.bf16 %v879_v32, %v876_v30  ;;  %v882_v39 = vld [vmem:[%s3386_s25 + $0xd0] sm:$0xff]  ;;  %v2401_v40 = vpack.c.bf16 %v884_v36, %v881_v35  ;;  %v885_v41 = vld [vmem:[%s3386_s25 + $0xe8] sm:$0xff]  ;;  %v880_v42 = vld [vmem:[%s3386_s25 + $0xc0] sm:$0xff] }
  0x84   : > { %2394 = vmatprep.subr.bf16.mxu0 %v2393_v22  ;;  %v883_v43 = vld [vmem:[%s3386_s25 + $0xd8] sm:$0xff]  ;;  %v890_v45 = vld [vmem:[%s3386_s25 + $0x110] sm:$0xff]  ;;  %v2526_v46 = vpack.c.bf16 %v885_v41, %v882_v39  ;;  %v888_v48 = vld [vmem:[%s3386_s25 + $0x100] sm:$0xff] }
  0x85   : > { %v887_v44 = vld [vmem:[%s3386_s25 + $0xf8] sm:$0xff]  ;;  %v2403_v47 = vpack.c.bf16 %v883_v43, %v880_v42  ;;  %v886_v51 = vld [vmem:[%s3386_s25 + $0xf0] sm:$0xff]  ;;  %v889_v52 = vld [vmem:[%s3386_s25 + $0x108] sm:$0xff] }
  0x86   : > { %2521 = vmatpush1.bf16.msra.mxu1 %v2520_v28  ;;  %v2405_v49 = vpack.c.bf16 %v890_v45, %v887_v44  ;;  %v891_v50 = vld [vmem:[%s3386_s25 + $0x118] sm:$0xff]  ;;  %v893_v53 = vld [vmem:[%s3386_s25 + $0x128] sm:$0xff]  ;;  %v896_v54 = vld [vmem:[%s3386_s25 + $0x140] sm:$0xff]  ;;  %v2407_v56 = vpack.c.bf16 %v889_v52, %v886_v51 }
  0x87   : > { %2396 = vmatpush1.bf16.msra.mxu0 %v2395_v29  ;;  %2522 = vmatprep.subr.bf16.mxu1 %v3186_v0  ;;  %v2529_v55 = vpack.c.bf16 %v891_v50, %v888_v48  ;;  %v894_v57 = vld [vmem:[%s3386_s25 + $0x130] sm:$0xff]  ;;  %v2409_v58 = vpack.c.bf16 %v896_v54, %v893_v53  ;;  %v897_v59 = vld [vmem:[%s3386_s25 + $0x148] sm:$0xff]  ;;  %v892_v60 = vld [vmem:[%s3386_s25 + $0x120] sm:$0xff] }
  0x88   : > { %2398 = vmatprep.subr.bf16.mxu0 %v2397_v31  ;;  %v895_v61 = vld [vmem:[%s3386_s25 + $0x138] sm:$0xff]  ;;  %v902_v63 = vld [vmem:[%s3386_s25 + $0x170] sm:$0xff]  ;;  %v2532_v1 = vpack.c.bf16 %v897_v59, %v894_v57  ;;  %v900_v3 = vld [vmem:[%s3386_s25 + $0x160] sm:$0xff] }
  0x89   : > { %v899_v62 = vld [vmem:[%s3386_s25 + $0x158] sm:$0xff]  ;;  %v2411_v2 = vpack.c.bf16 %v895_v61, %v892_v60  ;;  %v898_v6 = vld [vmem:[%s3386_s25 + $0x150] sm:$0xff]  ;;  %v901_v7 = vld [vmem:[%s3386_s25 + $0x168] sm:$0xff] }
  0x8a   : > { %2524 = vmatpush1.bf16.msra.mxu1 %v2523_v37  ;;  %v2413_v4 = vpack.c.bf16 %v902_v63, %v899_v62  ;;  %v903_v5 = vld [vmem:[%s3386_s25 + $0x178] sm:$0xff]  ;;  %v905_v8 = vld [vmem:[%s3386_s25 + $0x188] sm:$0xff]  ;;  %v908_v9 = vld [vmem:[%s3386_s25 + $0x1a0] sm:$0xff]  ;;  %v2415_v11 = vpack.c.bf16 %v901_v7, %v898_v6 }
  0x8b   : > { %2400 = vmatpush1.bf16.msra.mxu0 %v2399_v38  ;;  %2525 = vmatprep.subr.bf16.mxu1 %v3186_v0  ;;  %v2535_v10 = vpack.c.bf16 %v903_v5, %v900_v3  ;;  %v906_v12 = vld [vmem:[%s3386_s25 + $0x190] sm:$0xff]  ;;  %v2417_v13 = vpack.c.bf16 %v908_v9, %v905_v8  ;;  %v909_v14 = vld [vmem:[%s3386_s25 + $0x1a8] sm:$0xff]  ;;  %v904_v15 = vld [vmem:[%s3386_s25 + $0x180] sm:$0xff] }
  0x8c   : > { %2402 = vmatprep.subr.bf16.mxu0 %v2401_v40  ;;  %v907_v16 = vld [vmem:[%s3386_s25 + $0x198] sm:$0xff]  ;;  %v914_v18 = vld [vmem:[%s3386_s25 + $0x1d0] sm:$0xff]  ;;  %v2538_v19 = vpack.c.bf16 %v909_v14, %v906_v12  ;;  %v912_v21 = vld [vmem:[%s3386_s25 + $0x1c0] sm:$0xff] }
  0x8d   : > { %v911_v17 = vld [vmem:[%s3386_s25 + $0x1b8] sm:$0xff]  ;;  %v2419_v20 = vpack.c.bf16 %v907_v16, %v904_v15  ;;  %v257_v22 = vld [vmem:[%s3379_s24 + $0x8] sm:$0xff]  ;;  %v910_v25 = vld [vmem:[%s3386_s25 + $0x1b0] sm:$0xff] }
  0x8e   : > { %2527 = vmatpush1.bf16.msra.mxu1 %v2526_v46  ;;  %v2421_v23 = vpack.c.bf16 %v914_v18, %v911_v17  ;;  %v915_v24 = vld [vmem:[%s3386_s25 + $0x1d8] sm:$0xff]  ;;  %v913_v26 = vld [vmem:[%s3386_s25 + $0x1c8] sm:$0xff]  ;;  %v457_v27 = vmul.f32 0.70710677, %v257_v22  ;;  %v920_v29 = vld [vmem:[%s3386_s25 + $0x200] sm:$0xff] }
  0x8f   : > { %2404 = vmatpush1.bf16.msra.mxu0 %v2403_v47  ;;  %2528 = vmatprep.subr.bf16.mxu1 %v3186_v0  ;;  %v917_v28 = vld [vmem:[%s3386_s25 + $0x1e8] sm:$0xff]  ;;  %v2541_v30 = vpack.c.bf16 %v915_v24, %v912_v21  ;;  %v2423_v31 = vpack.c.bf16 %v913_v26, %v910_v25  ;;  %v918_v32 = vld [vmem:[%s3386_s25 + $0x1f0] sm:$0xff]  ;;  %v916_v35 = vld [vmem:[%s3386_s25 + $0x1e0] sm:$0xff] }
  0x90   : > { %2406 = vmatprep.subr.bf16.mxu0 %v2405_v49  ;;  %2800 = verf.f32 %v457_v27  ;;  %v2425_v33 = vpack.c.bf16 %v920_v29, %v917_v28  ;;  %v921_v34 = vld [vmem:[%s3386_s25 + $0x208] sm:$0xff]  ;;  %v919_v36 = vld [vmem:[%s3386_s25 + $0x1f8] sm:$0xff]  ;;  %v926_v38 = vld [vmem:[%s3386_s25 + $0x230] sm:$0xff] }
  0x91   : > { %v923_v37 = vld [vmem:[%s3386_s25 + $0x218] sm:$0xff]  ;;  %v3476_v39 = vld [vmem:[%s3379_s24] sm:$0xff]  ;;  %v2544_v40 = vpack.c.bf16 %v921_v34, %v918_v32  ;;  %v2427_v41 = vpack.c.bf16 %v919_v36, %v916_v35  ;;  %v922_v45 = vld [vmem:[%s3386_s25 + $0x210] sm:$0xff] }
  0x92   : > { %2530 = vmatpush1.bf16.msra.mxu1 %v2529_v55  ;;  %v924_v42 = vld [vmem:[%s3386_s25 + $0x220] sm:$0xff]  ;;  %v927_v43 = vld [vmem:[%s3386_s25 + $0x238] sm:$0xff]  ;;  %v2429_v44 = vpack.c.bf16 %v926_v38, %v923_v37  ;;  %v925_v46 = vld [vmem:[%s3386_s25 + $0x228] sm:$0xff]  ;;  %v456_v50 = vmul.f32 0.70710677, %v3476_v39  ;;  %v357_v55 = vmul.f32 0.5, %v257_v22 }
  0x93   : > { %2408 = vmatpush1.bf16.msra.mxu0 %v2407_v56  ;;  %2531 = vmatprep.subr.bf16.mxu1 %v3186_v0  ;;  %v3484_v47 = vld [vmem:[%s3379_s24 + $0x28] sm:$0xff]  ;;  %v932_v49 = vld [vmem:[%s3386_s25 + $0x260] sm:$0xff]  ;;  %v2547_v52 = vpack.c.bf16 %v927_v43, %v924_v42  ;;  %v2431_v53 = vpack.c.bf16 %v925_v46, %v922_v45  ;;  %v930_v54 = vld [vmem:[%s3386_s25 + $0x250] sm:$0xff] }
  0x94   : > { %2410 = vmatprep.subr.bf16.mxu0 %v2409_v58  ;;  %v929_v48 = vld [vmem:[%s3386_s25 + $0x248] sm:$0xff]  ;;  %v3490_v51 = vld [vmem:[%s3379_s24 + $0x20] sm:$0xff]  ;;  %v461_v56 = vmul.f32 0.70710677, %v3484_v47  ;;  %v931_v62 = vld [vmem:[%s3386_s25 + $0x258] sm:$0xff]  ;;  %2802 = verf.f32 %v456_v50 }
  0x95   : > { %v3495_v57 = vld [vmem:[%s3379_s24 + $0x48] sm:$0xff]  ;;  %v2433_v59 = vpack.c.bf16 %v932_v49, %v929_v48  ;;  %v928_v61 = vld [vmem:[%s3386_s25 + $0x240] sm:$0xff]  ;;  %v935_v63 = vld [vmem:[%s3386_s25 + $0x278] sm:$0xff]  ;;  %v460_v3 = vmul.f32 0.70710677, %v3490_v51  ;;  %v356_v48 = vmul.f32 0.5, %v3476_v39 }
  0x96   : > { %2533 = vmatpush1.bf16.msra.mxu1 %v2532_v1  ;;  %v933_v60 = vld [vmem:[%s3386_s25 + $0x268] sm:$0xff]  ;;  %v938_v1 = vld [vmem:[%s3386_s25 + $0x290] sm:$0xff]  ;;  %v3506_v5 = vld [vmem:[%s3379_s24 + $0x40] sm:$0xff]  ;;  %v2435_v7 = vpack.c.bf16 %v931_v62, %v928_v61  ;;  %2804 = verf.f32 %v461_v56 }
  0x97   : > { %2412 = vmatpush1.bf16.msra.mxu0 %v2411_v2  ;;  %2534 = vmatprep.subr.bf16.mxu1 %v3186_v0  ;;  %v2550_v6 = vpack.c.bf16 %v933_v60, %v930_v54  ;;  %v936_v8 = vld [vmem:[%s3386_s25 + $0x280] sm:$0xff]  ;;  %v939_v12 = vld [vmem:[%s3386_s25 + $0x298] sm:$0xff]  ;;  %v937_v14 = vld [vmem:[%s3386_s25 + $0x288] sm:$0xff]  ;;  %2806 = verf.f32 %v460_v3  ;;  %v464_v17 = vmul.f32 0.70710677, %v3506_v5 }
  0x98   : > { %2414 = vmatprep.subr.bf16.mxu0 %v2413_v4  ;;  %v465_v4 = vmul.f32 0.70710677, %v3495_v57  ;;  %v941_v15 = vld [vmem:[%s3386_s25 + $0x2a8] sm:$0xff]  ;;  %v944_v16 = vld [vmem:[%s3386_s25 + $0x2c0] sm:$0xff]  ;;  %v942_v22 = vld [vmem:[%s3386_s25 + $0x2b0] sm:$0xff] }
  0x99   : > { %v2441_v24 = vpack.c.bf16 %v944_v16, %v941_v15  ;;  %v945_v25 = vld [vmem:[%s3386_s25 + $0x2c8] sm:$0xff]  ;;  %v940_v26 = vld [vmem:[%s3386_s25 + $0x2a0] sm:$0xff]  ;;  %v943_v27 = vld [vmem:[%s3386_s25 + $0x2b8] sm:$0xff] }
  0x9a   : > { %2536 = vmatpush1.bf16.msra.mxu1 %v2535_v10  ;;  %v2801_v58 = vpop.eup %2800  ;;  %v3510_v10 = vld [vmem:[%s3379_s24 + $0x68] sm:$0xff]  ;;  %2808 = verf.f32 %v465_v4  ;;  %v947_v28 = vld [vmem:[%s3386_s25 + $0x2d8] sm:$0xff]  ;;  %v950_v29 = vld [vmem:[%s3386_s25 + $0x2f0] sm:$0xff]  ;;  %v2556_v34 = vpack.c.bf16 %v945_v25, %v942_v22  ;;  %v2443_v35 = vpack.c.bf16 %v943_v27, %v940_v26 }
  0x9b   : > { %2416 = vmatpush1.bf16.msra.mxu0 %v2415_v11  ;;  %2537 = vmatprep.subr.bf16.mxu1 %v3186_v0  ;;  %v657_v2 = vadd.f32 1.0, %v2801_v58  ;;  %v2437_v11 = vpack.c.bf16 %v938_v1, %v935_v63  ;;  %v469_v18 = vmul.f32 0.70710677, %v3510_v10  ;;  %2810 = verf.f32 %v464_v17  ;;  %v3536_v32 = vld [vmem:[%s3379_s24 + $0x80] sm:$0xff]  ;;  %v3540_v37 = vld [vmem:[%s3379_s24 + $0xa8] sm:$0xff]  ;;  %v955_v60 = vld [vmem:[%s3386_s25 + $0x318] sm:$0xff] }
  0x9c   : > { %2418 = vmatprep.subr.bf16.mxu0 %v2417_v13  ;;  %v934_v13 = vld [vmem:[%s3386_s25 + $0x270] sm:$0xff]  ;;  %v948_v36 = vld [vmem:[%s3386_s25 + $0x2e0] sm:$0xff]  ;;  %v2445_v38 = vpack.c.bf16 %v950_v29, %v947_v28  ;;  %v949_v42 = vld [vmem:[%s3386_s25 + $0x2e8] sm:$0xff]  ;;  %v472_v46 = vmul.f32 0.70710677, %v3536_v32  ;;  %v361_v63 = vmul.f32 0.5, %v3484_v47 }
  0x9d   : > { %v757_v9 = vmul.f32 %v657_v2, %v357_v55  ;;  %v2439_v21 = vpack.c.bf16 %v937_v14, %v934_v13  ;;  %2812 = verf.f32 %v469_v18  ;;  %v956_v45 = vld [vmem:[%s3386_s25 + $0x320] sm:$0xff]  ;;  %v477_v50 = vmul.f32 0.70710677, %v3540_v37  ;;  %v3556_v58 = vld [vmem:[%s3379_s24 + $0xc8] sm:$0xff]  ;;  %v954_v61 = vld [vmem:[%s3386_s25 + $0x310] sm:$0xff] }
  0x9e   : > { %2539 = vmatpush1.bf16.msra.mxu1 %v2538_v19  ;;  %v3521_v19 = vld [vmem:[%s3379_s24 + $0x60] sm:$0xff]  ;;  %v957_v62 = vld [vmem:[%s3386_s25 + $0x328] sm:$0xff]  ;;  %v360_v2 = vmul.f32 0.5, %v3490_v51  ;;  %v365_v13 = vmul.f32 0.5, %v3495_v57  ;;  %v958_v18 = vld [vmem:[%s3386_s25 + $0x330] sm:$0xff] }
  0x9f   : > { %2420 = vmatpush1.bf16.msra.mxu0 %v2419_v20  ;;  %2540 = vmatprep.subr.bf16.mxu1 %v3186_v0  ;;  %v2553_v20 = vpack.c.bf16 %v939_v12, %v936_v8  ;;  %v952_v56 = vld [vmem:[%s3386_s25 + $0x300] sm:$0xff]  ;;  %v962_v8 = vld [vmem:[%s3386_s25 + $0x350] sm:$0xff]  ;;  %v2562_v51 = vpack.c.bf16 %v957_v62, %v954_v61  ;;  %v3573_v15 = vld [vmem:[%s3379_s24 + $0xe8] sm:$0xff] }
  0xa0   : > { %2422 = vmatprep.subr.bf16.mxu0 %v2421_v23  ;;  %1542 = vmatprep.mubr.f32.mxu1 %v757_v9  ;;  %v3525_v23 = vld [vmem:[%s3379_s24 + $0x88] sm:$0xff]  ;;  %v2451_v47 = vpack.c.bf16 %v955_v60, %v952_v56  ;;  %v963_v25 = vld [vmem:[%s3386_s25 + $0x358] sm:$0xff]  ;;  %v968_v29 = vld [vmem:[%s3386_s25 + $0x380] sm:$0xff] }
  0xa1   : > { %1112 = vmatprep.mubr.f32.mxu0 %v757_v9  ;;  %v481_v9 = vmul.f32 0.70710677, %v3556_v58  ;;  %v961_v22 = vld [vmem:[%s3386_s25 + $0x348] sm:$0xff]  ;;  %v3603_v56 = vld [vmem:[%s3379_s24 + $0x100] sm:$0xff] }
  0xa2   : > { %2542 = vmatpush1.bf16.msra.mxu1 %v2541_v30  ;;  %v468_v30 = vmul.f32 0.70710677, %v3521_v19  ;;  %v965_v28 = vld [vmem:[%s3386_s25 + $0x368] sm:$0xff] }
  0xa3   : > { %2424 = vmatpush1.bf16.msra.mxu0 %v2423_v31  ;;  %2543 = vmatprep.subr.bf16.mxu1 %v3186_v0  ;;  %v473_v31 = vmul.f32 0.70710677, %v3525_v23  ;;  %v3607_v61 = vld [vmem:[%s3379_s24 + $0x128] sm:$0xff] }
  0xa4   : > { %2426 = vmatprep.subr.bf16.mxu0 %v2425_v33  ;;  %v2803_v33 = vpop.eup %2802  ;;  %2814 = verf.f32 %v468_v30  ;;  %v485_v30 = vmul.f32 0.70710677, %v3573_v15 }
  0xa5   : > { %v2805_v43 = vpop.eup %2804  ;;  %v656_v49 = vadd.f32 1.0, %v2803_v33  ;;  %2816 = verf.f32 %v473_v31  ;;  %v3586_v31 = vld [vmem:[%s3379_s24 + $0xe0] sm:$0xff] }
  0xa6   : > { %2545 = vmatpush1.bf16.msra.mxu1 %v2544_v40  ;;  %v951_v40 = vld [vmem:[%s3386_s25 + $0x2f8] sm:$0xff]  ;;  %v661_v1 = vadd.f32 1.0, %v2805_v43  ;;  %2818 = verf.f32 %v472_v46  ;;  %v368_v43 = vmul.f32 0.5, %v3521_v19  ;;  %v969_v46 = vld [vmem:[%s3386_s25 + $0x388] sm:$0xff] }
  0xa7   : > { %2428 = vmatpush1.bf16.msra.mxu0 %v2427_v41  ;;  %2546 = vmatprep.subr.bf16.mxu1 %v3186_v0  ;;  %v946_v41 = vld [vmem:[%s3386_s25 + $0x2d0] sm:$0xff]  ;;  %v2559_v54 = vpack.c.bf16 %v951_v40, %v948_v36  ;;  %v756_v4 = vmul.f32 %v656_v49, %v356_v48  ;;  %2820 = verf.f32 %v477_v50  ;;  %v3590_v36 = vld [vmem:[%s3379_s24 + $0x108] sm:$0xff]  ;;  %v2455_v40 = vpack.c.bf16 %v961_v22, %v958_v18 }
  0xa8   : > { %2430 = vmatprep.subr.bf16.mxu0 %v2429_v44  ;;  %v953_v44 = vld [vmem:[%s3386_s25 + $0x308] sm:$0xff]  ;;  %v2447_v55 = vpack.c.bf16 %v949_v42, %v946_v41  ;;  %v761_v17 = vmul.f32 %v661_v1, %v361_v63  ;;  %v964_v42 = vld [vmem:[%s3386_s25 + $0x360] sm:$0xff]  ;;  %v484_v48 = vmul.f32 0.70710677, %v3586_v31 }
  0xaa   : > { %2548 = vmatpush1.bf16.msra.mxu1 %v2547_v52  ;;  %v3552_v52 = vld [vmem:[%s3379_s24 + $0xa0] sm:$0xff] }
  0xab   : > { %2432 = vmatpush1.bf16.msra.mxu0 %v2431_v53  ;;  %2549 = vmatprep.subr.bf16.mxu1 %v3186_v0  ;;  %v2807_v53 = vpop.eup %2806  ;;  %v476_v3 = vmul.f32 0.70710677, %v3552_v52 }
  0xac   : > { %2434 = vmatprep.subr.bf16.mxu0 %v2433_v59  ;;  %v2809_v39 = vpop.eup %2808  ;;  %v2449_v59 = vpack.c.bf16 %v956_v45, %v953_v44  ;;  %v2457_v44 = vpack.c.bf16 %v968_v29, %v965_v28  ;;  %v967_v45 = vld [vmem:[%s3386_s25 + $0x378] sm:$0xff]  ;;  %v981_v28 = vld [vmem:[%s3386_s25 + $0x3e8] sm:$0xff] }
  0xad   : > { %v2811_v12 = vpop.eup %2810  ;;  %v665_v14 = vadd.f32 1.0, %v2809_v39  ;;  %2822 = verf.f32 %v476_v3  ;;  %v2459_v63 = vpack.c.bf16 %v967_v45, %v964_v42  ;;  %v372_v3 = vmul.f32 0.5, %v3536_v32 }
  0xae   : > { %2551 = vmatpush1.bf16.msra.mxu1 %v2550_v6  ;;  %v660_v6 = vadd.f32 1.0, %v2807_v53  ;;  %v2813_v16 = vpop.eup %2812  ;;  %v664_v27 = vadd.f32 1.0, %v2811_v12  ;;  %2824 = verf.f32 %v481_v9  ;;  %v971_v53 = vld [vmem:[%s3386_s25 + $0x398] sm:$0xff] }
  0xaf   : > { %2436 = vmatpush1.bf16.msra.mxu0 %v2435_v7  ;;  %2552 = vmatprep.subr.bf16.mxu1 %v3186_v0  ;;  %v959_v7 = vld [vmem:[%s3386_s25 + $0x338] sm:$0xff]  ;;  %v765_v33 = vmul.f32 %v665_v14, %v365_v13  ;;  %v493_v13 = vmul.f32 0.70710677, %v3607_v61  ;;  %v3620_v14 = vld [vmem:[%s3379_s24 + $0x120] sm:$0xff] }
  0xb0   : > { %2438 = vmatprep.subr.bf16.mxu0 %v2437_v11  ;;  %v3569_v11 = vld [vmem:[%s3379_s24 + $0xc0] sm:$0xff]  ;;  %v760_v26 = vmul.f32 %v660_v6, %v360_v2  ;;  %v970_v2 = vld [vmem:[%s3386_s25 + $0x390] sm:$0xff]  ;;  %v973_v6 = vld [vmem:[%s3386_s25 + $0x3a8] sm:$0xff]  ;;  %v492_v29 = vmul.f32 0.70710677, %v3620_v14 }
  0xb1   : > { %v480_v57 = vmul.f32 0.70710677, %v3569_v11  ;;  %v2463_v22 = vpack.c.bf16 %v973_v6, %v970_v2 }
  0xb2   : > { %2554 = vmatpush1.bf16.msra.mxu1 %v2553_v20  ;;  %v2453_v20 = vpack.c.bf16 %v962_v8, %v959_v7  ;;  %v975_v7 = vld [vmem:[%s3386_s25 + $0x3b8] sm:$0xff]  ;;  %v488_v8 = vmul.f32 0.70710677, %v3603_v56 }
  0xb3   : > { %2440 = vmatpush1.bf16.msra.mxu0 %v2439_v21  ;;  %2555 = vmatprep.subr.bf16.mxu1 %v3186_v0  ;;  %v364_v21 = vmul.f32 0.5, %v3506_v5  ;;  %v2815_v5 = vpop.eup %2814  ;;  %2826 = verf.f32 %v480_v57  ;;  %v376_v57 = vmul.f32 0.5, %v3552_v52 }
  0xb4   : > { %2442 = vmatprep.subr.bf16.mxu0 %v2441_v24  ;;  %v960_v24 = vld [vmem:[%s3386_s25 + $0x340] sm:$0xff]  ;;  %v668_v50 = vadd.f32 1.0, %v2815_v5  ;;  %2828 = verf.f32 %v485_v30 }
  0xb5   : > { %v2565_v41 = vpack.c.bf16 %v963_v25, %v960_v24  ;;  %v764_v49 = vmul.f32 %v664_v27, %v364_v21  ;;  %2830 = verf.f32 %v484_v48  ;;  %v976_v25 = vld [vmem:[%s3386_s25 + $0x3c0] sm:$0xff]  ;;  %v979_v27 = vld [vmem:[%s3386_s25 + $0x3d8] sm:$0xff]  ;;  %v380_v48 = vmul.f32 0.5, %v3569_v11 }
  0xb6   : > { %2557 = vmatpush1.bf16.msra.mxu1 %v2556_v34  ;;  %v369_v34 = vmul.f32 0.5, %v3510_v10  ;;  %v966_v10 = vld [vmem:[%s3386_s25 + $0x370] sm:$0xff]  ;;  %v768_v9 = vmul.f32 %v668_v50, %v368_v43  ;;  %v3641_v43 = vld [vmem:[%s3379_s24 + $0x168] sm:$0xff]  ;;  %v2467_v45 = vpack.c.bf16 %v979_v27, %v976_v25 }
  0xb7   : > { %2444 = vmatpush1.bf16.msra.mxu0 %v2443_v35  ;;  %2558 = vmatprep.subr.bf16.mxu1 %v3186_v0  ;;  %v669_v35 = vadd.f32 1.0, %v2813_v16  ;;  %v2568_v1 = vpack.c.bf16 %v969_v46, %v966_v10  ;;  %v982_v46 = vld [vmem:[%s3386_s25 + $0x3f0] sm:$0xff]  ;;  %v985_v50 = vld [vmem:[%s3386_s25 + $0x408] sm:$0xff]  ;;  %v501_v11 = vmul.f32 0.70710677, %v3641_v43 }
  0xb8   : > { %2446 = vmatprep.subr.bf16.mxu0 %v2445_v38  ;;  %v2817_v38 = vpop.eup %2816  ;;  %v2471_v6 = vpack.c.bf16 %v985_v50, %v982_v46 }
  0xb9   : > { %v2819_v19 = vpop.eup %2818  ;;  %v769_v39 = vmul.f32 %v669_v35, %v369_v34  ;;  %v673_v60 = vadd.f32 1.0, %v2817_v38  ;;  %v986_v34 = vld [vmem:[%s3386_s25 + $0x410] sm:$0xff]  ;;  %v3637_v35 = vld [vmem:[%s3379_s24 + $0x140] sm:$0xff] }
  0xba   : > { %2560 = vmatpush1.bf16.msra.mxu1 %v2559_v54  ;;  %v974_v54 = vld [vmem:[%s3386_s25 + $0x3b0] sm:$0xff]  ;;  %v2821_v62 = vpop.eup %2820  ;;  %v672_v12 = vadd.f32 1.0, %v2819_v19 }
  0xbb   : > { %2448 = vmatpush1.bf16.msra.mxu0 %v2447_v55  ;;  %2561 = vmatprep.subr.bf16.mxu1 %v3186_v0  ;;  %v489_v55 = vmul.f32 0.70710677, %v3590_v36  ;;  %v2823_v32 = vpop.eup %2822  ;;  %v677_v18 = vadd.f32 1.0, %v2821_v62 }
  0xbc   : > { %2450 = vmatprep.subr.bf16.mxu0 %v2449_v59  ;;  %v373_v59 = vmul.f32 0.5, %v3525_v23  ;;  %v972_v23 = vld [vmem:[%s3386_s25 + $0x3a0] sm:$0xff]  ;;  %v2825_v21 = vpop.eup %2824  ;;  %v772_v30 = vmul.f32 %v672_v12, %v372_v3  ;;  %v676_v5 = vadd.f32 1.0, %v2823_v32  ;;  %v3658_v3 = vld [vmem:[%s3379_s24 + $0x188] sm:$0xff]  ;;  %v990_v12 = vld [vmem:[%s3386_s25 + $0x430] sm:$0xff] }
  0xbd   : > { %1543 = vmatmul.mubr.f32.vlgmr.msra.gmra.mrb[0].mxu1 %v756_v4  ;;  %2832 = verf.f32 %v489_v55  ;;  %v2571_v24 = vpack.c.bf16 %v975_v7, %v972_v23  ;;  %v2827_v38 = vpop.eup %2826  ;;  %v681_v42 = vadd.f32 1.0, %v2825_v21  ;;  %v988_v7 = vld [vmem:[%s3386_s25 + $0x420] sm:$0xff] }
  0xbe   : > { %1113 = vmatmul.mubr.f32.vlgmr.msra.gmra.mrb[0].mxu0 %v756_v4  ;;  %2563 = vmatpush1.bf16.msra.mxu1 %v2562_v51  ;;  %v2461_v4 = vpack.c.bf16 %v974_v54, %v971_v53  ;;  %v980_v51 = vld [vmem:[%s3386_s25 + $0x3e0] sm:$0xff]  ;;  %v773_v16 = vmul.f32 %v673_v60, %v373_v59  ;;  %2834 = verf.f32 %v488_v8  ;;  %v987_v53 = vld [vmem:[%s3386_s25 + $0x418] sm:$0xff]  ;;  %v496_v54 = vmul.f32 0.70710677, %v3637_v35 }
  0xbf   : > { %2452 = vmatpush1.bf16.msra.mxu0 %v2451_v47  ;;  %1547 = vmatprep.mubr.f32.mxu1 %v761_v17  ;;  %v977_v47 = vld [vmem:[%s3386_s25 + $0x3c8] sm:$0xff]  ;;  %2836 = verf.f32 %v493_v13  ;;  %v776_v55 = vmul.f32 %v676_v5, %v376_v57  ;;  %v680_v19 = vadd.f32 1.0, %v2827_v38  ;;  %v992_v59 = vld [vmem:[%s3386_s25 + $0x440] sm:$0xff]  ;;  %v384_v8 = vmul.f32 0.5, %v3586_v31  ;;  %v998_v31 = vld [vmem:[%s3386_s25 + $0x470] sm:$0xff] }
  0xc0   : > { %1118 = vmatprep.mubr.f32.mxu0 %v761_v17  ;;  %2454 = vmatprep.subr.bf16.mxu0 %v2453_v20  ;;  %v377_v17 = vmul.f32 0.5, %v3540_v37  ;;  %v3624_v20 = vld [vmem:[%s3379_s24 + $0x148] sm:$0xff]  ;;  %v978_v37 = vld [vmem:[%s3386_s25 + $0x3d0] sm:$0xff]  ;;  %2838 = verf.f32 %v492_v29  ;;  %v3654_v60 = vld [vmem:[%s3379_s24 + $0x160] sm:$0xff]  ;;  %v388_v29 = vmul.f32 0.5, %v3603_v56 }
  0xc1   : > { %2564 = vmatprep.subr.bf16.mxu1 %v3186_v0  ;;  %1548 = vmatmul.mubr.f32.gmra.mrb[2].mxu1 %v760_v26  ;;  %v497_v52 = vmul.f32 0.70710677, %v3624_v20  ;;  %v2574_v10 = vpack.c.bf16 %v981_v28, %v978_v37  ;;  %v780_v13 = vmul.f32 %v680_v19, %v380_v48  ;;  %v3675_v57 = vld [vmem:[%s3379_s24 + $0x1a8] sm:$0xff]  ;;  %v994_v28 = vld [vmem:[%s3386_s25 + $0x450] sm:$0xff]  ;;  %v996_v5 = vld [vmem:[%s3386_s25 + $0x460] sm:$0xff] }
  0xc2   : > { %1119 = vmatmul.mubr.f32.gmra.mrb[2].mxu0 %v760_v26  ;;  %1552 = vmatprep.mubr.f32.mxu1 %v765_v33  ;;  %v2465_v26 = vpack.c.bf16 %v980_v51, %v977_v47  ;;  %v993_v47 = vld [vmem:[%s3386_s25 + $0x448] sm:$0xff]  ;;  %v500_v51 = vmul.f32 0.70710677, %v3654_v60  ;;  %v1004_v56 = vld [vmem:[%s3386_s25 + $0x4a0] sm:$0xff] }
  0xc3   : > { %1124 = vmatprep.mubr.f32.mxu0 %v765_v33  ;;  %2456 = vmatpush1.bf16.msra.mxu0 %v2455_v40  ;;  %v983_v33 = vld [vmem:[%s3386_s25 + $0x3f8] sm:$0xff]  ;;  %v777_v40 = vmul.f32 %v677_v18, %v377_v17  ;;  %2840 = verf.f32 %v497_v52  ;;  %v505_v17 = vmul.f32 0.70710677, %v3658_v3  ;;  %v3671_v18 = vld [vmem:[%s3379_s24 + $0x180] sm:$0xff]  ;;  %v2580_v37 = vpack.c.bf16 %v993_v47, %v990_v12  ;;  %v3692_v48 = vld [vmem:[%s3379_s24 + $0x1c8] sm:$0xff] }
  0xc4   : > { %2566 = vmatpush1.bf16.msra.mxu1 %v2565_v41  ;;  %2458 = vmatprep.subr.bf16.mxu0 %v2457_v44  ;;  %v381_v41 = vmul.f32 0.5, %v3556_v58  ;;  %v2829_v44 = vpop.eup %2828  ;;  %v984_v58 = vld [vmem:[%s3386_s25 + $0x400] sm:$0xff]  ;;  %2842 = verf.f32 %v496_v54  ;;  %v392_v54 = vmul.f32 0.5, %v3620_v14  ;;  %v513_v14 = vmul.f32 0.70710677, %v3692_v48  ;;  %v1006_v47 = vld [vmem:[%s3386_s25 + $0x4b0] sm:$0xff] }
  0xc5   : > { %2567 = vmatprep.subr.bf16.mxu1 %v3186_v0  ;;  %1553 = vmatmul.mubr.f32.gmra.mrb[4].mxu1 %v764_v49  ;;  %v2831_v62 = vpop.eup %2830  ;;  %v685_v2 = vadd.f32 1.0, %v2829_v44  ;;  %v2577_v23 = vpack.c.bf16 %v987_v53, %v984_v58  ;;  %2844 = verf.f32 %v501_v11  ;;  %v1000_v53 = vld [vmem:[%s3386_s25 + $0x480] sm:$0xff] }
  0xc6   : > { %1125 = vmatmul.mubr.f32.gmra.mrb[4].mxu0 %v764_v49  ;;  %1557 = vmatprep.mubr.f32.mxu1 %v769_v39  ;;  %v2469_v49 = vpack.c.bf16 %v986_v34, %v983_v33  ;;  %v684_v32 = vadd.f32 1.0, %v2831_v62  ;;  %2846 = verf.f32 %v500_v51  ;;  %v999_v33 = vld [vmem:[%s3386_s25 + $0x478] sm:$0xff]  ;;  %v504_v34 = vmul.f32 0.70710677, %v3671_v18 }
  0xc7   : > { %1130 = vmatprep.mubr.f32.mxu0 %v769_v39  ;;  %2460 = vmatpush1.bf16.msra.mxu0 %v2459_v63  ;;  %v989_v39 = vld [vmem:[%s3386_s25 + $0x428] sm:$0xff]  ;;  %v781_v63 = vmul.f32 %v681_v42, %v381_v41  ;;  %2848 = verf.f32 %v505_v17  ;;  %v509_v41 = vmul.f32 0.70710677, %v3675_v57  ;;  %v3688_v42 = vld [vmem:[%s3379_s24 + $0x1a0] sm:$0xff]  ;;  %v2583_v58 = vpack.c.bf16 %v999_v33, %v996_v5 }
  0xc8   : > { %2569 = vmatpush1.bf16.msra.mxu1 %v2568_v1  ;;  %2462 = vmatprep.subr.bf16.mxu0 %v2461_v4  ;;  %v385_v1 = vmul.f32 0.5, %v3573_v15  ;;  %v2833_v4 = vpop.eup %2832  ;;  %v991_v15 = vld [vmem:[%s3386_s25 + $0x438] sm:$0xff]  ;;  %v784_v52 = vmul.f32 %v684_v32, %v384_v8  ;;  %2850 = verf.f32 %v504_v34  ;;  %v508_v19 = vmul.f32 0.70710677, %v3688_v42  ;;  %v3709_v8 = vld [vmem:[%s3379_s24 + $0x1e8] sm:$0xff]  ;;  %v1012_v33 = vld [vmem:[%s3386_s25 + $0x4e0] sm:$0xff] }
  0xc9   : > { %2570 = vmatprep.subr.bf16.mxu1 %v3186_v0  ;;  %1558 = vmatmul.mubr.f32.gmra.mrb[6].mxu1 %v768_v9  ;;  %v2835_v21 = vpop.eup %2834  ;;  %v689_v25 = vadd.f32 1.0, %v2833_v4  ;;  %v2475_v27 = vpack.c.bf16 %v991_v15, %v988_v7  ;;  %2852 = verf.f32 %v509_v41  ;;  %v396_v51 = vmul.f32 0.5, %v3637_v35  ;;  %v1009_v32 = vld [vmem:[%s3386_s25 + $0x4c8] sm:$0xff] }
  0xca   : > { %1131 = vmatmul.mubr.f32.gmra.mrb[6].mxu0 %v768_v9  ;;  %1562 = vmatprep.mubr.f32.mxu1 %v773_v16  ;;  %v2473_v9 = vpack.c.bf16 %v992_v59, %v989_v39  ;;  %v688_v38 = vadd.f32 1.0, %v2835_v21  ;;  %v1002_v39 = vld [vmem:[%s3386_s25 + $0x490] sm:$0xff]  ;;  %v1005_v59 = vld [vmem:[%s3386_s25 + $0x4a8] sm:$0xff]  ;;  %2854 = verf.f32 %v508_v19  ;;  %v517_v35 = vmul.f32 0.70710677, %v3709_v8 }
  0xcb   : > { %1136 = vmatprep.mubr.f32.mxu0 %v773_v16  ;;  %2464 = vmatpush1.bf16.msra.mxu0 %v2463_v22  ;;  %v995_v16 = vld [vmem:[%s3386_s25 + $0x458] sm:$0xff]  ;;  %v785_v22 = vmul.f32 %v685_v2, %v385_v1  ;;  %v1010_v2 = vld [vmem:[%s3386_s25 + $0x4d0] sm:$0xff]  ;;  %v2586_v12 = vpack.c.bf16 %v1005_v59, %v1002_v39  ;;  %2856 = verf.f32 %v513_v14  ;;  %v400_v34 = vmul.f32 0.5, %v3654_v60  ;;  %v1020_v14 = vld [vmem:[%s3386_s25 + $0x520] sm:$0xff] }
  0xcc   : > { %2572 = vmatpush1.bf16.msra.mxu1 %v2571_v24  ;;  %2466 = vmatprep.subr.bf16.mxu0 %v2465_v26  ;;  %v389_v24 = vmul.f32 0.5, %v3590_v36  ;;  %v2837_v26 = vpop.eup %2836  ;;  %v2477_v36 = vpack.c.bf16 %v998_v31, %v995_v16  ;;  %v788_v11 = vmul.f32 %v688_v38, %v388_v29  ;;  %v1007_v1 = vld [vmem:[%s3386_s25 + $0x4b8] sm:$0xff]  ;;  %v1008_v16 = vld [vmem:[%s3386_s25 + $0x4c0] sm:$0xff]  ;;  %v3726_v29 = vld [vmem:[%s3379_s24 + $0x208] sm:$0xff]  ;;  %v404_v59 = vmul.f32 0.5, %v3671_v18 }
  0xcd   : > { %2573 = vmatprep.subr.bf16.mxu1 %v3186_v0  ;;  %1563 = vmatmul.mubr.f32.gmra.mrb[8].mxu1 %v772_v30  ;;  %v2839_v44 = vpop.eup %2838  ;;  %v693_v46 = vadd.f32 1.0, %v2837_v26  ;;  %v1011_v31 = vld [vmem:[%s3386_s25 + $0x4d8] sm:$0xff]  ;;  %v521_v60 = vmul.f32 0.70710677, %v3726_v29  ;;  %v1018_v39 = vld [vmem:[%s3386_s25 + $0x510] sm:$0xff] }
  0xce   : > { %1137 = vmatmul.mubr.f32.gmra.mrb[8].mxu0 %v772_v30  ;;  %1567 = vmatprep.mubr.f32.mxu1 %v777_v40  ;;  %v997_v30 = vld [vmem:[%s3386_s25 + $0x468] sm:$0xff]  ;;  %v692_v62 = vadd.f32 1.0, %v2839_v44  ;;  %v2589_v5 = vpack.c.bf16 %v1011_v31, %v1008_v16  ;;  %v1015_v38 = vld [vmem:[%s3386_s25 + $0x4f8] sm:$0xff]  ;;  %v1024_v16 = vld [vmem:[%s3386_s25 + $0x540] sm:$0xff]  ;;  %v408_v31 = vmul.f32 0.5, %v3688_v42 }
  0xcf   : > { %1142 = vmatprep.mubr.f32.mxu0 %v777_v40  ;;  %2468 = vmatpush1.bf16.msra.mxu0 %v2467_v45  ;;  %v1001_v40 = vld [vmem:[%s3386_s25 + $0x488] sm:$0xff]  ;;  %v789_v45 = vmul.f32 %v689_v25, %v389_v24  ;;  %v2479_v50 = vpack.c.bf16 %v997_v30, %v994_v28  ;;  %v1016_v25 = vld [vmem:[%s3386_s25 + $0x500] sm:$0xff]  ;;  %v2487_v30 = vpack.c.bf16 %v1009_v32, %v1006_v47 }
  0xd0   : > { %2575 = vmatpush1.bf16.msra.mxu1 %v2574_v10  ;;  %2470 = vmatprep.subr.bf16.mxu0 %v2469_v49  ;;  %v393_v10 = vmul.f32 0.5, %v3607_v61  ;;  %v2841_v49 = vpop.eup %2840  ;;  %v2481_v61 = vpack.c.bf16 %v1004_v56, %v1001_v40  ;;  %v792_v17 = vmul.f32 %v692_v62, %v392_v54  ;;  %v1013_v24 = vld [vmem:[%s3386_s25 + $0x4e8] sm:$0xff]  ;;  %v1014_v40 = vld [vmem:[%s3386_s25 + $0x4f0] sm:$0xff] }
  0xd1   : > { %2576 = vmatprep.subr.bf16.mxu1 %v3186_v0  ;;  %1568 = vmatmul.mubr.f32.gmra.mrb[10].mxu1 %v776_v55  ;;  %v2843_v4 = vpop.eup %2842  ;;  %v697_v7 = vadd.f32 1.0, %v2841_v49  ;;  %v1017_v56 = vld [vmem:[%s3386_s25 + $0x508] sm:$0xff] }
  0xd2   : > { %1143 = vmatmul.mubr.f32.gmra.mrb[10].mxu0 %v776_v55  ;;  %1572 = vmatprep.mubr.f32.mxu1 %v781_v63  ;;  %v1003_v55 = vld [vmem:[%s3386_s25 + $0x498] sm:$0xff]  ;;  %v696_v21 = vadd.f32 1.0, %v2843_v4  ;;  %v3743_v54 = vld [vmem:[%s3379_s24 + $0x228] sm:$0xff]  ;;  %v2592_v19 = vpack.c.bf16 %v1017_v56, %v1014_v40  ;;  %v1030_v40 = vld [vmem:[%s3386_s25 + $0x570] sm:$0xff] }
  0xd3   : > { %1148 = vmatprep.mubr.f32.mxu0 %v781_v63  ;;  %2472 = vmatpush1.bf16.msra.mxu0 %v2471_v6  ;;  %v3703_v63 = vld [vmem:[%s3379_s24 + $0x1c0] sm:$0xff]  ;;  %v793_v6 = vmul.f32 %v693_v46, %v393_v10  ;;  %v2483_v15 = vpack.c.bf16 %v1003_v55, %v1000_v53  ;;  %v1019_v10 = vld [vmem:[%s3386_s25 + $0x518] sm:$0xff]  ;;  %v1022_v46 = vld [vmem:[%s3386_s25 + $0x530] sm:$0xff]  ;;  %v2491_v55 = vpack.c.bf16 %v1015_v38, %v1012_v33  ;;  %v525_v18 = vmul.f32 0.70710677, %v3743_v54 }
  0xd4   : > { %2578 = vmatpush1.bf16.msra.mxu1 %v2577_v23  ;;  %2474 = vmatprep.subr.bf16.mxu0 %v2473_v9  ;;  %v397_v23 = vmul.f32 0.5, %v3624_v20  ;;  %v2845_v9 = vpop.eup %2844  ;;  %v512_v20 = vmul.f32 0.70710677, %v3703_v63  ;;  %v796_v41 = vmul.f32 %v696_v21, %v396_v51  ;;  %v1021_v62 = vld [vmem:[%s3386_s25 + $0x528] sm:$0xff]  ;;  %v1027_v21 = vld [vmem:[%s3386_s25 + $0x558] sm:$0xff]  ;;  %v412_v56 = vmul.f32 0.5, %v3703_v63 }
  0xd5   : > { %2579 = vmatprep.subr.bf16.mxu1 %v3186_v0  ;;  %1573 = vmatmul.mubr.f32.gmra.mrb[12].mxu1 %v780_v13  ;;  %v2847_v26 = vpop.eup %2846  ;;  %v701_v28 = vadd.f32 1.0, %v2845_v9  ;;  %v3760_v51 = vld [vmem:[%s3379_s24 + $0x248] sm:$0xff] }
  0xd6   : > { %1149 = vmatmul.mubr.f32.gmra.mrb[12].mxu0 %v780_v13  ;;  %1577 = vmatprep.mubr.f32.mxu1 %v785_v22  ;;  %v2485_v13 = vpack.c.bf16 %v1010_v2, %v1007_v1  ;;  %2858 = verf.f32 %v512_v20  ;;  %v700_v44 = vadd.f32 1.0, %v2847_v26  ;;  %v1023_v1 = vld [vmem:[%s3386_s25 + $0x538] sm:$0xff]  ;;  %v529_v42 = vmul.f32 0.70710677, %v3760_v51 }
  0xd7   : > { %1154 = vmatprep.mubr.f32.mxu0 %v785_v22  ;;  %2476 = vmatpush1.bf16.msra.mxu0 %v2475_v27  ;;  %v3720_v22 = vld [vmem:[%s3379_s24 + $0x1e0] sm:$0xff]  ;;  %v797_v27 = vmul.f32 %v697_v7, %v397_v23  ;;  %2860 = verf.f32 %v517_v35  ;;  %v1025_v23 = vld [vmem:[%s3386_s25 + $0x548] sm:$0xff]  ;;  %v2595_v32 = vpack.c.bf16 %v1023_v1, %v1020_v14  ;;  %v1026_v35 = vld [vmem:[%s3386_s25 + $0x550] sm:$0xff] }
  0xd8   : > { %2581 = vmatpush1.bf16.msra.mxu1 %v2580_v37  ;;  %2478 = vmatprep.subr.bf16.mxu0 %v2477_v36  ;;  %v401_v37 = vmul.f32 0.5, %v3641_v43  ;;  %v2849_v36 = vpop.eup %2848  ;;  %v516_v43 = vmul.f32 0.70710677, %v3720_v22  ;;  %v800_v2 = vmul.f32 %v700_v44, %v400_v34  ;;  %v1028_v7 = vld [vmem:[%s3386_s25 + $0x560] sm:$0xff]  ;;  %v3777_v34 = vld [vmem:[%s3379_s24 + $0x268] sm:$0xff]  ;;  %v416_v1 = vmul.f32 0.5, %v3720_v22 }
  0xd9   : > { %2582 = vmatprep.subr.bf16.mxu1 %v3186_v0  ;;  %1578 = vmatmul.mubr.f32.gmra.mrb[14].mxu1 %v784_v52  ;;  %v2851_v49 = vpop.eup %2850  ;;  %v705_v53 = vadd.f32 1.0, %v2849_v36  ;;  %v1033_v44 = vld [vmem:[%s3386_s25 + $0x588] sm:$0xff]  ;;  %v533_v63 = vmul.f32 0.70710677, %v3777_v34  ;;  %v1036_v14 = vld [vmem:[%s3386_s25 + $0x5a0] sm:$0xff] }
  0xda   : > { %1155 = vmatmul.mubr.f32.gmra.mrb[14].mxu0 %v784_v52  ;;  %1582 = vmatprep.mubr.f32.mxu1 %v789_v45  ;;  %v2489_v52 = vpack.c.bf16 %v1016_v25, %v1013_v24  ;;  %2862 = verf.f32 %v516_v43  ;;  %v704_v4 = vadd.f32 1.0, %v2851_v49  ;;  %v1029_v24 = vld [vmem:[%s3386_s25 + $0x568] sm:$0xff] }
  0xdb   : > { %1160 = vmatprep.mubr.f32.mxu0 %v789_v45  ;;  %2480 = vmatpush1.bf16.msra.mxu0 %v2479_v50  ;;  %v3737_v45 = vld [vmem:[%s3379_s24 + $0x200] sm:$0xff]  ;;  %v801_v50 = vmul.f32 %v701_v28, %v401_v37  ;;  %2864 = verf.f32 %v521_v60  ;;  %v1031_v37 = vld [vmem:[%s3386_s25 + $0x578] sm:$0xff]  ;;  %v1034_v28 = vld [vmem:[%s3386_s25 + $0x590] sm:$0xff]  ;;  %v2598_v38 = vpack.c.bf16 %v1029_v24, %v1026_v35 }
  0xdc   : > { %2584 = vmatpush1.bf16.msra.mxu1 %v2583_v58  ;;  %2482 = vmatprep.subr.bf16.mxu0 %v2481_v61  ;;  %v405_v58 = vmul.f32 0.5, %v3658_v3  ;;  %v2853_v61 = vpop.eup %2852  ;;  %v520_v3 = vmul.f32 0.70710677, %v3737_v45  ;;  %v804_v25 = vmul.f32 %v704_v4, %v404_v59  ;;  %v1032_v60 = vld [vmem:[%s3386_s25 + $0x580] sm:$0xff]  ;;  %v3794_v59 = vld [vmem:[%s3379_s24 + $0x288] sm:$0xff]  ;;  %v1039_v4 = vld [vmem:[%s3386_s25 + $0x5b8] sm:$0xff] }
  0xdd   : > { %2585 = vmatprep.subr.bf16.mxu1 %v3186_v0  ;;  %1583 = vmatmul.mubr.f32.gmra.mrb[16].mxu1 %v788_v11  ;;  %v2855_v9 = vpop.eup %2854  ;;  %v709_v47 = vadd.f32 1.0, %v2853_v61  ;;  %v537_v22 = vmul.f32 0.70710677, %v3794_v59  ;;  %v1042_v35 = vld [vmem:[%s3386_s25 + $0x5d0] sm:$0xff]  ;;  %v420_v24 = vmul.f32 0.5, %v3737_v45 }
  0xde   : > { %1161 = vmatmul.mubr.f32.gmra.mrb[16].mxu0 %v788_v11  ;;  %1587 = vmatprep.mubr.f32.mxu1 %v793_v6  ;;  %v2493_v11 = vpack.c.bf16 %v1022_v46, %v1019_v10  ;;  %v2857_v20 = vpop.eup %2856  ;;  %2866 = verf.f32 %v520_v3  ;;  %v708_v26 = vadd.f32 1.0, %v2855_v9  ;;  %v1035_v10 = vld [vmem:[%s3386_s25 + $0x598] sm:$0xff] }
  0xdf   : > { %1166 = vmatprep.mubr.f32.mxu0 %v793_v6  ;;  %2484 = vmatpush1.bf16.msra.mxu0 %v2483_v15  ;;  %v3754_v6 = vld [vmem:[%s3379_s24 + $0x220] sm:$0xff]  ;;  %v805_v15 = vmul.f32 %v705_v53, %v405_v58  ;;  %2868 = verf.f32 %v525_v18  ;;  %v713_v33 = vadd.f32 1.0, %v2857_v20  ;;  %v1037_v58 = vld [vmem:[%s3386_s25 + $0x5a8] sm:$0xff]  ;;  %v1038_v18 = vld [vmem:[%s3386_s25 + $0x5b0] sm:$0xff] }
  0xe0   : > { %2587 = vmatpush1.bf16.msra.mxu1 %v2586_v12  ;;  %2486 = vmatprep.subr.bf16.mxu0 %v2485_v13  ;;  %v409_v12 = vmul.f32 0.5, %v3675_v57  ;;  %v2495_v13 = vpack.c.bf16 %v1021_v62, %v1018_v39  ;;  %v2497_v57 = vpack.c.bf16 %v1028_v7, %v1025_v23  ;;  %v2859_v36 = vpop.eup %2858  ;;  %v808_v46 = vmul.f32 %v708_v26, %v408_v31  ;;  %v1040_v53 = vld [vmem:[%s3386_s25 + $0x5c0] sm:$0xff]  ;;  %v1041_v23 = vld [vmem:[%s3386_s25 + $0x5c8] sm:$0xff] }
  0xe1   : > { %2588 = vmatprep.subr.bf16.mxu1 %v3186_v0  ;;  %1588 = vmatmul.mubr.f32.gmra.mrb[18].mxu1 %v792_v17  ;;  %v2861_v43 = vpop.eup %2860  ;;  %v712_v49 = vadd.f32 1.0, %v2859_v36  ;;  %v2601_v62 = vpack.c.bf16 %v1035_v10, %v1032_v60  ;;  %v3811_v31 = vld [vmem:[%s3379_s24 + $0x2a8] sm:$0xff] }
  0xe2   : > { %1167 = vmatmul.mubr.f32.gmra.mrb[18].mxu0 %v792_v17  ;;  %1592 = vmatprep.mubr.f32.mxu1 %v797_v27  ;;  %v524_v17 = vmul.f32 0.70710677, %v3754_v6  ;;  %v717_v39 = vadd.f32 1.0, %v2861_v43  ;;  %v1045_v26 = vld [vmem:[%s3386_s25 + $0x5e8] sm:$0xff]  ;;  %v425_v43 = vmul.f32 0.5, %v3743_v54 }
  0xe3   : > { %1172 = vmatprep.mubr.f32.mxu0 %v797_v27  ;;  %2488 = vmatpush1.bf16.msra.mxu0 %v2487_v30  ;;  %v3771_v27 = vld [vmem:[%s3379_s24 + $0x240] sm:$0xff]  ;;  %v809_v30 = vmul.f32 %v709_v47, %v409_v12  ;;  %v812_v7 = vmul.f32 %v712_v49, %v412_v56  ;;  %v1043_v12 = vld [vmem:[%s3386_s25 + $0x5d8] sm:$0xff]  ;;  %v1046_v47 = vld [vmem:[%s3386_s25 + $0x5f0] sm:$0xff]  ;;  %v2511_v56 = vpack.c.bf16 %v1045_v26, %v1042_v35 }
  0xe4   : > { %2590 = vmatpush1.bf16.msra.mxu1 %v2589_v5  ;;  %2490 = vmatprep.subr.bf16.mxu0 %v2489_v52  ;;  %v413_v5 = vmul.f32 0.5, %v3692_v48  ;;  %v2499_v52 = vpack.c.bf16 %v1027_v21, %v1024_v16  ;;  %2870 = verf.f32 %v524_v17  ;;  %v2501_v48 = vpack.c.bf16 %v1034_v28, %v1031_v37  ;;  %v2863_v61 = vpop.eup %2862  ;;  %v1047_v37 = vld [vmem:[%s3386_s25 + $0x5f8] sm:$0xff] }
  0xe5   : > { %2591 = vmatprep.subr.bf16.mxu1 %v3186_v0  ;;  %1593 = vmatmul.mubr.f32.gmra.mrb[20].mxu1 %v796_v41  ;;  %2872 = verf.f32 %v529_v42  ;;  %v2865_v3 = vpop.eup %2864  ;;  %v716_v9 = vadd.f32 1.0, %v2863_v61  ;;  %v2604_v21 = vpack.c.bf16 %v1041_v23, %v1038_v18  ;;  %v1044_v42 = vld [vmem:[%s3386_s25 + $0x5e0] sm:$0xff]  ;;  %v428_v61 = vmul.f32 0.5, %v3771_v27 }
  0xe6   : > { %1173 = vmatmul.mubr.f32.gmra.mrb[20].mxu0 %v796_v41  ;;  %1597 = vmatprep.mubr.f32.mxu1 %v801_v50  ;;  %v528_v41 = vmul.f32 0.70710677, %v3771_v27  ;;  %v721_v16 = vadd.f32 1.0, %v2865_v3  ;;  %v433_v27 = vmul.f32 0.5, %v3777_v34 }
  0xe7   : > { %1178 = vmatprep.mubr.f32.mxu0 %v801_v50  ;;  %2492 = vmatpush1.bf16.msra.mxu0 %v2491_v55  ;;  %v3788_v50 = vld [vmem:[%s3379_s24 + $0x260] sm:$0xff]  ;;  %v813_v55 = vmul.f32 %v713_v33, %v413_v5  ;;  %v816_v28 = vmul.f32 %v716_v9, %v416_v1  ;;  %v3847_v1 = vld [vmem:[%s3379_s24 + $0x308] sm:$0xf] }
  0xe8   : > { %2593 = vmatpush1.bf16.msra.mxu1 %v2592_v19  ;;  %2494 = vmatprep.subr.bf16.mxu0 %v2493_v11  ;;  %v417_v19 = vmul.f32 0.5, %v3709_v8  ;;  %v2503_v11 = vpack.c.bf16 %v1033_v44, %v1030_v40  ;;  %2874 = verf.f32 %v528_v41  ;;  %v2505_v8 = vpack.c.bf16 %v1040_v53, %v1037_v58  ;;  %v2867_v20 = vpop.eup %2866  ;;  %v3822_v5 = vld [vmem:[%s3379_s24 + $0x2a0] sm:$0xff]  ;;  %v3837_v53 = vld [vmem:[%s3379_s24 + $0x2e8] sm:$0xff] }
  0xe9   : > { %2594 = vmatprep.subr.bf16.mxu1 %v3186_v0  ;;  %1598 = vmatmul.mubr.f32.gmra.mrb[22].mxu1 %v800_v2  ;;  %2876 = verf.f32 %v533_v63  ;;  %v2869_v17 = vpop.eup %2868  ;;  %v720_v36 = vadd.f32 1.0, %v2867_v20  ;;  %v2607_v41 = vpack.c.bf16 %v1047_v37, %v1044_v42  ;;  %v540_v44 = vmul.f32 0.70710677, %v3822_v5  ;;  %v3853_v9 = vld [vmem:[%s3379_s24 + $0x300] sm:$0xf] }
  0xea   : > { %1179 = vmatmul.mubr.f32.gmra.mrb[22].mxu0 %v800_v2  ;;  %1602 = vmatprep.mubr.f32.mxu1 %v805_v15  ;;  %v532_v2 = vmul.f32 0.70710677, %v3788_v50  ;;  %v429_v63 = vmul.f32 0.5, %v3760_v51  ;;  %v549_v3 = vmul.f32 0.70710677, %v3837_v53  ;;  %v3843_v51 = vld [vmem:[%s3379_s24 + $0x2e0] sm:$0xff] }
  0xeb   : > { %1184 = vmatprep.mubr.f32.mxu0 %v805_v15  ;;  %2496 = vmatpush1.bf16.msra.mxu0 %v2495_v13  ;;  %v3805_v15 = vld [vmem:[%s3379_s24 + $0x280] sm:$0xff]  ;;  %v817_v13 = vmul.f32 %v717_v39, %v417_v19  ;;  %v820_v54 = vmul.f32 %v720_v36, %v420_v24  ;;  %v440_v26 = vmul.f32 0.5, %v3822_v5 }
  0xec   : > { %2596 = vmatpush1.bf16.msra.mxu1 %v2595_v32  ;;  %2498 = vmatprep.subr.bf16.mxu0 %v2497_v57  ;;  %v421_v32 = vmul.f32 0.5, %v3726_v29  ;;  %v2507_v57 = vpack.c.bf16 %v1039_v4, %v1036_v14  ;;  %2878 = verf.f32 %v532_v2  ;;  %v2509_v29 = vpack.c.bf16 %v1046_v47, %v1043_v12  ;;  %v3857_v47 = vld [vmem:[%s3379_s24 + $0x18] sm:$0xff] }
  0xed   : > { %2597 = vmatprep.subr.bf16.mxu1 %v3186_v0  ;;  %1603 = vmatmul.mubr.f32.gmra.mrb[24].mxu1 %v804_v25  ;;  %2880 = verf.f32 %v537_v22  ;;  %v548_v4 = vmul.f32 0.70710677, %v3843_v51 }
  0xee   : > { %1185 = vmatmul.mubr.f32.gmra.mrb[24].mxu0 %v804_v25  ;;  %1607 = vmatprep.mubr.f32.mxu1 %v809_v30  ;;  %v536_v25 = vmul.f32 0.70710677, %v3805_v15  ;;  %v2871_v45 = vpop.eup %2870  ;;  %v821_v33 = vmul.f32 %v721_v16, %v421_v32  ;;  %v552_v32 = vmul.f32 0.70710677, %v3853_v9 }
  0xef   : > { %1190 = vmatprep.mubr.f32.mxu0 %v809_v30  ;;  %2500 = vmatpush1.bf16.msra.mxu0 %v2499_v52  ;;  %v541_v30 = vmul.f32 0.70710677, %v3811_v31  ;;  %v725_v52 = vadd.f32 1.0, %v2869_v17  ;;  %v2873_v40 = vpop.eup %2872  ;;  %v724_v60 = vadd.f32 1.0, %v2871_v45 }
  0xf0   : > { %2599 = vmatpush1.bf16.msra.mxu1 %v2598_v38  ;;  %2502 = vmatprep.subr.bf16.mxu0 %v2501_v48  ;;  %v3826_v38 = vld [vmem:[%s3379_s24 + $0x2c8] sm:$0xff]  ;;  %v424_v48 = vmul.f32 0.5, %v3754_v6  ;;  %2882 = verf.f32 %v536_v25  ;;  %v729_v58 = vadd.f32 1.0, %v2873_v40  ;;  %v3867_v25 = vld [vmem:[%s3379_s24 + $0x38] sm:$0xff] }
  0xf1   : > { %2600 = vmatprep.subr.bf16.mxu1 %v3186_v0  ;;  %1608 = vmatmul.mubr.f32.gmra.mrb[26].mxu1 %v808_v46  ;;  %2884 = verf.f32 %v541_v30  ;;  %v545_v10 = vmul.f32 0.70710677, %v3826_v38  ;;  %v825_v6 = vmul.f32 %v725_v52, %v425_v43  ;;  %v463_v36 = vmul.f32 0.70710677, %v3867_v25  ;;  %v3873_v30 = vld [vmem:[%s3379_s24 + $0x30] sm:$0xff]  ;;  %v3877_v43 = vld [vmem:[%s3379_s24 + $0x58] sm:$0xff] }
  0xf2   : > { %1191 = vmatmul.mubr.f32.gmra.mrb[26].mxu0 %v808_v46  ;;  %1612 = vmatprep.mubr.f32.mxu1 %v813_v55  ;;  %v3833_v46 = vld [vmem:[%s3379_s24 + $0x2c0] sm:$0xff]  ;;  %v2875_v49 = vpop.eup %2874  ;;  %2886 = verf.f32 %v540_v44  ;;  %v824_v19 = vmul.f32 %v724_v60, %v424_v48  ;;  %v445_v5 = vmul.f32 0.5, %v3826_v38  ;;  %v467_v44 = vmul.f32 0.70710677, %v3877_v43 }
  0xf3   : > { %1196 = vmatprep.mubr.f32.mxu0 %v813_v55  ;;  %2504 = vmatpush1.bf16.msra.mxu0 %v2503_v11  ;;  %v544_v55 = vmul.f32 0.70710677, %v3833_v46  ;;  %v728_v39 = vadd.f32 1.0, %v2875_v49  ;;  %2888 = verf.f32 %v545_v10  ;;  %v444_v40 = vmul.f32 0.5, %v3833_v46  ;;  %v3887_v49 = vld [vmem:[%s3379_s24 + $0x78] sm:$0xff] }
  0xf4   : > { %2602 = vmatpush1.bf16.msra.mxu1 %v2601_v62  ;;  %2506 = vmatprep.subr.bf16.mxu0 %v2505_v8  ;;  %v829_v62 = vmul.f32 %v729_v58, %v429_v63  ;;  %v432_v8 = vmul.f32 0.5, %v3788_v50  ;;  %v437_v50 = vmul.f32 0.5, %v3794_v59  ;;  %v449_v10 = vmul.f32 0.5, %v3837_v53 }
  0xf5   : > { %2603 = vmatprep.subr.bf16.mxu1 %v3186_v0  ;;  %1613 = vmatmul.mubr.f32.gmra.mrb[28].mxu1 %v812_v7  ;;  %2890 = verf.f32 %v544_v55  ;;  %v828_v18 = vmul.f32 %v728_v39, %v428_v61  ;;  %v448_v63 = vmul.f32 0.5, %v3843_v51  ;;  %v471_v55 = vmul.f32 0.70710677, %v3887_v49 }
  0xf6   : > { %1197 = vmatmul.mubr.f32.gmra.mrb[28].mxu0 %v812_v7  ;;  %1617 = vmatprep.mubr.f32.mxu1 %v817_v13  ;;  %2892 = verf.f32 %v549_v3  ;;  %v553_v7 = vmul.f32 0.70710677, %v3847_v1  ;;  %v453_v3 = vmul.f32 0.5, %v3847_v1 }
  0xf7   : > { %1202 = vmatprep.mubr.f32.mxu0 %v817_v13  ;;  %2508 = vmatpush1.bf16.msra.mxu0 %v2507_v57  ;;  %v436_v13 = vmul.f32 0.5, %v3805_v15  ;;  %2894 = verf.f32 %v548_v4  ;;  %v459_v57 = vmul.f32 0.70710677, %v3857_v47  ;;  %v441_v15 = vmul.f32 0.5, %v3811_v31 }
  0xf8   : > { %2605 = vmatpush1.bf16.msra.mxu1 %v2604_v21  ;;  %2510 = vmatprep.subr.bf16.mxu0 %v2509_v29  ;;  %2896 = verf.f32 %v553_v7  ;;  %v3863_v21 = vld [vmem:[%s3379_s24 + $0x10] sm:$0xff]  ;;  %v359_v7 = vmul.f32 0.5, %v3857_v47 }
  0xf9   : > { %2606 = vmatprep.subr.bf16.mxu1 %v3186_v0  ;;  %1618 = vmatmul.mubr.f32.gmra.mrb[30].mxu1 %v816_v28  ;;  %v2877_v0 = vpop.eup %2876  ;;  %2898 = verf.f32 %v552_v32  ;;  %v458_v42 = vmul.f32 0.70710677, %v3863_v21 }
  0xfa   : > { %1203 = vmatmul.mubr.f32.gmra.mrb[30].mxu0 %v816_v28  ;;  %1622 = vmatprep.mubr.f32.mxu1 %v821_v33  ;;  %v2879_v11 = vpop.eup %2878  ;;  %v733_v14 = vadd.f32 1.0, %v2877_v0  ;;  %2900 = verf.f32 %v459_v57  ;;  %v363_v57 = vmul.f32 0.5, %v3867_v25 }
  0xfb   : > { %1208 = vmatprep.mubr.f32.mxu0 %v821_v33  ;;  %2512 = vmatpush1.bf16.msra.mxu0 %v2511_v56  ;;  %v2881_v2 = vpop.eup %2880  ;;  %v732_v23 = vadd.f32 1.0, %v2879_v11  ;;  %2902 = verf.f32 %v458_v42  ;;  %v462_v56 = vmul.f32 0.70710677, %v3873_v30  ;;  %v3897_v11 = vld [vmem:[%s3379_s24 + $0x98] sm:$0xff] }
  0xfc   : > { %2608 = vmatpush1.bf16.msra.mxu1 %v2607_v41  ;;  %v2883_v34 = vpop.eup %2882  ;;  %v833_v22 = vmul.f32 %v733_v14, %v433_v27  ;;  %v737_v12 = vadd.f32 1.0, %v2881_v2  ;;  %2904 = verf.f32 %v463_v36  ;;  %v452_v27 = vmul.f32 0.5, %v3853_v9 }
  0xfd   : > { %1623 = vmatmul.mubr.f32.gmra.mrb[32].mxu1 %v820_v54  ;;  %v2885_v20 = vpop.eup %2884  ;;  %v832_v16 = vmul.f32 %v732_v23, %v432_v8  ;;  %v736_v17 = vadd.f32 1.0, %v2883_v34  ;;  %2906 = verf.f32 %v462_v56  ;;  %v475_v4 = vmul.f32 0.70710677, %v3897_v11  ;;  %v3907_v34 = vld [vmem:[%s3379_s24 + $0xb8] sm:$0xff] }
  0xfe   : > { %1209 = vmatmul.mubr.f32.gmra.mrb[32].mxu0 %v820_v54  ;;  %1627 = vmatprep.mubr.f32.mxu1 %v825_v6  ;;  %v2887_v59 = vpop.eup %2886  ;;  %v837_v35 = vmul.f32 %v737_v12, %v437_v50  ;;  %v741_v24 = vadd.f32 1.0, %v2885_v20  ;;  %v3883_v54 = vld [vmem:[%s3379_s24 + $0x50] sm:$0xff]  ;;  %2908 = verf.f32 %v467_v44  ;;  %v358_v50 = vmul.f32 0.5, %v3863_v21 }
  0xff   : > { %1214 = vmatprep.mubr.f32.mxu0 %v825_v6  ;;  %v2889_v29 = vpop.eup %2888  ;;  %v836_v37 = vmul.f32 %v736_v17, %v436_v13  ;;  %v740_v28 = vadd.f32 1.0, %v2887_v59  ;;  %v466_v58 = vmul.f32 0.70710677, %v3883_v54  ;;  %v479_v32 = vmul.f32 0.70710677, %v3907_v34  ;;  %v3917_v59 = vld [vmem:[%s3379_s24 + $0xd8] sm:$0xff] }
 0x100   : > { %v2891_v31 = vpop.eup %2890  ;;  %v841_v45 = vmul.f32 %v741_v24, %v441_v15  ;;  %v745_v33 = vadd.f32 1.0, %v2889_v29  ;;  %v362_v15 = vmul.f32 0.5, %v3873_v30  ;;  %v483_v42 = vmul.f32 0.70710677, %v3917_v59 }
 0x101   : > { %1628 = vmatmul.mubr.f32.gmra.mrb[34].mxu1 %v824_v19  ;;  %v2893_v52 = vpop.eup %2892  ;;  %v840_v41 = vmul.f32 %v740_v28, %v440_v26  ;;  %v744_v48 = vadd.f32 1.0, %v2891_v31  ;;  %2910 = verf.f32 %v466_v58  ;;  %v367_v36 = vmul.f32 0.5, %v3877_v43  ;;  %v3927_v31 = vld [vmem:[%s3379_s24 + $0xf8] sm:$0xff] }
 0x102   : > { %1215 = vmatmul.mubr.f32.gmra.mrb[34].mxu0 %v824_v19  ;;  %1632 = vmatprep.mubr.f32.mxu1 %v829_v62  ;;  %v2895_v38 = vpop.eup %2894  ;;  %v845_v60 = vmul.f32 %v745_v33, %v445_v5  ;;  %v749_v46 = vadd.f32 1.0, %v2893_v52  ;;  %v3893_v19 = vld [vmem:[%s3379_s24 + $0x70] sm:$0xff]  ;;  %2912 = verf.f32 %v471_v55  ;;  %v366_v5 = vmul.f32 0.5, %v3883_v54 }
 0x103   : > { %1220 = vmatprep.mubr.f32.mxu0 %v829_v62  ;;  %v2897_v6 = vpop.eup %2896  ;;  %v844_v0 = vmul.f32 %v744_v48, %v444_v40  ;;  %v748_v61 = vadd.f32 1.0, %v2895_v38  ;;  %v470_v14 = vmul.f32 0.70710677, %v3893_v19  ;;  %v487_v56 = vmul.f32 0.70710677, %v3927_v31  ;;  %v3937_v38 = vld [vmem:[%s3379_s24 + $0x118] sm:$0xff] }
 0x104   : > { %v2899_v53 = vpop.eup %2898  ;;  %v849_v39 = vmul.f32 %v749_v46, %v449_v10  ;;  %v753_v51 = vadd.f32 1.0, %v2897_v6  ;;  %v371_v44 = vmul.f32 0.5, %v3887_v49  ;;  %v370_v10 = vmul.f32 0.5, %v3893_v19 }
 0x105   : > { %1633 = vmatmul.mubr.f32.gmra.mrb[36].mxu1 %v828_v18  ;;  %v2901_v62 = vpop.eup %2900  ;;  %v848_v2 = vmul.f32 %v748_v61, %v448_v63  ;;  %v752_v8 = vadd.f32 1.0, %v2899_v53  ;;  %2914 = verf.f32 %v470_v14  ;;  %v491_v58 = vmul.f32 0.70710677, %v3937_v38  ;;  %v3947_v53 = vld [vmem:[%s3379_s24 + $0x138] sm:$0xff] }
 0x106   : > { %1221 = vmatmul.mubr.f32.gmra.mrb[36].mxu0 %v828_v18  ;;  %1637 = vmatprep.mubr.f32.mxu1 %v833_v22  ;;  %v3903_v18 = vld [vmem:[%s3379_s24 + $0x90] sm:$0xff]  ;;  %v2903_v1 = vpop.eup %2902  ;;  %v853_v23 = vmul.f32 %v753_v51, %v453_v3  ;;  %v659_v9 = vadd.f32 1.0, %v2901_v62  ;;  %2916 = verf.f32 %v475_v4  ;;  %v375_v55 = vmul.f32 0.5, %v3897_v11 }
 0x107   : > { %1226 = vmatprep.mubr.f32.mxu0 %v833_v22  ;;  %v2905_v22 = vpop.eup %2904  ;;  %v474_v12 = vmul.f32 0.70710677, %v3903_v18  ;;  %v852_v20 = vmul.f32 %v752_v8, %v452_v27  ;;  %v658_v13 = vadd.f32 1.0, %v2903_v1  ;;  %v374_v3 = vmul.f32 0.5, %v3903_v18  ;;  %v3957_v1 = vld [vmem:[%s3379_s24 + $0x158] sm:$0xff] }
 0x108   : > { %v2907_v47 = vpop.eup %2906  ;;  %v759_v17 = vmul.f32 %v659_v9, %v359_v7  ;;  %v663_v21 = vadd.f32 1.0, %v2905_v22  ;;  %v495_v14 = vmul.f32 0.70710677, %v3947_v53  ;;  %v379_v4 = vmul.f32 0.5, %v3907_v34 }
 0x109   : > { %1638 = vmatmul.mubr.f32.gmra.mrb[38].mxu1 %v832_v16  ;;  %2918 = verf.f32 %v474_v12  ;;  %v758_v29 = vmul.f32 %v658_v13, %v358_v50  ;;  %v662_v26 = vadd.f32 1.0, %v2907_v47  ;;  %v499_v12 = vmul.f32 0.70710677, %v3957_v1  ;;  %v3967_v47 = vld [vmem:[%s3379_s24 + $0x178] sm:$0xff] }
 0x10a   : > { %1227 = vmatmul.mubr.f32.gmra.mrb[38].mxu0 %v832_v16  ;;  %1642 = vmatprep.mubr.f32.mxu1 %v837_v35  ;;  %v3913_v16 = vld [vmem:[%s3379_s24 + $0xb0] sm:$0xff]  ;;  %2920 = verf.f32 %v479_v32  ;;  %v763_v28 = vmul.f32 %v663_v21, %v363_v57  ;;  %v383_v32 = vmul.f32 0.5, %v3917_v59 }
 0x10b   : > { %1232 = vmatprep.mubr.f32.mxu0 %v837_v35  ;;  %v2909_v35 = vpop.eup %2908  ;;  %v478_v24 = vmul.f32 0.70710677, %v3913_v16  ;;  %v762_v52 = vmul.f32 %v662_v26, %v362_v15  ;;  %v378_v7 = vmul.f32 0.5, %v3913_v16 }
 0x10c   : > { %v2911_v25 = vpop.eup %2910  ;;  %v667_v30 = vadd.f32 1.0, %v2909_v35 }
 0x10d   : > { %1643 = vmatmul.mubr.f32.gmra.mrb[40].mxu1 %v836_v37  ;;  %2922 = verf.f32 %v478_v24  ;;  %v666_v40 = vadd.f32 1.0, %v2911_v25  ;;  %v503_v24 = vmul.f32 0.70710677, %v3967_v47  ;;  %v3977_v25 = vld [vmem:[%s3379_s24 + $0x198] sm:$0xff] }
 0x10e   : > { %1233 = vmatmul.mubr.f32.gmra.mrb[40].mxu0 %v836_v37  ;;  %1647 = vmatprep.mubr.f32.mxu1 %v841_v45  ;;  %v3923_v37 = vld [vmem:[%s3379_s24 + $0xd0] sm:$0xff]  ;;  %2924 = verf.f32 %v483_v42  ;;  %v767_v48 = vmul.f32 %v667_v30, %v367_v36  ;;  %v387_v42 = vmul.f32 0.5, %v3927_v31 }
 0x10f   : > { %1238 = vmatprep.mubr.f32.mxu0 %v841_v45  ;;  %v2913_v45 = vpop.eup %2912  ;;  %v482_v33 = vmul.f32 0.70710677, %v3923_v37  ;;  %v766_v6 = vmul.f32 %v666_v40, %v366_v5  ;;  %v382_v57 = vmul.f32 0.5, %v3923_v37 }
 0x110   : > { %v2915_v43 = vpop.eup %2914  ;;  %v671_v54 = vadd.f32 1.0, %v2913_v45 }
 0x111   : > { %1648 = vmatmul.mubr.f32.gmra.mrb[42].mxu1 %v840_v41  ;;  %2926 = verf.f32 %v482_v33  ;;  %v670_v63 = vadd.f32 1.0, %v2915_v43  ;;  %v507_v33 = vmul.f32 0.70710677, %v3977_v25  ;;  %v3987_v43 = vld [vmem:[%s3379_s24 + $0x1b8] sm:$0xff] }
 0x112   : > { %1239 = vmatmul.mubr.f32.gmra.mrb[42].mxu0 %v840_v41  ;;  %1652 = vmatprep.mubr.f32.mxu1 %v845_v60  ;;  %v3933_v41 = vld [vmem:[%s3379_s24 + $0xf0] sm:$0xff]  ;;  %2928 = verf.f32 %v487_v56  ;;  %v771_v61 = vmul.f32 %v671_v54, %v371_v44  ;;  %v391_v56 = vmul.f32 0.5, %v3937_v38 }
 0x113   : > { %1244 = vmatprep.mubr.f32.mxu0 %v845_v60  ;;  %v2917_v60 = vpop.eup %2916  ;;  %v486_v46 = vmul.f32 0.70710677, %v3933_v41  ;;  %v770_v62 = vmul.f32 %v670_v63, %v370_v10  ;;  %v386_v36 = vmul.f32 0.5, %v3933_v41 }
 0x114   : > { %v2919_v49 = vpop.eup %2918  ;;  %v675_v19 = vadd.f32 1.0, %v2917_v60 }
 0x115   : > { %1653 = vmatmul.mubr.f32.gmra.mrb[44].mxu1 %v844_v0  ;;  %2930 = verf.f32 %v486_v46  ;;  %v674_v27 = vadd.f32 1.0, %v2919_v49  ;;  %v511_v46 = vmul.f32 0.70710677, %v3987_v43  ;;  %v3997_v49 = vld [vmem:[%s3379_s24 + $0x1d8] sm:$0xff] }
 0x116   : > { %1245 = vmatmul.mubr.f32.gmra.mrb[44].mxu0 %v844_v0  ;;  %1657 = vmatprep.mubr.f32.mxu1 %v849_v39  ;;  %v3943_v0 = vld [vmem:[%s3379_s24 + $0x110] sm:$0xff]  ;;  %2932 = verf.f32 %v491_v58  ;;  %v775_v8 = vmul.f32 %v675_v19, %v375_v55  ;;  %v395_v58 = vmul.f32 0.5, %v3947_v53 }
 0x117   : > { %1250 = vmatprep.mubr.f32.mxu0 %v849_v39  ;;  %v2921_v39 = vpop.eup %2920  ;;  %v490_v51 = vmul.f32 0.70710677, %v3943_v0  ;;  %v774_v22 = vmul.f32 %v674_v27, %v374_v3  ;;  %v390_v44 = vmul.f32 0.5, %v3943_v0 }
 0x118   : > { %v2923_v11 = vpop.eup %2922  ;;  %v679_v18 = vadd.f32 1.0, %v2921_v39 }
 0x119   : > { %1658 = vmatmul.mubr.f32.gmra.mrb[46].mxu1 %v848_v2  ;;  %2934 = verf.f32 %v490_v51  ;;  %v678_v50 = vadd.f32 1.0, %v2923_v11  ;;  %v515_v51 = vmul.f32 0.70710677, %v3997_v49  ;;  %v4007_v11 = vld [vmem:[%s3379_s24 + $0x1f8] sm:$0xff] }
 0x11a   : > { %1251 = vmatmul.mubr.f32.gmra.mrb[46].mxu0 %v848_v2  ;;  %1662 = vmatprep.mubr.f32.mxu1 %v853_v23  ;;  %v3953_v2 = vld [vmem:[%s3379_s24 + $0x130] sm:$0xff]  ;;  %2936 = verf.f32 %v495_v14  ;;  %v779_v13 = vmul.f32 %v679_v18, %v379_v4  ;;  %v399_v14 = vmul.f32 0.5, %v3957_v1 }
 0x11b   : > { %1256 = vmatprep.mubr.f32.mxu0 %v853_v23  ;;  %v2925_v23 = vpop.eup %2924  ;;  %v494_v9 = vmul.f32 0.70710677, %v3953_v2  ;;  %v778_v35 = vmul.f32 %v678_v50, %v378_v7  ;;  %v394_v55 = vmul.f32 0.5, %v3953_v2 }
 0x11c   : > { %v2927_v34 = vpop.eup %2926  ;;  %v683_v16 = vadd.f32 1.0, %v2925_v23 }
 0x11d   : > { %1663 = vmatmul.mubr.f32.gmra.mrb[48].mxu1 %v852_v20  ;;  %2938 = verf.f32 %v494_v9  ;;  %v682_v15 = vadd.f32 1.0, %v2927_v34  ;;  %v519_v9 = vmul.f32 0.70710677, %v4007_v11  ;;  %v4017_v34 = vld [vmem:[%s3379_s24 + $0x218] sm:$0xff] }
 0x11e   : > { %1257 = vmatmul.mubr.f32.gmra.mrb[48].mxu0 %v852_v20  ;;  %1732 = vmatprep.mubr.f32.mxu1 %v759_v17  ;;  %v3963_v20 = vld [vmem:[%s3379_s24 + $0x150] sm:$0xff]  ;;  %2940 = verf.f32 %v499_v12  ;;  %v783_v26 = vmul.f32 %v683_v16, %v383_v32  ;;  %v403_v12 = vmul.f32 0.5, %v3967_v47 }
 0x11f   : > { %1327 = vmatprep.mubr.f32.mxu0 %v759_v17  ;;  %v2929_v17 = vpop.eup %2928  ;;  %v498_v21 = vmul.f32 0.70710677, %v3963_v20  ;;  %v782_v45 = vmul.f32 %v682_v15, %v382_v57  ;;  %v398_v4 = vmul.f32 0.5, %v3963_v20 }
 0x120   : > { %v2931_v59 = vpop.eup %2930  ;;  %v687_v37 = vadd.f32 1.0, %v2929_v17 }
 0x121   : > { %1733 = vmatmul.mubr.f32.vlgmr.msra.gmra.mrb[0].mxu1 %v758_v29  ;;  %2942 = verf.f32 %v498_v21  ;;  %v686_v5 = vadd.f32 1.0, %v2931_v59  ;;  %v523_v21 = vmul.f32 0.70710677, %v4017_v34  ;;  %v4027_v59 = vld [vmem:[%s3379_s24 + $0x238] sm:$0xff] }
 0x122   : > { %1328 = vmatmul.mubr.f32.vlgmr.msra.gmra.mrb[0].mxu0 %v758_v29  ;;  %1737 = vmatprep.mubr.f32.mxu1 %v763_v28  ;;  %v3973_v29 = vld [vmem:[%s3379_s24 + $0x170] sm:$0xff]  ;;  %2944 = verf.f32 %v503_v24  ;;  %v787_v40 = vmul.f32 %v687_v37, %v387_v42  ;;  %v407_v24 = vmul.f32 0.5, %v3977_v25 }
 0x123   : > { %1333 = vmatprep.mubr.f32.mxu0 %v763_v28  ;;  %v2933_v28 = vpop.eup %2932  ;;  %v502_v30 = vmul.f32 0.70710677, %v3973_v29  ;;  %v786_v60 = vmul.f32 %v686_v5, %v386_v36  ;;  %v402_v32 = vmul.f32 0.5, %v3973_v29 }
 0x124   : > { %v2935_v31 = vpop.eup %2934  ;;  %v691_v41 = vadd.f32 1.0, %v2933_v28 }
 0x125   : > { %1738 = vmatmul.mubr.f32.gmra.mrb[2].mxu1 %v762_v52  ;;  %2946 = verf.f32 %v502_v30  ;;  %v690_v10 = vadd.f32 1.0, %v2935_v31  ;;  %v527_v30 = vmul.f32 0.70710677, %v4027_v59  ;;  %v4037_v31 = vld [vmem:[%s3379_s24 + $0x258] sm:$0xff] }
 0x126   : > { %1334 = vmatmul.mubr.f32.gmra.mrb[2].mxu0 %v762_v52  ;;  %1742 = vmatprep.mubr.f32.mxu1 %v767_v48  ;;  %v3983_v52 = vld [vmem:[%s3379_s24 + $0x190] sm:$0xff]  ;;  %2948 = verf.f32 %v507_v33  ;;  %v791_v63 = vmul.f32 %v691_v41, %v391_v56  ;;  %v411_v33 = vmul.f32 0.5, %v3987_v43 }
 0x127   : > { %1339 = vmatprep.mubr.f32.mxu0 %v767_v48  ;;  %v2937_v48 = vpop.eup %2936  ;;  %v506_v54 = vmul.f32 0.70710677, %v3983_v52  ;;  %v790_v39 = vmul.f32 %v690_v10, %v390_v44  ;;  %v406_v42 = vmul.f32 0.5, %v3983_v52 }
 0x128   : > { %v2939_v38 = vpop.eup %2938  ;;  %v695_v0 = vadd.f32 1.0, %v2937_v48 }
 0x129   : > { %1743 = vmatmul.mubr.f32.gmra.mrb[4].mxu1 %v766_v6  ;;  %2950 = verf.f32 %v506_v54  ;;  %v694_v3 = vadd.f32 1.0, %v2939_v38  ;;  %v531_v54 = vmul.f32 0.70710677, %v4037_v31  ;;  %v4047_v38 = vld [vmem:[%s3379_s24 + $0x278] sm:$0xff] }
 0x12a   : > { %1340 = vmatmul.mubr.f32.gmra.mrb[4].mxu0 %v766_v6  ;;  %1747 = vmatprep.mubr.f32.mxu1 %v771_v61  ;;  %v3993_v6 = vld [vmem:[%s3379_s24 + $0x1b0] sm:$0xff]  ;;  %2952 = verf.f32 %v511_v46  ;;  %v795_v27 = vmul.f32 %v695_v0, %v395_v58  ;;  %v415_v46 = vmul.f32 0.5, %v3997_v49 }
 0x12b   : > { %1345 = vmatprep.mubr.f32.mxu0 %v771_v61  ;;  %v2941_v61 = vpop.eup %2940  ;;  %v510_v19 = vmul.f32 0.70710677, %v3993_v6  ;;  %v794_v23 = vmul.f32 %v694_v3, %v394_v55  ;;  %v410_v56 = vmul.f32 0.5, %v3993_v6 }
 0x12c   : > { %v2943_v53 = vpop.eup %2942  ;;  %v699_v2 = vadd.f32 1.0, %v2941_v61 }
 0x12d   : > { %1748 = vmatmul.mubr.f32.gmra.mrb[6].mxu1 %v770_v62  ;;  %2954 = verf.f32 %v510_v19  ;;  %v698_v7 = vadd.f32 1.0, %v2943_v53  ;;  %v535_v19 = vmul.f32 0.70710677, %v4047_v38  ;;  %v4057_v53 = vld [vmem:[%s3379_s24 + $0x298] sm:$0xff] }
 0x12e   : > { %1346 = vmatmul.mubr.f32.gmra.mrb[6].mxu0 %v770_v62  ;;  %1752 = vmatprep.mubr.f32.mxu1 %v775_v8  ;;  %v4003_v62 = vld [vmem:[%s3379_s24 + $0x1d0] sm:$0xff]  ;;  %2956 = verf.f32 %v515_v51  ;;  %v799_v50 = vmul.f32 %v699_v2, %v399_v14  ;;  %v419_v51 = vmul.f32 0.5, %v4007_v11 }
 0x12f   : > { %1351 = vmatprep.mubr.f32.mxu0 %v775_v8  ;;  %v2945_v8 = vpop.eup %2944  ;;  %v514_v18 = vmul.f32 0.70710677, %v4003_v62  ;;  %v798_v17 = vmul.f32 %v698_v7, %v398_v4  ;;  %v414_v58 = vmul.f32 0.5, %v4003_v62 }
 0x130   : > { %v2947_v1 = vpop.eup %2946  ;;  %v703_v20 = vadd.f32 1.0, %v2945_v8 }
 0x131   : > { %1753 = vmatmul.mubr.f32.gmra.mrb[8].mxu1 %v774_v22  ;;  %2958 = verf.f32 %v514_v18  ;;  %v702_v57 = vadd.f32 1.0, %v2947_v1  ;;  %v539_v18 = vmul.f32 0.70710677, %v4057_v53  ;;  %v4067_v1 = vld [vmem:[%s3379_s24 + $0x2b8] sm:$0xff] }
 0x132   : > { %1352 = vmatmul.mubr.f32.gmra.mrb[8].mxu0 %v774_v22  ;;  %1757 = vmatprep.mubr.f32.mxu1 %v779_v13  ;;  %v4013_v22 = vld [vmem:[%s3379_s24 + $0x1f0] sm:$0xff]  ;;  %2960 = verf.f32 %v519_v9  ;;  %v803_v15 = vmul.f32 %v703_v20, %v403_v12  ;;  %v423_v9 = vmul.f32 0.5, %v4017_v34 }
 0x133   : > { %1357 = vmatprep.mubr.f32.mxu0 %v779_v13  ;;  %v2949_v13 = vpop.eup %2948  ;;  %v518_v16 = vmul.f32 0.70710677, %v4013_v22  ;;  %v802_v28 = vmul.f32 %v702_v57, %v402_v32  ;;  %v418_v14 = vmul.f32 0.5, %v4013_v22 }
 0x134   : > { %v2951_v47 = vpop.eup %2950  ;;  %v707_v29 = vadd.f32 1.0, %v2949_v13 }
 0x135   : > { %1758 = vmatmul.mubr.f32.gmra.mrb[10].mxu1 %v778_v35  ;;  %2962 = verf.f32 %v518_v16  ;;  %v706_v36 = vadd.f32 1.0, %v2951_v47  ;;  %v543_v16 = vmul.f32 0.70710677, %v4067_v1  ;;  %v4077_v47 = vld [vmem:[%s3379_s24 + $0x2d8] sm:$0xff] }
 0x136   : > { %1358 = vmatmul.mubr.f32.gmra.mrb[10].mxu0 %v778_v35  ;;  %1762 = vmatprep.mubr.f32.mxu1 %v783_v26  ;;  %v4023_v35 = vld [vmem:[%s3379_s24 + $0x210] sm:$0xff]  ;;  %2964 = verf.f32 %v523_v21  ;;  %v807_v5 = vmul.f32 %v707_v29, %v407_v24  ;;  %v427_v21 = vmul.f32 0.5, %v4027_v59 }
 0x137   : > { %1363 = vmatprep.mubr.f32.mxu0 %v783_v26  ;;  %v2953_v26 = vpop.eup %2952  ;;  %v522_v37 = vmul.f32 0.70710677, %v4023_v35  ;;  %v806_v48 = vmul.f32 %v706_v36, %v406_v42  ;;  %v422_v12 = vmul.f32 0.5, %v4023_v35 }
 0x138   : > { %v2955_v25 = vpop.eup %2954  ;;  %v711_v52 = vadd.f32 1.0, %v2953_v26 }
 0x139   : > { %1763 = vmatmul.mubr.f32.gmra.mrb[12].mxu1 %v782_v45  ;;  %2966 = verf.f32 %v522_v37  ;;  %v710_v44 = vadd.f32 1.0, %v2955_v25  ;;  %v547_v37 = vmul.f32 0.70710677, %v4077_v47  ;;  %v4087_v25 = vld [vmem:[%s3379_s24 + $0x2f8] sm:$0xff] }
 0x13a   : > { %1364 = vmatmul.mubr.f32.gmra.mrb[12].mxu0 %v782_v45  ;;  %1767 = vmatprep.mubr.f32.mxu1 %v787_v40  ;;  %v4033_v45 = vld [vmem:[%s3379_s24 + $0x230] sm:$0xff]  ;;  %2968 = verf.f32 %v527_v30  ;;  %v811_v10 = vmul.f32 %v711_v52, %v411_v33  ;;  %v431_v30 = vmul.f32 0.5, %v4037_v31 }
 0x13b   : > { %1369 = vmatprep.mubr.f32.mxu0 %v787_v40  ;;  %v2957_v40 = vpop.eup %2956  ;;  %v526_v41 = vmul.f32 0.70710677, %v4033_v45  ;;  %v810_v61 = vmul.f32 %v710_v44, %v410_v56  ;;  %v426_v24 = vmul.f32 0.5, %v4033_v45 }
 0x13c   : > { %v2959_v43 = vpop.eup %2958  ;;  %v715_v6 = vadd.f32 1.0, %v2957_v40 }
 0x13d   : > { %1768 = vmatmul.mubr.f32.gmra.mrb[14].mxu1 %v786_v60  ;;  %2970 = verf.f32 %v526_v41  ;;  %v714_v55 = vadd.f32 1.0, %v2959_v43  ;;  %v551_v41 = vmul.f32 0.70710677, %v4087_v25  ;;  %v4097_v43 = vld [vmem:[%s3379_s24 + $0x318] sm:$0xf] }
 0x13e   : > { %1370 = vmatmul.mubr.f32.gmra.mrb[14].mxu0 %v786_v60  ;;  %1772 = vmatprep.mubr.f32.mxu1 %v791_v63  ;;  %v4043_v60 = vld [vmem:[%s3379_s24 + $0x250] sm:$0xff]  ;;  %2972 = verf.f32 %v531_v54  ;;  %v815_v3 = vmul.f32 %v715_v6, %v415_v46  ;;  %v435_v54 = vmul.f32 0.5, %v4047_v38 }
 0x13f   : > { %1375 = vmatprep.mubr.f32.mxu0 %v791_v63  ;;  %v2961_v63 = vpop.eup %2960  ;;  %v530_v0 = vmul.f32 0.70710677, %v4043_v60  ;;  %v814_v8 = vmul.f32 %v714_v55, %v414_v58  ;;  %v430_v33 = vmul.f32 0.5, %v4043_v60 }
 0x140   : > { %v2963_v49 = vpop.eup %2962  ;;  %v719_v62 = vadd.f32 1.0, %v2961_v63 }
 0x141   : > { %1773 = vmatmul.mubr.f32.gmra.mrb[16].mxu1 %v790_v39  ;;  %2974 = verf.f32 %v530_v0  ;;  %v718_v4 = vadd.f32 1.0, %v2963_v49  ;;  %v555_v0 = vmul.f32 0.70710677, %v4097_v43 }
 0x142   : > { %1376 = vmatmul.mubr.f32.gmra.mrb[16].mxu0 %v790_v39  ;;  %1777 = vmatprep.mubr.f32.mxu1 %v795_v27  ;;  %v4053_v39 = vld [vmem:[%s3379_s24 + $0x270] sm:$0xff]  ;;  %2976 = verf.f32 %v535_v19  ;;  %v819_v7 = vmul.f32 %v719_v62, %v419_v51  ;;  %v439_v19 = vmul.f32 0.5, %v4057_v53 }
 0x143   : > { %1381 = vmatprep.mubr.f32.mxu0 %v795_v27  ;;  %v2965_v27 = vpop.eup %2964  ;;  %v534_v2 = vmul.f32 0.70710677, %v4053_v39  ;;  %v818_v13 = vmul.f32 %v718_v4, %v418_v14  ;;  %v434_v46 = vmul.f32 0.5, %v4053_v39 }
 0x144   : > { %v2967_v11 = vpop.eup %2966  ;;  %v723_v22 = vadd.f32 1.0, %v2965_v27 }
 0x145   : > { %1778 = vmatmul.mubr.f32.gmra.mrb[18].mxu1 %v794_v23  ;;  %2978 = verf.f32 %v534_v2  ;;  %v722_v32 = vadd.f32 1.0, %v2967_v11 }
 0x146   : > { %1382 = vmatmul.mubr.f32.gmra.mrb[18].mxu0 %v794_v23  ;;  %1782 = vmatprep.mubr.f32.mxu1 %v799_v50  ;;  %v4063_v23 = vld [vmem:[%s3379_s24 + $0x290] sm:$0xff]  ;;  %2980 = verf.f32 %v539_v18  ;;  %v823_v57 = vmul.f32 %v723_v22, %v423_v9  ;;  %v447_v22 = vmul.f32 0.5, %v4077_v47 }
 0x147   : > { %1387 = vmatprep.mubr.f32.mxu0 %v799_v50  ;;  %v2969_v50 = vpop.eup %2968  ;;  %v538_v20 = vmul.f32 0.70710677, %v4063_v23  ;;  %v822_v26 = vmul.f32 %v722_v32, %v422_v12  ;;  %v438_v62 = vmul.f32 0.5, %v4063_v23 }
 0x148   : > { %v2971_v34 = vpop.eup %2970  ;;  %v727_v35 = vadd.f32 1.0, %v2969_v50 }
 0x149   : > { %1783 = vmatmul.mubr.f32.gmra.mrb[20].mxu1 %v798_v17  ;;  %2982 = verf.f32 %v538_v20  ;;  %v726_v42 = vadd.f32 1.0, %v2971_v34 }
 0x14a   : > { %1388 = vmatmul.mubr.f32.gmra.mrb[20].mxu0 %v798_v17  ;;  %1787 = vmatprep.mubr.f32.mxu1 %v803_v15  ;;  %v4073_v17 = vld [vmem:[%s3379_s24 + $0x2b0] sm:$0xff]  ;;  %2984 = verf.f32 %v543_v16  ;;  %v827_v36 = vmul.f32 %v727_v35, %v427_v21 }
 0x14b   : > { %1393 = vmatprep.mubr.f32.mxu0 %v803_v15  ;;  %v2973_v15 = vpop.eup %2972  ;;  %v542_v29 = vmul.f32 0.70710677, %v4073_v17  ;;  %v826_v40 = vmul.f32 %v726_v42, %v426_v24  ;;  %v442_v11 = vmul.f32 0.5, %v4073_v17  ;;  %v451_v17 = vmul.f32 0.5, %v4087_v25 }
 0x14c   : > { %v2975_v59 = vpop.eup %2974  ;;  %v731_v45 = vadd.f32 1.0, %v2973_v15 }
 0x14d   : > { %1788 = vmatmul.mubr.f32.gmra.mrb[22].mxu1 %v802_v28  ;;  %2986 = verf.f32 %v542_v29  ;;  %v730_v56 = vadd.f32 1.0, %v2975_v59  ;;  %v455_v29 = vmul.f32 0.5, %v4097_v43 }
 0x14e   : > { %1394 = vmatmul.mubr.f32.gmra.mrb[22].mxu0 %v802_v28  ;;  %1792 = vmatprep.mubr.f32.mxu1 %v807_v5  ;;  %v4083_v28 = vld [vmem:[%s3379_s24 + $0x2d0] sm:$0xff]  ;;  %2988 = verf.f32 %v547_v37  ;;  %v831_v44 = vmul.f32 %v731_v45, %v431_v30 }
 0x14f   : > { %1399 = vmatprep.mubr.f32.mxu0 %v807_v5  ;;  %v2977_v5 = vpop.eup %2976  ;;  %v546_v52 = vmul.f32 0.70710677, %v4083_v28  ;;  %v830_v63 = vmul.f32 %v730_v56, %v430_v33  ;;  %v446_v20 = vmul.f32 0.5, %v4083_v28 }
 0x150   : > { %v2979_v31 = vpop.eup %2978  ;;  %v735_v60 = vadd.f32 1.0, %v2977_v5 }
 0x151   : > { %1793 = vmatmul.mubr.f32.gmra.mrb[24].mxu1 %v806_v48  ;;  %2990 = verf.f32 %v546_v52  ;;  %v734_v58 = vadd.f32 1.0, %v2979_v31 }
 0x152   : > { %1400 = vmatmul.mubr.f32.gmra.mrb[24].mxu0 %v806_v48  ;;  %1797 = vmatprep.mubr.f32.mxu1 %v811_v10  ;;  %v4093_v48 = vld [vmem:[%s3379_s24 + $0x2f0] sm:$0xff]  ;;  %2992 = verf.f32 %v551_v41  ;;  %v835_v38 = vmul.f32 %v735_v60, %v435_v54 }
 0x153   : > { %1405 = vmatprep.mubr.f32.mxu0 %v811_v10  ;;  %v2981_v10 = vpop.eup %2980  ;;  %v550_v6 = vmul.f32 0.70710677, %v4093_v48  ;;  %v834_v51 = vmul.f32 %v734_v58, %v434_v46  ;;  %v450_v35 = vmul.f32 0.5, %v4093_v48 }
 0x154   : > { %v2983_v55 = vpop.eup %2982  ;;  %v739_v49 = vadd.f32 1.0, %v2981_v10 }
 0x155   : > { %1798 = vmatmul.mubr.f32.gmra.mrb[26].mxu1 %v810_v61  ;;  %2994 = verf.f32 %v550_v6  ;;  %v738_v27 = vadd.f32 1.0, %v2983_v55 }
 0x156   : > { %1406 = vmatmul.mubr.f32.gmra.mrb[26].mxu0 %v810_v61  ;;  %1802 = vmatprep.mubr.f32.mxu1 %v815_v3  ;;  %v354_v61 = vld [vmem:[%s3379_s24 + $0x310] sm:$0xf]  ;;  %2996 = verf.f32 %v555_v0  ;;  %v839_v2 = vmul.f32 %v739_v49, %v439_v19 }
 0x157   : > { %1411 = vmatprep.mubr.f32.mxu0 %v815_v3  ;;  %v2985_v3 = vpop.eup %2984  ;;  %v554_v39 = vmul.f32 0.70710677, %v354_v61  ;;  %v838_v53 = vmul.f32 %v738_v27, %v438_v62  ;;  %v454_v37 = vmul.f32 0.5, %v354_v61 }
 0x158   : > { %v2987_v14 = vpop.eup %2986  ;;  %v743_v4 = vadd.f32 1.0, %v2985_v3 }
 0x159   : > { %1803 = vmatmul.mubr.f32.gmra.mrb[28].mxu1 %v814_v8  ;;  %v2989_v18 = vpop.eup %2988  ;;  %2998 = verf.f32 %v554_v39 }
 0x15a   : > { %1412 = vmatmul.mubr.f32.gmra.mrb[28].mxu0 %v814_v8  ;;  %1807 = vmatprep.mubr.f32.mxu1 %v819_v7  ;;  %v443_v8 = vmul.f32 0.5, %v4067_v1  ;;  %v747_v50 = vadd.f32 1.0, %v2989_v18 }
 0x15b   : > { %1417 = vmatprep.mubr.f32.mxu0 %v819_v7  ;;  %v742_v7 = vadd.f32 1.0, %v2987_v14  ;;  %v2991_v9 = vpop.eup %2990 }
 0x15c   : > { %v843_v23 = vmul.f32 %v743_v4, %v443_v8  ;;  %v2993_v12 = vpop.eup %2992  ;;  %v847_v16 = vmul.f32 %v747_v50, %v447_v22 }
 0x15d   : > { %1808 = vmatmul.mubr.f32.gmra.mrb[30].mxu1 %v818_v13  ;;  %v842_v1 = vmul.f32 %v742_v7, %v442_v11  ;;  %v751_v34 = vadd.f32 1.0, %v2993_v12 }
 0x15e   : > { %1418 = vmatmul.mubr.f32.gmra.mrb[30].mxu0 %v818_v13  ;;  %1812 = vmatprep.mubr.f32.mxu1 %v823_v57  ;;  %v746_v13 = vadd.f32 1.0, %v2991_v9 }
 0x15f   : > { %1423 = vmatprep.mubr.f32.mxu0 %v823_v57  ;;  %v2995_v32 = vpop.eup %2994  ;;  %v851_v24 = vmul.f32 %v751_v34, %v451_v17 }
 0x160   : > { %v2997_v57 = vpop.eup %2996  ;;  %v846_v21 = vmul.f32 %v746_v13, %v446_v20  ;;  %v750_v47 = vadd.f32 1.0, %v2995_v32 }
 0x161   : > { %1813 = vmatmul.mubr.f32.gmra.mrb[32].mxu1 %v822_v26 }
 0x162   : > { %1424 = vmatmul.mubr.f32.gmra.mrb[32].mxu0 %v822_v26  ;;  %1817 = vmatprep.mubr.f32.mxu1 %v827_v36  ;;  %v755_v26 = vadd.f32 1.0, %v2997_v57  ;;  %v850_v42 = vmul.f32 %v750_v47, %v450_v35 }
 0x163   : > { %1429 = vmatprep.mubr.f32.mxu0 %v827_v36  ;;  %v2999_v15 = vpop.eup %2998 }
 0x164   : > { %v754_v28 = vadd.f32 1.0, %v2999_v15  ;;  %v855_v59 = vmul.f32 %v755_v26, %v455_v29 }
 0x165   : > { %1818 = vmatmul.mubr.f32.gmra.mrb[34].mxu1 %v826_v40 }
 0x166   : > { %1430 = vmatmul.mubr.f32.gmra.mrb[34].mxu0 %v826_v40  ;;  %1822 = vmatprep.mubr.f32.mxu1 %v831_v44  ;;  %v854_v36 = vmul.f32 %v754_v28, %v454_v37 }
 0x167   : > { %1435 = vmatprep.mubr.f32.mxu0 %v831_v44 }
 0x169   : > { %1823 = vmatmul.mubr.f32.gmra.mrb[36].mxu1 %v830_v63 }
 0x16a   : > { %1436 = vmatmul.mubr.f32.gmra.mrb[36].mxu0 %v830_v63  ;;  %1827 = vmatprep.mubr.f32.mxu1 %v835_v38 }
 0x16b   : > { %1441 = vmatprep.mubr.f32.mxu0 %v835_v38 }
 0x16d   : > { %1828 = vmatmul.mubr.f32.gmra.mrb[38].mxu1 %v834_v51 }
 0x16e   : > { %1442 = vmatmul.mubr.f32.gmra.mrb[38].mxu0 %v834_v51  ;;  %1832 = vmatprep.mubr.f32.mxu1 %v839_v2 }
 0x16f   : > { %1447 = vmatprep.mubr.f32.mxu0 %v839_v2 }
 0x171   : > { %1833 = vmatmul.mubr.f32.gmra.mrb[40].mxu1 %v838_v53 }
 0x172   : > { %1448 = vmatmul.mubr.f32.gmra.mrb[40].mxu0 %v838_v53  ;;  %1837 = vmatprep.mubr.f32.mxu1 %v843_v23 }
 0x173   : > { %1453 = vmatprep.mubr.f32.mxu0 %v843_v23 }
 0x175   : > { %1838 = vmatmul.mubr.f32.gmra.mrb[42].mxu1 %v842_v1 }
 0x176   : > { %1454 = vmatmul.mubr.f32.gmra.mrb[42].mxu0 %v842_v1  ;;  %1842 = vmatprep.mubr.f32.mxu1 %v847_v16 }
 0x177   : > { %1459 = vmatprep.mubr.f32.mxu0 %v847_v16 }
 0x179   : > { %1843 = vmatmul.mubr.f32.gmra.mrb[44].mxu1 %v846_v21 }
 0x17a   : > { %1460 = vmatmul.mubr.f32.gmra.mrb[44].mxu0 %v846_v21  ;;  %1847 = vmatprep.mubr.f32.mxu1 %v851_v24 }
 0x17b   : > { %1465 = vmatprep.mubr.f32.mxu0 %v851_v24 }
 0x17d   : > { %1848 = vmatmul.mubr.f32.gmra.mrb[46].mxu1 %v850_v42 }
 0x17e   : > { %1466 = vmatmul.mubr.f32.gmra.mrb[46].mxu0 %v850_v42  ;;  %1852 = vmatprep.mubr.f32.mxu1 %v855_v59 }
 0x17f   : > { %1471 = vmatprep.mubr.f32.mxu0 %v855_v59 }
 0x181   : > { %1853 = vmatmul.mubr.f32.gmra.mrb[48].mxu1 %v854_v36 }
 0x182   : > { %1472 = vmatmul.mubr.f32.gmra.mrb[48].mxu0 %v854_v36 }
 0x1f4   : > { %v4112_v30 = vpop.f32.mrb[0].mxu1 }
 0x1f5   : > { %v4114_v45 = vpop.f32.mrb[0].mxu0  ;;  %v1736_v25 = vpop.f32.mrb[1].mxu1 }
 0x1f6   : > { %v4116_v5 = vpop.f32.mrb[1].mxu0 }
 0x1f8   : > { %v4118_v33 = vpop.f32.mrb[2].mxu1 }
 0x1f9   : > { %4564 = vst [vmem:[#allocation13_spill] sm:$0xff] %v4118_v33  ;;  %v4120_v52 = vpop.f32.mrb[2].mxu0  ;;  %v1741_v40 = vpop.f32.mrb[3].mxu1 }
 0x1fa   : > { %4565 = vst [vmem:[#allocation14_spill] sm:$0xff] %v4120_v52  ;;  %v4122_v56 = vpop.f32.mrb[3].mxu0 }
 0x1fb   : > { %4566 = vst [vmem:[#allocation15_spill] sm:$0xff] %v4122_v56 }
 0x1fc   : > { %v4124_v41 = vpop.f32.mrb[4].mxu1 }
 0x1fd   : > { %v4126_v48 = vpop.f32.mrb[4].mxu0  ;;  %v1746_v31 = vpop.f32.mrb[5].mxu1 }
 0x1fe   : > { %v4128_v44 = vpop.f32.mrb[5].mxu0 }
 0x200   : > { %v4130_v54 = vpop.f32.mrb[6].mxu1 }
 0x201   : > { %v4132_v60 = vpop.f32.mrb[6].mxu0  ;;  %v1751_v43 = vpop.f32.mrb[7].mxu1 }
 0x202   : > { %v4134_v10 = vpop.f32.mrb[7].mxu0 }
 0x204   : > { %v4136_v46 = vpop.f32.mrb[8].mxu1 }
 0x205   : > { %v4138_v6 = vpop.f32.mrb[8].mxu0  ;;  %v1756_v63 = vpop.f32.mrb[9].mxu1 }
 0x206   : > { %v4140_v58 = vpop.f32.mrb[9].mxu0 }
 0x208   : > { %v4142_v0 = vpop.f32.mrb[10].mxu1 }
 0x209   : > { %v4144_v61 = vpop.f32.mrb[10].mxu0  ;;  %v1761_v55 = vpop.f32.mrb[11].mxu1 }
 0x20a   : > { %v4146_v38 = vpop.f32.mrb[11].mxu0 }
 0x20c   : > { %v4148_v19 = vpop.f32.mrb[12].mxu1 }
 0x20d   : > { %v4150_v49 = vpop.f32.mrb[12].mxu0  ;;  %v1766_v3 = vpop.f32.mrb[13].mxu1 }
 0x20e   : > { %v4152_v39 = vpop.f32.mrb[13].mxu0 }
 0x210   : > { %v4154_v51 = vpop.f32.mrb[14].mxu1 }
 0x211   : > { %v4156_v62 = vpop.f32.mrb[14].mxu0  ;;  %v1771_v27 = vpop.f32.mrb[15].mxu1 }
 0x212   : > { %v4158_v14 = vpop.f32.mrb[15].mxu0 }
 0x214   : > { %v4160_v2 = vpop.f32.mrb[16].mxu1 }
 0x215   : > { %v4162_v8 = vpop.f32.mrb[16].mxu0  ;;  %v1776_v4 = vpop.f32.mrb[17].mxu1 }
 0x216   : > { %v4164_v18 = vpop.f32.mrb[17].mxu0 }
 0x218   : > { %v4166_v53 = vpop.f32.mrb[18].mxu1 }
 0x219   : > { %v4168_v11 = vpop.f32.mrb[18].mxu0  ;;  %v1781_v7 = vpop.f32.mrb[19].mxu1 }
 0x21a   : > { %v4170_v9 = vpop.f32.mrb[19].mxu0 }
 0x21c   : > { %v4172_v23 = vpop.f32.mrb[20].mxu1 }
 0x21d   : > { %v4174_v22 = vpop.f32.mrb[20].mxu0  ;;  %v1786_v50 = vpop.f32.mrb[21].mxu1 }
 0x21e   : > { %v4176_v12 = vpop.f32.mrb[21].mxu0 }
 0x220   : > { %v4178_v1 = vpop.f32.mrb[22].mxu1 }
 0x221   : > { %v4180_v20 = vpop.f32.mrb[22].mxu0  ;;  %v1791_v13 = vpop.f32.mrb[23].mxu1 }
 0x222   : > { %v4182_v32 = vpop.f32.mrb[23].mxu0 }
 0x224   : > { %v4184_v16 = vpop.f32.mrb[24].mxu1 }
 0x225   : > { %v4186_v17 = vpop.f32.mrb[24].mxu0  ;;  %v1796_v34 = vpop.f32.mrb[25].mxu1 }
 0x226   : > { %v4188_v57 = vpop.f32.mrb[25].mxu0 }
 0x228   : > { %v4190_v21 = vpop.f32.mrb[26].mxu1 }
 0x229   : > { %v4192_v35 = vpop.f32.mrb[26].mxu0  ;;  %v1801_v47 = vpop.f32.mrb[27].mxu1 }
 0x22a   : > { %v4194_v15 = vpop.f32.mrb[27].mxu0 }
 0x22c   : > { %v4196_v24 = vpop.f32.mrb[28].mxu1 }
 0x22d   : > { %v4198_v29 = vpop.f32.mrb[28].mxu0  ;;  %v1806_v26 = vpop.f32.mrb[29].mxu1 }
 0x22e   : > { %v4200_v42 = vpop.f32.mrb[29].mxu0 }
 0x230   : > { %v4202_v37 = vpop.f32.mrb[30].mxu1 }
 0x231   : > { %4567 = vst [vmem:[#allocation16_spill] sm:$0xff] %v4202_v37  ;;  %v4204_v28 = vpop.f32.mrb[30].mxu0  ;;  %v1811_v59 = vpop.f32.mrb[31].mxu1 }
 0x232   : > { %4568 = vst [vmem:[#allocation17_spill] sm:$0xff] %v4204_v28  ;;  %v4206_v36 = vpop.f32.mrb[31].mxu0 }
 0x233   : > { %4569 = vst [vmem:[#allocation18_spill] sm:$0xff] %v4206_v36 }
 0x234   : > { %v4208_v25 = vpop.f32.mrb[32].mxu1 }
 0x235   : > { %4570 = vst [vmem:[#allocation19_spill] sm:$0xff] %v4208_v25  ;;  %v4210_v40 = vpop.f32.mrb[32].mxu0  ;;  %v1816_v31 = vpop.f32.mrb[33].mxu1 }
 0x236   : > { %4571 = vst [vmem:[#allocation20_spill] sm:$0xff] %v4210_v40  ;;  %v4212_v43 = vpop.f32.mrb[33].mxu0 }
 0x237   : > { %4572 = vst [vmem:[#allocation21_spill] sm:$0xff] %v4212_v43 }
 0x238   : > { %v4214_v63 = vpop.f32.mrb[34].mxu1 }
 0x239   : > { %4573 = vst [vmem:[#allocation22_spill] sm:$0xff] %v4214_v63  ;;  %v4216_v55 = vpop.f32.mrb[34].mxu0  ;;  %v1821_v3 = vpop.f32.mrb[35].mxu1 }
 0x23a   : > { %4574 = vst [vmem:[#allocation23_spill] sm:$0xff] %v4216_v55  ;;  %v4218_v27 = vpop.f32.mrb[35].mxu0 }
 0x23b   : > { %4575 = vst [vmem:[#allocation24_spill] sm:$0xff] %v4218_v27 }
 0x23c   : > { %v4220_v4 = vpop.f32.mrb[36].mxu1 }
 0x23d   : > { %4576 = vst [vmem:[#allocation25_spill] sm:$0xff] %v4220_v4  ;;  %v4222_v7 = vpop.f32.mrb[36].mxu0  ;;  %v1826_v50 = vpop.f32.mrb[37].mxu1 }
 0x23e   : > { %4577 = vst [vmem:[#allocation26_spill] sm:$0xff] %v4222_v7  ;;  %v4224_v13 = vpop.f32.mrb[37].mxu0 }
 0x23f   : > { %4578 = vst [vmem:[#allocation27_spill] sm:$0xff] %v4224_v13 }
 0x240   : > { %v4226_v34 = vpop.f32.mrb[38].mxu1 }
 0x241   : > { %4579 = vst [vmem:[#allocation28_spill] sm:$0xff] %v4226_v34  ;;  %v4228_v47 = vpop.f32.mrb[38].mxu0  ;;  %v1831_v26 = vpop.f32.mrb[39].mxu1 }
 0x242   : > { %4580 = vst [vmem:[#allocation29_spill] sm:$0xff] %v4228_v47  ;;  %v4230_v59 = vpop.f32.mrb[39].mxu0 }
 0x243   : > { %4581 = vst [vmem:[#allocation30_spill] sm:$0xff] %v4230_v59 }
 0x244   : > { %v4232_v31 = vpop.f32.mrb[40].mxu1 }
 0x245   : > { %4582 = vst [vmem:[#allocation31_spill] sm:$0xff] %v4232_v31  ;;  %v4234_v63 = vpop.f32.mrb[40].mxu0  ;;  %v1836_v3 = vpop.f32.mrb[41].mxu1 }
 0x246   : > { %4583 = vst [vmem:[#allocation32_spill] sm:$0xff] %v4234_v63  ;;  %v4236_v27 = vpop.f32.mrb[41].mxu0 }
 0x247   : > { %4584 = vst [vmem:[#allocation33_spill] sm:$0xff] %v4236_v27 }
 0x248   : > { %v4238_v4 = vpop.f32.mrb[42].mxu1 }
 0x249   : > { %4585 = vst [vmem:[#allocation34_spill] sm:$0xff] %v4238_v4  ;;  %v4240_v7 = vpop.f32.mrb[42].mxu0  ;;  %v1841_v50 = vpop.f32.mrb[43].mxu1 }
 0x24a   : > { %4586 = vst [vmem:[#allocation35_spill] sm:$0xff] %v4240_v7  ;;  %v4242_v13 = vpop.f32.mrb[43].mxu0 }
 0x24b   : > { %4587 = vst [vmem:[#allocation36_spill] sm:$0xff] %v4242_v13 }
 0x24c   : > { %v4244_v34 = vpop.f32.mrb[44].mxu1 }
 0x24d   : > { %4588 = vst [vmem:[#allocation37_spill] sm:$0xff] %v4244_v34  ;;  %v4246_v47 = vpop.f32.mrb[44].mxu0  ;;  %v1846_v26 = vpop.f32.mrb[45].mxu1 }
 0x24e   : > { %4589 = vst [vmem:[#allocation38_spill] sm:$0xff] %v4246_v47  ;;  %v4248_v59 = vpop.f32.mrb[45].mxu0  ;;  %v1864_v26 = vlaneseq (!%p2378_p3) }
 0x24f   : > { %4590 = vst [vmem:[#allocation39_spill] sm:$0xff] %v4248_v59  ;;  %v1862_v59 = vld [vmem:[#allocation7] sm:$0x7] (!%p2378_p3) }
 0x250   : > { %v4250_v31 = vpop.f32.mrb[46].mxu1  ;;  %v1865_v34 = vshrl.u32 (!%p2378_p3), %v1864_v26, 7 }
 0x251   : > { %4591 = vst [vmem:[#allocation40_spill] sm:$0xff] %v4250_v31  ;;  %v4252_v63 = vpop.f32.mrb[46].mxu0  ;;  %v1851_v3 = vpop.f32.mrb[47].mxu1  ;;  %1861 = sbr.rel (%p2378_p3) target bundleno = 638 (0x27e), region = 48 }
 0x252   : > { %4592 = vst [vmem:[#allocation41_spill] sm:$0xff] %v4252_v63  ;;  %v4254_v27 = vpop.f32.mrb[47].mxu0  ;;  %v1866_v47 = vsub.s32 (!%p2378_p3), 0, %v1865_v34  ;;  %v1870_v31 = vsub.s32 (!%p2378_p3), 1, %v1865_v34  ;;  %v1874_v55 = vsub.s32 (!%p2378_p3), 2, %v1865_v34 }
 0x253   : > { %4593 = vst [vmem:[#allocation42_spill] sm:$0xff] %v4254_v27 }
 0x254   : > { %v4256_v4 = vpop.f32.mrb[48].mxu1  ;;  %v4263_v63 = vrot.slane (!%p2378_p3), %v1862_v59, %v1866_v47  ;;  %v4265_v3 = vrot.slane (!%p2378_p3), %v1862_v59, %v1870_v31  ;;  %v4267_v27 = vrot.slane (!%p2378_p3), %v1862_v59, %v1874_v55 }
 0x255   : > { %4594 = vst [vmem:[#allocation43_spill] sm:$0xff] %v4256_v4  ;;  %v4258_v7 = vpop.f32.mrb[48].mxu0  ;;  %v1856_v50 = vpop.f32.mrb[49].mxu1 }
 0x256   : > { %v4260_v13 = vpop.f32.mrb[49].mxu0  ;;  %v1879_v50 = vadd.f32 (!%p2378_p3), %v4263_v63, %v4114_v45  ;;  %v1880_v4 = vadd.f32 (!%p2378_p3), %v4265_v3, %v4116_v5  ;;  %v1882_v26 = vadd.f32 (!%p2378_p3), %v4263_v63, %v4120_v52  ;;  %v1883_v34 = vadd.f32 (!%p2378_p3), %v4265_v3, %v4122_v56 }
 0x257   : > { %4595 = vst [vmem:[#allocation44_spill] sm:$0xff] %v4260_v13  ;;  %v1881_v13 = vadd.f32 (!%p2378_p3), %v4267_v27, %v4112_v30  ;;  %v1884_v47 = vadd.f32 (!%p2378_p3), %v4267_v27, %v4118_v33  ;;  %v1885_v55 = vadd.f32 (!%p2378_p3), %v4263_v63, %v4126_v48  ;;  %v1886_v59 = vadd.f32 (!%p2378_p3), %v4265_v3, %v4128_v44 }
 0x258   : > { %1954 = vst [vmem:[#allocation8] sm:$0xff] %v1879_v50  ;;  %1955 = vst [vmem:[#allocation8 + $0x8] sm:$0xff] %v1880_v4  ;;  %v1887_v31 = vadd.f32 %v4267_v27, %v4124_v41  ;;  %v1888_v52 = vadd.f32 %v4263_v63, %v4132_v60  ;;  %v1889_v56 = vadd.f32 %v4265_v3, %v4134_v10 }
 0x259   : > { %1956 = vst [vmem:[#allocation8 + $0x10] sm:$0xff] %v1881_v13  ;;  %1957 = vst [vmem:[#allocation8 + $0x18] sm:$0xff] %v1882_v26  ;;  %v1890_v33 = vadd.f32 %v4267_v27, %v4130_v54  ;;  %v1891_v4 = vadd.f32 %v4263_v63, %v4138_v6  ;;  %v1892_v13 = vadd.f32 %v4265_v3, %v4140_v58 }
 0x25a   : > { %1958 = vst [vmem:[#allocation8 + $0x20] sm:$0xff] %v1883_v34  ;;  %1959 = vst [vmem:[#allocation8 + $0x28] sm:$0xff] %v1884_v47  ;;  %v1893_v50 = vadd.f32 %v4267_v27, %v4136_v46  ;;  %v1894_v26 = vadd.f32 %v4263_v63, %v4144_v61  ;;  %v1895_v34 = vadd.f32 %v4265_v3, %v4146_v38 }
 0x25b   : > { %1960 = vst [vmem:[#allocation8 + $0x30] sm:$0xff] %v1885_v55  ;;  %1961 = vst [vmem:[#allocation8 + $0x38] sm:$0xff] %v1886_v59  ;;  %v1896_v47 = vadd.f32 %v4267_v27, %v4142_v0  ;;  %v1897_v55 = vadd.f32 %v4263_v63, %v4150_v49  ;;  %v1898_v59 = vadd.f32 %v4265_v3, %v4152_v39 }
 0x25c   : > { %1962 = vst [vmem:[#allocation8 + $0x40] sm:$0xff] %v1887_v31  ;;  %1963 = vst [vmem:[#allocation8 + $0x48] sm:$0xff] %v1888_v52  ;;  %v1899_v52 = vadd.f32 %v4267_v27, %v4148_v19  ;;  %v1902_v31 = vadd.f32 %v4267_v27, %v4154_v51 }
 0x25d   : > { %1964 = vst [vmem:[#allocation8 + $0x50] sm:$0xff] %v1889_v56  ;;  %1965 = vst [vmem:[#allocation8 + $0x58] sm:$0xff] %v1890_v33  ;;  %v1900_v33 = vadd.f32 %v4263_v63, %v4156_v62  ;;  %v1901_v56 = vadd.f32 %v4265_v3, %v4158_v14 }
 0x25e   : > { %1966 = vst [vmem:[#allocation8 + $0x60] sm:$0xff] %v1891_v4  ;;  %1967 = vst [vmem:[#allocation8 + $0x68] sm:$0xff] %v1892_v13  ;;  %v1903_v4 = vadd.f32 %v4263_v63, %v4162_v8  ;;  %v1904_v13 = vadd.f32 %v4265_v3, %v4164_v18 }
 0x25f   : > { %1968 = vst [vmem:[#allocation8 + $0x70] sm:$0xff] %v1893_v50  ;;  %1969 = vst [vmem:[#allocation8 + $0x78] sm:$0xff] %v1894_v26  ;;  %v1905_v50 = vadd.f32 %v4267_v27, %v4160_v2  ;;  %v1906_v26 = vadd.f32 %v4263_v63, %v4168_v11 }
 0x260   : > { %1970 = vst [vmem:[#allocation8 + $0x80] sm:$0xff] %v1895_v34  ;;  %1971 = vst [vmem:[#allocation8 + $0x88] sm:$0xff] %v1896_v47  ;;  %v1907_v34 = vadd.f32 %v4265_v3, %v4170_v9  ;;  %v1908_v47 = vadd.f32 %v4267_v27, %v4166_v53 }
 0x261   : > { %1972 = vst [vmem:[#allocation8 + $0x90] sm:$0xff] %v1897_v55  ;;  %1973 = vst [vmem:[#allocation8 + $0x98] sm:$0xff] %v1898_v59  ;;  %v1909_v55 = vadd.f32 %v4263_v63, %v4174_v22  ;;  %v1910_v59 = vadd.f32 %v4265_v3, %v4176_v12 }
 0x262   : > { %1974 = vst [vmem:[#allocation8 + $0xa0] sm:$0xff] %v1899_v52  ;;  %1975 = vst [vmem:[#allocation8 + $0xa8] sm:$0xff] %v1900_v33  ;;  %v1911_v52 = vadd.f32 %v4267_v27, %v4172_v23  ;;  %v1912_v33 = vadd.f32 %v4263_v63, %v4180_v20 }
 0x263   : > { %1976 = vst [vmem:[#allocation8 + $0xb0] sm:$0xff] %v1901_v56  ;;  %1977 = vst [vmem:[#allocation8 + $0xb8] sm:$0xff] %v1902_v31  ;;  %v1913_v56 = vadd.f32 %v4265_v3, %v4182_v32  ;;  %v1914_v31 = vadd.f32 %v4267_v27, %v4178_v1 }
 0x264   : > { %1978 = vst [vmem:[#allocation8 + $0xc0] sm:$0xff] %v1903_v4  ;;  %1979 = vst [vmem:[#allocation8 + $0xc8] sm:$0xff] %v1904_v13  ;;  %v1915_v4 = vadd.f32 %v4263_v63, %v4186_v17  ;;  %v1916_v13 = vadd.f32 %v4265_v3, %v4188_v57 }
 0x265   : > { %1980 = vst [vmem:[#allocation8 + $0xd0] sm:$0xff] %v1905_v50  ;;  %1981 = vst [vmem:[#allocation8 + $0xd8] sm:$0xff] %v1906_v26  ;;  %v1917_v50 = vadd.f32 %v4267_v27, %v4184_v16  ;;  %v1918_v26 = vadd.f32 %v4263_v63, %v4192_v35 }
 0x266   : > { %1982 = vst [vmem:[#allocation8 + $0xe0] sm:$0xff] %v1907_v34  ;;  %1983 = vst [vmem:[#allocation8 + $0xe8] sm:$0xff] %v1908_v47  ;;  %v1919_v34 = vadd.f32 %v4265_v3, %v4194_v15  ;;  %v1920_v47 = vadd.f32 %v4267_v27, %v4190_v21 }
 0x267   : > { %1984 = vst [vmem:[#allocation8 + $0xf0] sm:$0xff] %v1909_v55  ;;  %1985 = vst [vmem:[#allocation8 + $0xf8] sm:$0xff] %v1910_v59  ;;  %v1921_v55 = vadd.f32 %v4263_v63, %v4198_v29  ;;  %v1922_v59 = vadd.f32 %v4265_v3, %v4200_v42 }
 0x268   : > { %1986 = vst [vmem:[#allocation8 + $0x100] sm:$0xff] %v1911_v52  ;;  %1987 = vst [vmem:[#allocation8 + $0x108] sm:$0xff] %v1912_v33  ;;  %v1923_v52 = vadd.f32 %v4267_v27, %v4196_v24  ;;  %v1924_v33 = vadd.f32 %v4263_v63, %v4204_v28 }
 0x269   : > { %1988 = vst [vmem:[#allocation8 + $0x110] sm:$0xff] %v1913_v56  ;;  %1989 = vst [vmem:[#allocation8 + $0x118] sm:$0xff] %v1914_v31  ;;  %v1925_v56 = vadd.f32 %v4265_v3, %v4206_v36  ;;  %v1926_v31 = vadd.f32 %v4267_v27, %v4202_v37 }
 0x26a   : > { %1990 = vst [vmem:[#allocation8 + $0x120] sm:$0xff] %v1915_v4  ;;  %1991 = vst [vmem:[#allocation8 + $0x128] sm:$0xff] %v1916_v13  ;;  %v1927_v4 = vadd.f32 %v4263_v63, %v4210_v40  ;;  %v1928_v13 = vadd.f32 %v4265_v3, %v4212_v43  ;;  %v4599_v40 = vld [vmem:[#allocation26_spill] sm:$0xff]  ;;  %v4600_v43 = vld [vmem:[#allocation27_spill] sm:$0xff] }
 0x26b   : > { %1992 = vst [vmem:[#allocation8 + $0x130] sm:$0xff] %v1917_v50  ;;  %1993 = vst [vmem:[#allocation8 + $0x138] sm:$0xff] %v1918_v26  ;;  %v1929_v50 = vadd.f32 %v4267_v27, %v4208_v25  ;;  %v4596_v26 = vld [vmem:[#allocation23_spill] sm:$0xff]  ;;  %v1933_v37 = vadd.f32 %v4263_v63, %v4599_v40  ;;  %v1934_v36 = vadd.f32 %v4265_v3, %v4600_v43  ;;  %v4605_v40 = vld [vmem:[#allocation32_spill] sm:$0xff] }
 0x26c   : > { %1994 = vst [vmem:[#allocation8 + $0x140] sm:$0xff] %v1919_v34  ;;  %1995 = vst [vmem:[#allocation8 + $0x148] sm:$0xff] %v1920_v47  ;;  %v1930_v28 = vadd.f32 %v4263_v63, %v4596_v26  ;;  %v4597_v34 = vld [vmem:[#allocation24_spill] sm:$0xff]  ;;  %v4603_v26 = vld [vmem:[#allocation30_spill] sm:$0xff]  ;;  %v1939_v43 = vadd.f32 %v4263_v63, %v4605_v40 }
 0x26d   : > { %1996 = vst [vmem:[#allocation8 + $0x150] sm:$0xff] %v1921_v55  ;;  %1997 = vst [vmem:[#allocation8 + $0x158] sm:$0xff] %v1922_v59  ;;  %v1931_v47 = vadd.f32 %v4265_v3, %v4597_v34  ;;  %v4598_v55 = vld [vmem:[#allocation22_spill] sm:$0xff]  ;;  %v1937_v34 = vadd.f32 %v4265_v3, %v4603_v26  ;;  %v4612_v40 = vld [vmem:[#allocation39_spill] sm:$0xff] }
 0x26e   : > { %1998 = vst [vmem:[#allocation8 + $0x160] sm:$0xff] %v1923_v52  ;;  %1999 = vst [vmem:[#allocation8 + $0x168] sm:$0xff] %v1924_v33  ;;  %v1932_v59 = vadd.f32 %v4267_v27, %v4598_v55  ;;  %v4601_v52 = vld [vmem:[#allocation25_spill] sm:$0xff]  ;;  %v4604_v55 = vld [vmem:[#allocation28_spill] sm:$0xff] }
 0x26f   : > { %2000 = vst [vmem:[#allocation8 + $0x170] sm:$0xff] %v1925_v56  ;;  %2001 = vst [vmem:[#allocation8 + $0x178] sm:$0xff] %v1926_v31  ;;  %v1935_v33 = vadd.f32 %v4267_v27, %v4601_v52  ;;  %v4602_v56 = vld [vmem:[#allocation29_spill] sm:$0xff]  ;;  %v1938_v25 = vadd.f32 %v4267_v27, %v4604_v55  ;;  %v4608_v52 = vld [vmem:[#allocation35_spill] sm:$0xff] }
 0x270   : > { %2002 = vst [vmem:[#allocation8 + $0x180] sm:$0xff] %v1927_v4  ;;  %2003 = vst [vmem:[#allocation8 + $0x188] sm:$0xff] %v1928_v13  ;;  %v1936_v31 = vadd.f32 %v4263_v63, %v4602_v56  ;;  %v4607_v13 = vld [vmem:[#allocation31_spill] sm:$0xff]  ;;  %v1942_v56 = vadd.f32 %v4263_v63, %v4608_v52  ;;  %v4611_v26 = vld [vmem:[#allocation38_spill] sm:$0xff] }
 0x271   : > { %2004 = vst [vmem:[#allocation8 + $0x190] sm:$0xff] %v1929_v50  ;;  %2005 = vst [vmem:[#allocation8 + $0x198] sm:$0xff] %v1930_v28  ;;  %v4606_v28 = vld [vmem:[#allocation33_spill] sm:$0xff]  ;;  %v1941_v50 = vadd.f32 %v4267_v27, %v4607_v13  ;;  %v1945_v55 = vadd.f32 %v4263_v63, %v4611_v26  ;;  %v4615_v13 = vld [vmem:[#allocation42_spill] sm:$0xff] }
 0x272   : > { %2006 = vst [vmem:[#allocation8 + $0x1a0] sm:$0xff] %v1931_v47  ;;  %2007 = vst [vmem:[#allocation8 + $0x1a8] sm:$0xff] %v1932_v59  ;;  %v1940_v4 = vadd.f32 %v4265_v3, %v4606_v28  ;;  %v4609_v47 = vld [vmem:[#allocation36_spill] sm:$0xff]  ;;  %v1946_v28 = vadd.f32 %v4265_v3, %v4612_v40  ;;  %v1949_v52 = vadd.f32 %v4265_v3, %v4615_v13 }
 0x273   : > { %2008 = vst [vmem:[#allocation8 + $0x1b0] sm:$0xff] %v1933_v37  ;;  %2009 = vst [vmem:[#allocation8 + $0x1b8] sm:$0xff] %v1934_v36  ;;  %v1943_v37 = vadd.f32 %v4265_v3, %v4609_v47  ;;  %v4610_v36 = vld [vmem:[#allocation34_spill] sm:$0xff]  ;;  %v4616_v47 = vld [vmem:[#allocation40_spill] sm:$0xff] }
 0x274   : > { %2010 = vst [vmem:[#allocation8 + $0x1c0] sm:$0xff] %v1935_v33  ;;  %2011 = vst [vmem:[#allocation8 + $0x1c8] sm:$0xff] %v1936_v31  ;;  %v1944_v59 = vadd.f32 %v4267_v27, %v4610_v36  ;;  %v4613_v33 = vld [vmem:[#allocation37_spill] sm:$0xff]  ;;  %v1950_v36 = vadd.f32 %v4267_v27, %v4616_v47 }
 0x275   : > { %2012 = vst [vmem:[#allocation8 + $0x1d0] sm:$0xff] %v1937_v34  ;;  %2013 = vst [vmem:[#allocation8 + $0x1d8] sm:$0xff] %v1938_v25  ;;  %v1947_v31 = vadd.f32 %v4267_v27, %v4613_v33  ;;  %v4614_v25 = vld [vmem:[#allocation41_spill] sm:$0xff] }
 0x276   : > { %2014 = vst [vmem:[#allocation8 + $0x1e0] sm:$0xff] %v1939_v43  ;;  %2015 = vst [vmem:[#allocation8 + $0x1e8] sm:$0xff] %v1940_v4  ;;  %v1948_v34 = vadd.f32 %v4263_v63, %v4614_v25  ;;  %v1951_v43 = vadd.f32 %v4263_v63, %v4258_v7  ;;  %v4617_v4 = vld [vmem:[#allocation44_spill] sm:$0xff] }
 0x277   : > { %2016 = vst [vmem:[#allocation8 + $0x1f0] sm:$0xff] %v1941_v50  ;;  %2017 = vst [vmem:[#allocation8 + $0x1f8] sm:$0xff] %v1942_v56  ;;  %v1952_v50 = vadd.f32 %v4265_v3, %v4617_v4  ;;  %v4618_v56 = vld [vmem:[#allocation43_spill] sm:$0xff] }
 0x278   : > { %2018 = vst [vmem:[#allocation8 + $0x200] sm:$0xff] %v1943_v37  ;;  %2019 = vst [vmem:[#allocation8 + $0x208] sm:$0xff] %v1944_v59  ;;  %v1953_v26 = vadd.f32 %v4267_v27, %v4618_v56 }
 0x279   : > { %2020 = vst [vmem:[#allocation8 + $0x210] sm:$0xff] %v1945_v55  ;;  %2021 = vst [vmem:[#allocation8 + $0x218] sm:$0xff] %v1946_v28 }
 0x27a   : > { %2022 = vst [vmem:[#allocation8 + $0x220] sm:$0xff] %v1947_v31  ;;  %2023 = vst [vmem:[#allocation8 + $0x228] sm:$0xff] %v1948_v34 }
 0x27b   : > { %2024 = vst [vmem:[#allocation8 + $0x230] sm:$0xff] %v1949_v52  ;;  %2025 = vst [vmem:[#allocation8 + $0x238] sm:$0xff] %v1950_v36 }
 0x27c   : > { %2026 = vst [vmem:[#allocation8 + $0x240] sm:$0xf] %v1951_v43  ;;  %2027 = vst [vmem:[#allocation8 + $0x248] sm:$0xf] %v1952_v50 }
 0x27d   : > { %2028 = vst [vmem:[#allocation8 + $0x250] sm:$0xf] %v1953_v26 }
 0x27e PF: > { %p2379_p6 = scmp.le.s32.totalorder %s3168_s15, 0 }
 0x27f   : > { %v2035_v63 = vld [vmem:[#allocation8 + $0x10] sm:$0xff] (!%p2379_p6)  ;;  %v2036_v40 = vld [vmem:[#allocation8 + $0x18] sm:$0xff] (!%p2379_p6)  ;;  %v2037_v28 = vld [vmem:[#allocation8 + $0x20] sm:$0xff] (!%p2379_p6) }
 0x280   : > { %2032 = sbr.rel (%p2379_p6) target bundleno = 687 (0x2af), region = 52  ;;  %v2110_v27 = vadd.f32 (!%p2379_p6), %v2035_v63, %v4112_v30  ;;  %v2038_v33 = vld [vmem:[#allocation8 + $0x28] sm:$0xff] (!%p2379_p6)  ;;  %v4619_v31 = vld [vmem:[#allocation14_spill] sm:$0xff] (!%p2379_p6)  ;;  %v4621_v52 = vld [vmem:[#allocation13_spill] sm:$0xff] (!%p2379_p6) }
 0x281   : > { %v2111_v25 = vadd.f32 (!%p2379_p6), %v2036_v40, %v4619_v31  ;;  %v4620_v34 = vld [vmem:[#allocation15_spill] sm:$0xff] (!%p2379_p6)  ;;  %v2113_v47 = vadd.f32 (!%p2379_p6), %v2038_v33, %v4621_v52  ;;  %v2039_v36 = vld [vmem:[#allocation8 + $0x30] sm:$0xff] (!%p2379_p6)  ;;  %v2040_v43 = vld [vmem:[#allocation8 + $0x38] sm:$0xff] (!%p2379_p6) }
 0x282   : > { %v2112_v13 = vadd.f32 (!%p2379_p6), %v2037_v28, %v4620_v34  ;;  %v2041_v4 = vld [vmem:[#allocation8 + $0x40] sm:$0xff] (!%p2379_p6)  ;;  %2185 = vst [vmem:[#allocation8 + $0x10] sm:$0xff] (!%p2379_p6), %v2110_v27  ;;  %v2042_v50 = vld [vmem:[#allocation8 + $0x48] sm:$0xff] (!%p2379_p6)  ;;  %v2043_v56 = vld [vmem:[#allocation8 + $0x50] sm:$0xff] (!%p2379_p6) }
 0x283   : > { %v2116_v30 = vadd.f32 (!%p2379_p6), %v2041_v4, %v4124_v41  ;;  %v2044_v26 = vld [vmem:[#allocation8 + $0x58] sm:$0xff] (!%p2379_p6)  ;;  %2186 = vst [vmem:[#allocation8 + $0x18] sm:$0xff] (!%p2379_p6), %v2111_v25  ;;  %2188 = vst [vmem:[#allocation8 + $0x28] sm:$0xff] (!%p2379_p6), %v2113_v47  ;;  %v2047_v27 = vld [vmem:[#allocation8 + $0x70] sm:$0xff] (!%p2379_p6) }
 0x284   : > { %2187 = vst [vmem:[#allocation8 + $0x20] sm:$0xff] (!%p2379_p6), %v2112_v13  ;;  %v2119_v63 = vadd.f32 (!%p2379_p6), %v2044_v26, %v4130_v54  ;;  %v2048_v40 = vld [vmem:[#allocation8 + $0x78] sm:$0xff] (!%p2379_p6)  ;;  %v2049_v28 = vld [vmem:[#allocation8 + $0x80] sm:$0xff] (!%p2379_p6)  ;;  %v2050_v33 = vld [vmem:[#allocation8 + $0x88] sm:$0xff] (!%p2379_p6) }
 0x285   : > { %v2033_v37 = vld [vmem:[#allocation8] sm:$0xff] (!%p2379_p6)  ;;  %v2034_v59 = vld [vmem:[#allocation8 + $0x8] sm:$0xff] (!%p2379_p6)  ;;  %2191 = vst [vmem:[#allocation8 + $0x40] sm:$0xff] (!%p2379_p6), %v2116_v30  ;;  %v2123_v54 = vadd.f32 (!%p2379_p6), %v2048_v40, %v4144_v61  ;;  %v2051_v31 = vld [vmem:[#allocation8 + $0x90] sm:$0xff] (!%p2379_p6) }
 0x286   : > { %v2108_v55 = vadd.f32 (!%p2379_p6), %v2033_v37, %v4114_v45  ;;  %v2109_v3 = vadd.f32 (!%p2379_p6), %v2034_v59, %v4116_v5  ;;  %v2114_v45 = vadd.f32 (!%p2379_p6), %v2039_v36, %v4126_v48  ;;  %v2115_v5 = vadd.f32 (!%p2379_p6), %v2040_v43, %v4128_v44  ;;  %2194 = vst [vmem:[#allocation8 + $0x58] sm:$0xff] (!%p2379_p6), %v2119_v63  ;;  %v2052_v25 = vld [vmem:[#allocation8 + $0x98] sm:$0xff] (!%p2379_p6)  ;;  %v2053_v34 = vld [vmem:[#allocation8 + $0xa0] sm:$0xff] (!%p2379_p6)  ;;  %v2054_v13 = vld [vmem:[#allocation8 + $0xa8] sm:$0xff] (!%p2379_p6) }
 0x287   : > { %v2117_v37 = vadd.f32 %v2042_v50, %v4132_v60  ;;  %v2118_v59 = vadd.f32 %v2043_v56, %v4134_v10  ;;  %v2122_v44 = vadd.f32 %v2047_v27, %v4136_v46  ;;  %v2124_v60 = vadd.f32 %v2049_v28, %v4146_v38  ;;  %v2055_v52 = vld [vmem:[#allocation8 + $0xb0] sm:$0xff]  ;;  %v2056_v47 = vld [vmem:[#allocation8 + $0xb8] sm:$0xff]  ;;  %2198 = vst [vmem:[#allocation8 + $0x78] sm:$0xff] %v2123_v54  ;;  %v2057_v36 = vld [vmem:[#allocation8 + $0xc0] sm:$0xff] }
 0x288   : > { %2183 = vst [vmem:[#allocation8] sm:$0xff] %v2108_v55  ;;  %2184 = vst [vmem:[#allocation8 + $0x8] sm:$0xff] %v2109_v3  ;;  %v2045_v55 = vld [vmem:[#allocation8 + $0x60] sm:$0xff]  ;;  %v2046_v3 = vld [vmem:[#allocation8 + $0x68] sm:$0xff]  ;;  %v2125_v10 = vadd.f32 %v2050_v33, %v4142_v0  ;;  %v2126_v46 = vadd.f32 %v2051_v31, %v4150_v49  ;;  %v2129_v0 = vadd.f32 %v2054_v13, %v4156_v62 }
 0x289   : > { %2189 = vst [vmem:[#allocation8 + $0x30] sm:$0xff] %v2114_v45  ;;  %2190 = vst [vmem:[#allocation8 + $0x38] sm:$0xff] %v2115_v5  ;;  %v2120_v41 = vadd.f32 %v2045_v55, %v4138_v6  ;;  %v2121_v48 = vadd.f32 %v2046_v3, %v4140_v58  ;;  %v2127_v6 = vadd.f32 %v2052_v25, %v4152_v39  ;;  %v2058_v43 = vld [vmem:[#allocation8 + $0xc8] sm:$0xff]  ;;  %v2059_v4 = vld [vmem:[#allocation8 + $0xd0] sm:$0xff] }
 0x28a   : > { %2192 = vst [vmem:[#allocation8 + $0x48] sm:$0xff] %v2117_v37  ;;  %2193 = vst [vmem:[#allocation8 + $0x50] sm:$0xff] %v2118_v59  ;;  %v2128_v58 = vadd.f32 %v2053_v34, %v4148_v19  ;;  %v2130_v61 = vadd.f32 %v2055_v52, %v4158_v14  ;;  %v2131_v38 = vadd.f32 %v2056_v47, %v4154_v51  ;;  %v2060_v45 = vld [vmem:[#allocation8 + $0xd8] sm:$0xff]  ;;  %v2061_v5 = vld [vmem:[#allocation8 + $0xe0] sm:$0xff] }
 0x28b   : > { %2195 = vst [vmem:[#allocation8 + $0x60] sm:$0xff] %v2120_v41  ;;  %2196 = vst [vmem:[#allocation8 + $0x68] sm:$0xff] %v2121_v48  ;;  %v2132_v19 = vadd.f32 %v2057_v36, %v4162_v8  ;;  %v2133_v49 = vadd.f32 %v2058_v43, %v4164_v18  ;;  %v2134_v39 = vadd.f32 %v2059_v4, %v4160_v2  ;;  %v2062_v30 = vld [vmem:[#allocation8 + $0xe8] sm:$0xff]  ;;  %v2063_v50 = vld [vmem:[#allocation8 + $0xf0] sm:$0xff] }
 0x28c   : > { %2197 = vst [vmem:[#allocation8 + $0x70] sm:$0xff] %v2122_v44  ;;  %2199 = vst [vmem:[#allocation8 + $0x80] sm:$0xff] %v2124_v60  ;;  %v2135_v51 = vadd.f32 %v2060_v45, %v4168_v11  ;;  %v2136_v62 = vadd.f32 %v2061_v5, %v4170_v9  ;;  %v2137_v14 = vadd.f32 %v2062_v30, %v4166_v53  ;;  %v2064_v56 = vld [vmem:[#allocation8 + $0xf8] sm:$0xff]  ;;  %v2065_v26 = vld [vmem:[#allocation8 + $0x100] sm:$0xff] }
 0x28d   : > { %2200 = vst [vmem:[#allocation8 + $0x88] sm:$0xff] %v2125_v10  ;;  %2201 = vst [vmem:[#allocation8 + $0x90] sm:$0xff] %v2126_v46  ;;  %v2138_v2 = vadd.f32 %v2063_v50, %v4174_v22  ;;  %v2139_v8 = vadd.f32 %v2064_v56, %v4176_v12  ;;  %v2140_v18 = vadd.f32 %v2065_v26, %v4172_v23  ;;  %v2066_v37 = vld [vmem:[#allocation8 + $0x108] sm:$0xff]  ;;  %v2067_v59 = vld [vmem:[#allocation8 + $0x110] sm:$0xff] }
 0x28e   : > { %2202 = vst [vmem:[#allocation8 + $0x98] sm:$0xff] %v2127_v6  ;;  %2203 = vst [vmem:[#allocation8 + $0xa0] sm:$0xff] %v2128_v58  ;;  %v2068_v63 = vld [vmem:[#allocation8 + $0x118] sm:$0xff]  ;;  %v2141_v53 = vadd.f32 %v2066_v37, %v4180_v20  ;;  %v2142_v11 = vadd.f32 %v2067_v59, %v4182_v32  ;;  %v2069_v55 = vld [vmem:[#allocation8 + $0x120] sm:$0xff] }
 0x28f   : > { %2204 = vst [vmem:[#allocation8 + $0xa8] sm:$0xff] %v2129_v0  ;;  %2205 = vst [vmem:[#allocation8 + $0xb0] sm:$0xff] %v2130_v61  ;;  %v2143_v9 = vadd.f32 %v2068_v63, %v4178_v1  ;;  %v2070_v3 = vld [vmem:[#allocation8 + $0x128] sm:$0xff]  ;;  %v2071_v27 = vld [vmem:[#allocation8 + $0x130] sm:$0xff]  ;;  %v2144_v23 = vadd.f32 %v2069_v55, %v4186_v17 }
 0x290   : > { %2206 = vst [vmem:[#allocation8 + $0xb8] sm:$0xff] %v2131_v38  ;;  %2207 = vst [vmem:[#allocation8 + $0xc0] sm:$0xff] %v2132_v19  ;;  %v2145_v22 = vadd.f32 %v2070_v3, %v4188_v57  ;;  %v2146_v12 = vadd.f32 %v2071_v27, %v4184_v16  ;;  %v2072_v41 = vld [vmem:[#allocation8 + $0x138] sm:$0xff]  ;;  %v2073_v48 = vld [vmem:[#allocation8 + $0x140] sm:$0xff] }
 0x291   : > { %2208 = vst [vmem:[#allocation8 + $0xc8] sm:$0xff] %v2133_v49  ;;  %2209 = vst [vmem:[#allocation8 + $0xd0] sm:$0xff] %v2134_v39  ;;  %v2074_v44 = vld [vmem:[#allocation8 + $0x148] sm:$0xff]  ;;  %v2147_v1 = vadd.f32 %v2072_v41, %v4192_v35  ;;  %v2148_v20 = vadd.f32 %v2073_v48, %v4194_v15  ;;  %v2075_v40 = vld [vmem:[#allocation8 + $0x150] sm:$0xff] }
 0x292   : > { %2210 = vst [vmem:[#allocation8 + $0xd8] sm:$0xff] %v2135_v51  ;;  %2211 = vst [vmem:[#allocation8 + $0xe0] sm:$0xff] %v2136_v62  ;;  %v2149_v32 = vadd.f32 %v2074_v44, %v4190_v21  ;;  %v2076_v28 = vld [vmem:[#allocation8 + $0x158] sm:$0xff]  ;;  %v2077_v33 = vld [vmem:[#allocation8 + $0x160] sm:$0xff]  ;;  %v2150_v16 = vadd.f32 %v2075_v40, %v4198_v29 }
 0x293   : > { %2212 = vst [vmem:[#allocation8 + $0xe8] sm:$0xff] %v2137_v14  ;;  %2213 = vst [vmem:[#allocation8 + $0xf0] sm:$0xff] %v2138_v2  ;;  %v2151_v17 = vadd.f32 %v2076_v28, %v4200_v42  ;;  %v2152_v57 = vadd.f32 %v2077_v33, %v4196_v24  ;;  %v2078_v54 = vld [vmem:[#allocation8 + $0x168] sm:$0xff]  ;;  %v2079_v60 = vld [vmem:[#allocation8 + $0x170] sm:$0xff] }
 0x294   : > { %2214 = vst [vmem:[#allocation8 + $0xf8] sm:$0xff] %v2139_v8  ;;  %2215 = vst [vmem:[#allocation8 + $0x100] sm:$0xff] %v2140_v18  ;;  %v2080_v10 = vld [vmem:[#allocation8 + $0x178] sm:$0xff]  ;;  %v4623_v15 = vld [vmem:[#allocation18_spill] sm:$0xff] }
 0x295   : > { %2216 = vst [vmem:[#allocation8 + $0x108] sm:$0xff] %v2141_v53  ;;  %2217 = vst [vmem:[#allocation8 + $0x110] sm:$0xff] %v2142_v11  ;;  %v4622_v35 = vld [vmem:[#allocation17_spill] sm:$0xff]  ;;  %v2154_v31 = vadd.f32 %v2079_v60, %v4623_v15  ;;  %v4624_v25 = vld [vmem:[#allocation16_spill] sm:$0xff] }
 0x296   : > { %2218 = vst [vmem:[#allocation8 + $0x118] sm:$0xff] %v2143_v9  ;;  %2219 = vst [vmem:[#allocation8 + $0x120] sm:$0xff] %v2144_v23  ;;  %v2153_v21 = vadd.f32 %v2078_v54, %v4622_v35  ;;  %v2155_v34 = vadd.f32 %v2080_v10, %v4624_v25  ;;  %v2081_v46 = vld [vmem:[#allocation8 + $0x180] sm:$0xff]  ;;  %v2082_v6 = vld [vmem:[#allocation8 + $0x188] sm:$0xff] }
 0x297   : > { %2220 = vst [vmem:[#allocation8 + $0x128] sm:$0xff] %v2145_v22  ;;  %2221 = vst [vmem:[#allocation8 + $0x130] sm:$0xff] %v2146_v12  ;;  %v2083_v58 = vld [vmem:[#allocation8 + $0x190] sm:$0xff]  ;;  %v4626_v42 = vld [vmem:[#allocation21_spill] sm:$0xff] }
 0x298   : > { %2222 = vst [vmem:[#allocation8 + $0x138] sm:$0xff] %v2147_v1  ;;  %2223 = vst [vmem:[#allocation8 + $0x140] sm:$0xff] %v2148_v20  ;;  %v4625_v29 = vld [vmem:[#allocation20_spill] sm:$0xff]  ;;  %v2157_v13 = vadd.f32 %v2082_v6, %v4626_v42  ;;  %v4627_v52 = vld [vmem:[#allocation19_spill] sm:$0xff] }
 0x299   : > { %2224 = vst [vmem:[#allocation8 + $0x148] sm:$0xff] %v2149_v32  ;;  %2225 = vst [vmem:[#allocation8 + $0x150] sm:$0xff] %v2150_v16  ;;  %v2156_v24 = vadd.f32 %v2081_v46, %v4625_v29  ;;  %v2158_v47 = vadd.f32 %v2083_v58, %v4627_v52  ;;  %v2084_v0 = vld [vmem:[#allocation8 + $0x198] sm:$0xff]  ;;  %v2085_v61 = vld [vmem:[#allocation8 + $0x1a0] sm:$0xff] }
 0x29a   : > { %2226 = vst [vmem:[#allocation8 + $0x158] sm:$0xff] %v2151_v17  ;;  %2227 = vst [vmem:[#allocation8 + $0x160] sm:$0xff] %v2152_v57  ;;  %v2086_v38 = vld [vmem:[#allocation8 + $0x1a8] sm:$0xff]  ;;  %v4629_v4 = vld [vmem:[#allocation24_spill] sm:$0xff] }
 0x29b   : > { %2228 = vst [vmem:[#allocation8 + $0x168] sm:$0xff] %v2153_v21  ;;  %2229 = vst [vmem:[#allocation8 + $0x170] sm:$0xff] %v2154_v31  ;;  %v4628_v36 = vld [vmem:[#allocation23_spill] sm:$0xff]  ;;  %v2160_v19 = vadd.f32 %v2085_v61, %v4629_v4  ;;  %v4630_v49 = vld [vmem:[#allocation22_spill] sm:$0xff] }
 0x29c   : > { %2230 = vst [vmem:[#allocation8 + $0x178] sm:$0xff] %v2155_v34  ;;  %v2159_v43 = vadd.f32 %v2084_v0, %v4628_v36  ;;  %v2161_v39 = vadd.f32 %v2086_v38, %v4630_v49  ;;  %v2087_v45 = vld [vmem:[#allocation8 + $0x1b0] sm:$0xff]  ;;  %v2088_v5 = vld [vmem:[#allocation8 + $0x1b8] sm:$0xff]  ;;  %v2089_v30 = vld [vmem:[#allocation8 + $0x1c0] sm:$0xff] }
 0x29d   : > { %2231 = vst [vmem:[#allocation8 + $0x180] sm:$0xff] %v2156_v24  ;;  %2232 = vst [vmem:[#allocation8 + $0x188] sm:$0xff] %v2157_v13  ;;  %v4631_v51 = vld [vmem:[#allocation26_spill] sm:$0xff]  ;;  %v4632_v14 = vld [vmem:[#allocation27_spill] sm:$0xff] }
 0x29e   : > { %2233 = vst [vmem:[#allocation8 + $0x190] sm:$0xff] %v2158_v47  ;;  %v2162_v62 = vadd.f32 %v2087_v45, %v4631_v51  ;;  %v2163_v50 = vadd.f32 %v2088_v5, %v4632_v14  ;;  %v4633_v56 = vld [vmem:[#allocation25_spill] sm:$0xff]  ;;  %v2090_v2 = vld [vmem:[#allocation8 + $0x1c8] sm:$0xff]  ;;  %v2091_v8 = vld [vmem:[#allocation8 + $0x1d0] sm:$0xff] }
 0x29f   : > { %v2164_v26 = vadd.f32 %v2089_v30, %v4633_v56  ;;  %v2092_v18 = vld [vmem:[#allocation8 + $0x1d8] sm:$0xff]  ;;  %2234 = vst [vmem:[#allocation8 + $0x198] sm:$0xff] %v2159_v43  ;;  %2235 = vst [vmem:[#allocation8 + $0x1a0] sm:$0xff] %v2160_v19  ;;  %v4635_v63 = vld [vmem:[#allocation30_spill] sm:$0xff] }
 0x2a0   : > { %2236 = vst [vmem:[#allocation8 + $0x1a8] sm:$0xff] %v2161_v39  ;;  %v4634_v37 = vld [vmem:[#allocation29_spill] sm:$0xff]  ;;  %v2166_v53 = vadd.f32 %v2091_v8, %v4635_v63  ;;  %v4636_v11 = vld [vmem:[#allocation28_spill] sm:$0xff]  ;;  %v2093_v55 = vld [vmem:[#allocation8 + $0x1e0] sm:$0xff] }
 0x2a1   : > { %v2165_v59 = vadd.f32 %v2090_v2, %v4634_v37  ;;  %v2167_v9 = vadd.f32 %v2092_v18, %v4636_v11  ;;  %v2094_v3 = vld [vmem:[#allocation8 + $0x1e8] sm:$0xff]  ;;  %v2095_v27 = vld [vmem:[#allocation8 + $0x1f0] sm:$0xff]  ;;  %2237 = vst [vmem:[#allocation8 + $0x1b0] sm:$0xff] %v2162_v62  ;;  %2238 = vst [vmem:[#allocation8 + $0x1b8] sm:$0xff] %v2163_v50 }
 0x2a2   : > { %2239 = vst [vmem:[#allocation8 + $0x1c0] sm:$0xff] %v2164_v26  ;;  %v4637_v23 = vld [vmem:[#allocation32_spill] sm:$0xff]  ;;  %v4638_v12 = vld [vmem:[#allocation33_spill] sm:$0xff]  ;;  %v4639_v48 = vld [vmem:[#allocation31_spill] sm:$0xff] }
 0x2a3   : > { %v2168_v22 = vadd.f32 %v2093_v55, %v4637_v23  ;;  %v2169_v41 = vadd.f32 %v2094_v3, %v4638_v12  ;;  %v2170_v44 = vadd.f32 %v2095_v27, %v4639_v48  ;;  %v2096_v1 = vld [vmem:[#allocation8 + $0x1f8] sm:$0xff]  ;;  %v2097_v20 = vld [vmem:[#allocation8 + $0x200] sm:$0xff]  ;;  %v2098_v32 = vld [vmem:[#allocation8 + $0x208] sm:$0xff]  ;;  %2240 = vst [vmem:[#allocation8 + $0x1c8] sm:$0xff] %v2165_v59 }
 0x2a4   : > { %2241 = vst [vmem:[#allocation8 + $0x1d0] sm:$0xff] %v2166_v53  ;;  %2242 = vst [vmem:[#allocation8 + $0x1d8] sm:$0xff] %v2167_v9  ;;  %v4640_v40 = vld [vmem:[#allocation35_spill] sm:$0xff]  ;;  %v4641_v33 = vld [vmem:[#allocation36_spill] sm:$0xff] }
 0x2a5   : > { %v2171_v28 = vadd.f32 %v2096_v1, %v4640_v40  ;;  %v2172_v16 = vadd.f32 %v2097_v20, %v4641_v33  ;;  %v4642_v17 = vld [vmem:[#allocation34_spill] sm:$0xff]  ;;  %v2099_v54 = vld [vmem:[#allocation8 + $0x210] sm:$0xff]  ;;  %v2100_v60 = vld [vmem:[#allocation8 + $0x218] sm:$0xff]  ;;  %2243 = vst [vmem:[#allocation8 + $0x1e0] sm:$0xff] %v2168_v22 }
 0x2a6   : > { %v2173_v57 = vadd.f32 %v2098_v32, %v4642_v17  ;;  %v2101_v10 = vld [vmem:[#allocation8 + $0x220] sm:$0xff]  ;;  %2244 = vst [vmem:[#allocation8 + $0x1e8] sm:$0xff] %v2169_v41  ;;  %2245 = vst [vmem:[#allocation8 + $0x1f0] sm:$0xff] %v2170_v44  ;;  %v4644_v15 = vld [vmem:[#allocation39_spill] sm:$0xff] }
 0x2a7   : > { %v4643_v35 = vld [vmem:[#allocation38_spill] sm:$0xff]  ;;  %v2175_v31 = vadd.f32 %v2100_v60, %v4644_v15  ;;  %v4645_v25 = vld [vmem:[#allocation37_spill] sm:$0xff]  ;;  %v2102_v46 = vld [vmem:[#allocation8 + $0x228] sm:$0xff]  ;;  %2246 = vst [vmem:[#allocation8 + $0x1f8] sm:$0xff] %v2171_v28 }
 0x2a8   : > { %v2174_v21 = vadd.f32 %v2099_v54, %v4643_v35  ;;  %v2176_v34 = vadd.f32 %v2101_v10, %v4645_v25  ;;  %v2103_v6 = vld [vmem:[#allocation8 + $0x230] sm:$0xff]  ;;  %v2104_v58 = vld [vmem:[#allocation8 + $0x238] sm:$0xff]  ;;  %2247 = vst [vmem:[#allocation8 + $0x200] sm:$0xff] %v2172_v16  ;;  %2248 = vst [vmem:[#allocation8 + $0x208] sm:$0xff] %v2173_v57 }
 0x2a9   : > { %v4646_v29 = vld [vmem:[#allocation41_spill] sm:$0xff]  ;;  %v4647_v42 = vld [vmem:[#allocation42_spill] sm:$0xff]  ;;  %v4648_v52 = vld [vmem:[#allocation40_spill] sm:$0xff]  ;;  %2250 = vst [vmem:[#allocation8 + $0x218] sm:$0xff] %v2175_v31 }
 0x2aa   : > { %v2177_v24 = vadd.f32 %v2102_v46, %v4646_v29  ;;  %v2178_v13 = vadd.f32 %v2103_v6, %v4647_v42  ;;  %v2179_v47 = vadd.f32 %v2104_v58, %v4648_v52  ;;  %v2105_v0 = vld [vmem:[#allocation8 + $0x240] sm:$0xf]  ;;  %v2106_v61 = vld [vmem:[#allocation8 + $0x248] sm:$0xf]  ;;  %v2107_v38 = vld [vmem:[#allocation8 + $0x250] sm:$0xf] }
 0x2ab   : > { %2249 = vst [vmem:[#allocation8 + $0x210] sm:$0xff] %v2174_v21  ;;  %2251 = vst [vmem:[#allocation8 + $0x220] sm:$0xff] %v2176_v34  ;;  %v2180_v36 = vadd.f32 %v2105_v0, %v4258_v7  ;;  %v4649_v43 = vld [vmem:[#allocation44_spill] sm:$0xff]  ;;  %v4650_v19 = vld [vmem:[#allocation43_spill] sm:$0xff] }
 0x2ac   : > { %v2181_v4 = vadd.f32 %v2106_v61, %v4649_v43  ;;  %v2182_v49 = vadd.f32 %v2107_v38, %v4650_v19  ;;  %2252 = vst [vmem:[#allocation8 + $0x228] sm:$0xff] %v2177_v24  ;;  %2253 = vst [vmem:[#allocation8 + $0x230] sm:$0xff] %v2178_v13 }
 0x2ad   : > { %2254 = vst [vmem:[#allocation8 + $0x238] sm:$0xff] %v2179_v47  ;;  %2255 = vst [vmem:[#allocation8 + $0x240] sm:$0xf] %v2180_v36 }
 0x2ae   : > { %2256 = vst [vmem:[#allocation8 + $0x248] sm:$0xf] %v2181_v4  ;;  %2257 = vst [vmem:[#allocation8 + $0x250] sm:$0xf] %v2182_v49 }
 0x2af PF: > { %p2740_p8 = scmp.eq.s32.totalorder %s3239_s18, 2  ;;  %s3187_s15 = smov [#allocation8]  }
 0x2b0   : > { %s2268_s20 = sshll.u32 %s3187_s15, 4  ;;  %s2269_s20 = int_to_ptr.vmem [resolvable:$true] %s2268_s20 }
 0x2b1   : > { %s3088_s21 = scalar_lea.vmem %s2269_s20, 9600  ;;  %p3095_p0 = scmp.lt.s32.totalorder %s2269_s20, %s2269_s20 }
 0x2b2   : > { %p3089_p13 = scmp.ne.s32.totalorder %s2269_s20, %s3088_s21  ;;  %p3096_p5 = scmp.lt.s32.totalorder %s3088_s21, %s3088_s21 }
 0x2b4   : > { %p3090_p1 = pnand %p3089_p13, %p2740_p8  ;;  %p3097_p7 = por %p3096_p5, %p3095_p0 }
 0x2b6   : > { %p3091_p2 = pneg %p3090_p1 }
 0x2b8   : > { %p3098_p9 = pnand %p3097_p7, %p3091_p2 }
 0x2ba   : > { %3101 = shalt.err (!%p3098_p9)
}
 0x2bb   : > { %s3102_s6 = scalar_lea.hbm %s4539_s3, 9600 }
 0x2bc   : > { %p3103_p12 = scmp.ne.s32.totalorder %s4539_s3, %s3102_s6  ;;  %p3108_p10 = scmp.lt.u32.totalorder %s3102_s6, %s4539_s3 }
 0x2be   : > { %p3104_p4 = pnand %p3103_p12, %p2740_p8 }
 0x2c0   : > { %p3105_p11 = pneg %p3104_p4 }
 0x2c2   : > { %p3110_p3 = pnand %p3108_p10, %p3105_p11 }
 0x2c4   : > { %3113 = shalt.err (!%p3110_p3)
}
 0x2c5   : > { %s3188_s9 = smov 384   ;;  %s3189_s0 = smov 24  }
 0x2c6   : > { %2723 = dma.vmem_to_hbm [thread:$0]  (%p2740_p8), %s2269_s20, 9600, %s4539_s3, [#allocation4], %s3188_s9, %s3188_s9, %s3189_s0  }
 0x2c7   : > { %3151 = dma.done.wait (%p2740_p8), [#allocation4], 9600  }
 0x2c8   : > { %3153 = vsyncadd (%p2740_p8), [#allocation4], 4294957696 }
 0x2c9 PF: > { %s20_s17 = sadd.s32 1, %s3176_s17   ;;  %s4651_s12 = smov %s3160_s13 }
 0x2ca   : > { %p17_p6 = scmp.ge.s32.totalorder %s20_s17, 5   ;;  %s4652_s13 = smov %s3164_s14 }
 0x2cb   : > { %s4653_s14 = smov %s3309_s5  ;;  %s4654_s15 = smov %s3172_s16 }
 0x2cc   : > { %s4655_s16 = smov %s4657_s11  ;;  %19 = sbr.rel (!%p17_p6) target bundleno = 9 (0x9), region = 95 }
 0x2d3   :  { %2284 = vsyncpa [#allocation3], 1 }
 0x2d4   :  { %2286 = vsyncpa [#allocation3 + $0x1], 1 }
 0x2d5   :  { %2287 = vsyncpa [#allocation6], 1 }
 0x2d6   :  { %2289 = vsyncpa [#allocation6 + $0x1], 1 }
 0x2d7   :  { %2290 = vsyncpa [#allocation4], 1 }
 0x2d8   :  { %2292 = vsyncpa [#allocation4 + $0x1], 1 }

</bundles_post_ra>
